<compile_context>
chip_gen: v6e
topology: v6e:2x2x1
jax: 0.10.0
libtpu: 0.0.40
codegen_flags: <defaults>
</compile_context>

<pallas_src>
import functools

import jax
import jax.numpy as jnp
from jax.experimental import pallas as pl
from jax.experimental.pallas import tpu as pltpu

SOLAR_CONSTANT = 1361.0


def _rt_kernel(n_layers, n_channel, n_constituent,
               # inputs (batch tile on the last / lane axis)
               mu_ref, csp_ref, ke_ref, sd_ref, sf_ref, xl_ref, xs_ref,
               # outputs (lane-dense)
               fdd_ref, fdf_ref, fud_ref, fabs_ref,
               sdir_ref, sdif_ref, rtoa_ref, tdirt_ref, tdift_ref,
               # scratch
               td_s, sdd_s, rdr_s, rdf_s, Tdf_s,
               rdir_s, rdif_s, dfac_s, ddir_c, ddif_c, uup_c):
    L, C, K = n_layers, n_channel, n_constituent
    Bt = xl_ref.shape[-1]

    xl = xl_ref[...]                       # (L, 10, Bt)
    xs = xs_ref[...]                       # (4, Bt)

    T = xl[:, 0:1, :]                      # (L, 1, Bt) temperature
    P = xl[:, 1:2, :]                      # (L, 1, Bt) pressure
    cons = xl[:, 2:2 + K, :]               # (L, K, Bt) constituents

    mu_dir = xs[0:1, :]                    # (1, Bt)
    alb_dir = xs[1:2, :]                   # (1, Bt)
    alb_dif = xs[2:3, :]                   # (1, Bt)

    mu_dif = mu_ref[...]                   # (1, 1)
    csp = csp_ref[...]                     # (C, 1)  channel split (sublane-major)

    ke = ke_ref[...]                       # (3, K, C, 1): [W_T, W_P, bias]
    sd = sd_ref[...]                       # (3, 3, C, 1): direct split [W_tau, W_mu, b]
    sf = sf_ref[...]                       # (3, 3, C, 1): diffuse split

    # ---------------- optical depth (fused over constituents, single exp) ---
    # tau[l,c,b] = sum_k exp(W_T[k,c]*T[l,b] + W_P[k,c]*P[l,b] + b[k,c]) * q[l,k,b]
    z = (T[:, :, None, :] * ke[0][None]
         + P[:, :, None, :] * ke[1][None]
         + ke[2][None])                                   # (L, K, C, Bt)
    tau = jnp.sum(jnp.exp(z) * cons[:, :, None, :], axis=1)  # (L, C, Bt)

    # ---------------- scattering --------------------------------------------
    # clamp mu to avoid inf for sun-below-horizon columns / batch padding
    inv_mu_dir = pl.reciprocal(jnp.maximum(mu_dir, 1e-6), approx=True)  # (1, Bt)
    inv_mu_dif = 1.0 / mu_dif                                           # (1, 1)

    t_direct = jnp.exp(-tau * inv_mu_dir[:, None, :])     # (L, C, Bt)
    t_diffuse = jnp.exp(-tau * inv_mu_dif)                # (L, C, Bt)

    def split3(sw, mu_term):
        # 3-way softmax split of the extinguished fraction:
        # [0] scattered downward (diffuse), [1] reflected upward, [2] absorbed.
        lg = (tau[:, None, :, :] * sw[0][None]
              + mu_term * sw[1][None]
              + sw[2][None])                              # (L, 3, C, Bt), one exp
        m = jnp.max(lg, axis=1, keepdims=True)
        e = jnp.exp(lg - m)
        inv = pl.reciprocal(e[:, 0] + e[:, 1] + e[:, 2], approx=True)
        return e[:, 0] * inv, e[:, 1] * inv

    ed0, ed1 = split3(sd, mu_dir[None, :, None, :])       # direct (per-column mu)
    ef0, ef1 = split3(sf, mu_dif)                         # diffuse (scalar mu)

    ext_dir = 1.0 - t_direct
    ext_dif = 1.0 - t_diffuse
    r_dir = ext_dir * ed1                                 # direct -> reflected up
    sd_dir = ext_dir * ed0                                # direct -> scattered down
    r_dif = ext_dif * ef1
    sd_dif = ext_dif * ef0
    T_dif = t_diffuse + sd_dif                            # total diffuse transmittance

    csp3 = csp[None]                                      # (1, C, 1)
    sdir_ref[...] = jnp.sum(ext_dir * (ed0 + ed1) * csp3, axis=1)   # (L, Bt)
    sdif_ref[...] = jnp.sum(ext_dif * (ef0 + ef1) * csp3, axis=1)
    tdirt_ref[...] = jnp.sum(t_direct * csp3, axis=1)
    tdift_ref[...] = jnp.sum(t_diffuse * csp3, axis=1)

    # stash per-layer channel properties in scratch so the recurrences use
    # cheap ref[i] views instead of dynamic slices of large SSA values.
    td_s[...] = t_direct
    sdd_s[...] = sd_dir
    rdr_s[...] = r_dir
    rdf_s[...] = r_dif
    Tdf_s[...] = T_dif

    # ---------------- multi-reflection (adding method, surface upward) ------
    rdir_s[L] = jnp.broadcast_to(alb_dir, (C, Bt))
    rdif_s[L] = jnp.broadcast_to(alb_dif, (C, Bt))

    @pl.loop(0, L)
    def _(j):
        i = L - 1 - j
        rdir_nx = rdir_s[i + 1]
        rdif_nx = rdif_s[i + 1]
        td = td_s[i]
        sdd = sdd_s[i]
        rdr = rdr_s[i]
        rdf = rdf_s[i]
        Tdf = Tdf_s[i]
        # exact divide: denominator can approach 0 (energy-balance sensitive)
        d = 1.0 / (1.0 - rdf * rdif_nx)
        U = (td * rdir_nx + sdd * rdif_nx) * d
        rdir_s[i] = rdr + Tdf * U
        rdif_s[i] = rdf + Tdf * Tdf * rdif_nx * d
        dfac_s[i] = d

    rtoa_ref[...] = jnp.sum(rdir_s[0] * csp, axis=0, keepdims=True)  # (1, Bt)

    # ---------------- propagation (TOA downward) -----------------------------
    ddir0 = csp * (mu_dir * SOLAR_CONSTANT)               # (C, Bt)
    ddif0 = jnp.zeros((C, Bt), jnp.float32)
    uup0 = ddir0 * rdir_s[0]                              # (diffuse down at TOA is 0)
    ddir_c[...] = ddir0
    ddif_c[...] = ddif0
    uup_c[...] = uup0
    fdd_ref[0:1, :] = jnp.sum(ddir0, axis=0, keepdims=True)
    fdf_ref[0:1, :] = jnp.zeros((1, Bt), jnp.float32)
    fud_ref[0:1, :] = jnp.sum(uup0, axis=0, keepdims=True)

    @pl.loop(0, L)
    def _(i):
        ddir = ddir_c[...]
        ddif = ddif_c[...]
        uup = uup_c[...]
        td = td_s[i]
        sdd = sdd_s[i]
        rdf = rdf_s[i]
        Tdf = Tdf_s[i]
        rdir_nx = rdir_s[i + 1]
        rdif_nx = rdif_s[i + 1]
        d = dfac_s[i]
        ddir_nx = td * ddir
        ddif_nx = (sdd * ddir + Tdf * ddif + rdf * rdir_nx * ddir_nx) * d
        u_below = ddir_nx * rdir_nx + ddif_nx * rdif_nx
        a_abs = ddir + ddif + u_below - ddir_nx - ddif_nx - uup   # energy balance
        fdd_ref[pl.ds(i + 1, 1), :] = jnp.sum(ddir_nx, axis=0, keepdims=True)
        fdf_ref[pl.ds(i + 1, 1), :] = jnp.sum(ddif_nx, axis=0, keepdims=True)
        fud_ref[pl.ds(i + 1, 1), :] = jnp.sum(u_below, axis=0, keepdims=True)
        fabs_ref[pl.ds(i, 1), :] = jnp.sum(a_abs, axis=0, keepdims=True)
        ddir_c[...] = ddir_nx
        ddif_c[...] = ddif_nx
        uup_c[...] = u_below


def init_params(key, n_channel, n_constituent):
    k = jax.random.split(key, 8)
    return dict(
        # nn.Linear(1, 1, bias=False), uniform(0.4, 0.6)
        w_mu=jax.random.uniform(k[0], (1, 1), jnp.float32, 0.4, 0.6),
        # nn.Linear(1, n_channel, bias=False), uniform(0.4, 0.6)
        w_spec=jax.random.uniform(k[1], (n_channel, 1), jnp.float32, 0.4, 0.6),
        # optical depth net: per (constituent, channel) extinction coeff = exp(lin(T,P))
        ke_w=jax.random.uniform(k[2], (n_constituent, 2, n_channel), jnp.float32, -0.5, 0.5),
        ke_b=jax.random.uniform(k[3], (n_constituent, n_channel), jnp.float32, -1.0, 0.0),
        # scattering split nets (direct / diffuse), 3 logits per channel from (tau, mu)
        wsd=jax.random.uniform(k[4], (3, 2, n_channel), jnp.float32, -0.5, 0.5),
        bsd=jax.random.uniform(k[5], (3, n_channel), jnp.float32, -0.1, 0.1),
        wsf=jax.random.uniform(k[6], (3, 2, n_channel), jnp.float32, -0.5, 0.5),
        bsf=jax.random.uniform(k[7], (3, n_channel), jnp.float32, -0.1, 0.1),
    )


def full_net_internals(x, params, n_channel, n_constituent, batch_tile=128):
    x_layers, x_surface = x[0], x[1]
    B, L, _ = x_layers.shape
    C, K = n_channel, n_constituent
    Bt = batch_tile
    f32 = jnp.float32

    # glue: the two 1-input Linear layers + sigmoid / softmax (tiny, stays in XLA)
    one = jnp.ones((1,), f32)
    mu_diffuse_original = jax.nn.sigmoid(params["w_mu"] @ one)   # (1,)
    channel_split = jax.nn.softmax(params["w_spec"] @ one)       # (C,)
    mu_direct = x_surface[:, 0]

    # pack params channel-on-sublane (trailing singleton lane) for the kernel
    ke_pack = jnp.stack([params["ke_w"][:, 0, :], params["ke_w"][:, 1, :],
                         params["ke_b"]], axis=0)[..., None]     # (3, K, C, 1)
    sd_pack = jnp.stack([params["wsd"][:, 0, :], params["wsd"][:, 1, :],
                         params["bsd"]], axis=0)[..., None]      # (3, 3, C, 1)
    sf_pack = jnp.stack([params["wsf"][:, 0, :], params["wsf"][:, 1, :],
                         params["bsf"]], axis=0)[..., None]      # (3, 3, C, 1)

    # pad batch to a multiple of the lane tile and put batch on the last axis
    B_pad = ((B + Bt - 1) // Bt) * Bt
    pad = B_pad - B
    xl = x_layers.astype(f32)
    xs = x_surface.astype(f32)
    if pad:
        xl = jnp.pad(xl, ((0, pad), (0, 0), (0, 0)))
        # pad mu/albedos with 1.0: keeps padded lanes finite; results discarded
        xs = jnp.pad(xs, ((0, pad), (0, 0)), constant_values=1.0)
    xl_t = jnp.transpose(xl, (1, 2, 0))    # (L, 10, B_pad)   batch on lanes
    xs_t = jnp.transpose(xs, (1, 0))       # (4, B_pad)
    F = xl_t.shape[1]
    nb = B_pad // Bt

    kernel = functools.partial(_rt_kernel, L, C, K)
    out_shapes = (
        jax.ShapeDtypeStruct((L + 1, B_pad), f32),  # flux_down_direct
        jax.ShapeDtypeStruct((L + 1, B_pad), f32),  # flux_down_diffuse
        jax.ShapeDtypeStruct((L + 1, B_pad), f32),  # flux_up_diffuse
        jax.ShapeDtypeStruct((L, B_pad), f32),      # flux_absorbed
        jax.ShapeDtypeStruct((L, B_pad), f32),      # s_direct
        jax.ShapeDtypeStruct((L, B_pad), f32),      # s_diffuse
        jax.ShapeDtypeStruct((1, B_pad), f32),      # r_toa
        jax.ShapeDtypeStruct((L, B_pad), f32),      # t_direct_total
        jax.ShapeDtypeStruct((L, B_pad), f32),      # t_diffuse_total
    )

    grid_spec = pltpu.PrefetchScalarGridSpec(
        num_scalar_prefetch=0,
        grid=(nb,),
        in_specs=[
            pl.BlockSpec((1, 1), lambda i: (0, 0)),                 # mu_diffuse
            pl.BlockSpec((C, 1), lambda i: (0, 0)),                 # channel_split
            pl.BlockSpec((3, K, C, 1), lambda i: (0, 0, 0, 0)),     # optical-depth params
            pl.BlockSpec((3, 3, C, 1), lambda i: (0, 0, 0, 0)),     # direct split params
            pl.BlockSpec((3, 3, C, 1), lambda i: (0, 0, 0, 0)),     # diffuse split params
            pl.BlockSpec((L, F, Bt), lambda i: (0, 0, i)),          # x_layers (batch tiled)
            pl.BlockSpec((4, Bt), lambda i: (0, i)),                # x_surface (batch tiled)
        ],
        out_specs=(
            pl.BlockSpec((L + 1, Bt), lambda i: (0, i)),
            pl.BlockSpec((L + 1, Bt), lambda i: (0, i)),
            pl.BlockSpec((L + 1, Bt), lambda i: (0, i)),
            pl.BlockSpec((L, Bt), lambda i: (0, i)),
            pl.BlockSpec((L, Bt), lambda i: (0, i)),
            pl.BlockSpec((L, Bt), lambda i: (0, i)),
            pl.BlockSpec((1, Bt), lambda i: (0, i)),
            pl.BlockSpec((L, Bt), lambda i: (0, i)),
            pl.BlockSpec((L, Bt), lambda i: (0, i)),
        ),
        scratch_shapes=[
            pltpu.VMEM((L, C, Bt), f32),        # t_direct
            pltpu.VMEM((L, C, Bt), f32),        # sd_dir
            pltpu.VMEM((L, C, Bt), f32),        # r_dir
            pltpu.VMEM((L, C, Bt), f32),        # r_dif
            pltpu.VMEM((L, C, Bt), f32),        # T_dif
            pltpu.VMEM((L + 1, C, Bt), f32),    # R_dir at levels
            pltpu.VMEM((L + 1, C, Bt), f32),    # R_dif at levels
            pltpu.VMEM((L, C, Bt), f32),        # dfac
            pltpu.VMEM((C, Bt), f32),           # D_dir carry
            pltpu.VMEM((C, Bt), f32),           # D_dif carry
            pltpu.VMEM((C, Bt), f32),           # U_up carry
        ],
    )

    outs = pl.pallas_call(
        kernel,
        out_shape=out_shapes,
        grid_spec=grid_spec,
        compiler_params=pltpu.CompilerParams(
            dimension_semantics=("parallel",),
            vmem_limit_bytes=64 * 1024 * 1024),
    )(mu_diffuse_original.reshape(1, 1).astype(f32),
      channel_split.reshape(C, 1).astype(f32),
      ke_pack.astype(f32), sd_pack.astype(f32), sf_pack.astype(f32),
      xl_t, xs_t)

    (fdd_t, fdf_t, fud_t, fabs_t, sdir_t, sdif_t,
     rtoa_t, tdirt_t, tdift_t) = outs

    flux_down_direct = fdd_t.T[:B]
    flux_down_diffuse = fdf_t.T[:B]
    flux_up_diffuse = fud_t.T[:B]
    flux_absorbed = fabs_t.T[:B]
    s_direct = sdir_t.T[:B]
    s_diffuse = sdif_t.T[:B]
    r_toa = rtoa_t[0, :B]
    t_direct_total = tdirt_t.T[:B]
    t_diffuse_total = tdift_t.T[:B]

    predicted_data = [flux_down_direct, flux_down_diffuse,
                      flux_up_diffuse, flux_absorbed]
    internal_data = [x_layers[:, :, 2], x_layers[:, :, 3], x_layers[:, :, 5],
                     mu_diffuse_original, s_direct, s_diffuse, r_toa,
                     x_surface[:, 1], mu_direct, t_direct_total,
                     t_diffuse_total, x_layers[:, :, 4]]
    return predicted_data, internal_data


if __name__ == "__main__":
    B, L, C, K = 2, 8, 8, 8
    key = jax.random.PRNGKey(0)
    kp, kx, ks = jax.random.split(key, 3)

    params = init_params(kp, C, K)

    tp = 0.5 * jax.random.normal(kx, (B, L, 2), jnp.float32)
    cons = jax.random.uniform(jax.random.fold_in(kx, 1), (B, L, K),
                              jnp.float32, 0.0, 0.5)
    x_layers = jnp.concatenate([tp, cons], axis=2)               # (B, L, 10)

    mu = jax.random.uniform(ks, (B, 1), jnp.float32, 0.2, 1.0)
    albs = jax.random.uniform(jax.random.fold_in(ks, 1), (B, 3),
                              jnp.float32, 0.05, 0.8)
    x_surface = jnp.concatenate([mu, albs], axis=1)              # (B, 4)

    x = (x_layers, x_surface, None, None, None)

    predicted, internal = full_net_internals(x, params, n_channel=C,
                                             n_constituent=K)
    jax.block_until_ready(predicted)
    jax.block_until_ready(internal)
    print("KERNEL_OK")
</pallas_src>

<mosaic_0001>
module attributes {stable_mosaic.version = 11 : i64} {
  func.func @_rt_kernel(%arg0: i32, %arg1: memref<1x1xf32, #tpu.memory_space<vmem>>, %arg2: memref<8x1xf32, #tpu.memory_space<vmem>>, %arg3: memref<3x8x8x1xf32, #tpu.memory_space<vmem>>, %arg4: memref<3x3x8x1xf32, #tpu.memory_space<vmem>>, %arg5: memref<3x3x8x1xf32, #tpu.memory_space<vmem>>, %arg6: memref<8x10x128xf32, #tpu.memory_space<vmem>>, %arg7: memref<4x128xf32, #tpu.memory_space<vmem>>, %arg8: memref<9x128xf32, #tpu.memory_space<vmem>>, %arg9: memref<9x128xf32, #tpu.memory_space<vmem>>, %arg10: memref<9x128xf32, #tpu.memory_space<vmem>>, %arg11: memref<8x128xf32, #tpu.memory_space<vmem>>, %arg12: memref<8x128xf32, #tpu.memory_space<vmem>>, %arg13: memref<8x128xf32, #tpu.memory_space<vmem>>, %arg14: memref<1x128xf32, #tpu.memory_space<vmem>>, %arg15: memref<8x128xf32, #tpu.memory_space<vmem>>, %arg16: memref<8x128xf32, #tpu.memory_space<vmem>>, %arg17: memref<8x8x128xf32, #tpu.memory_space<vmem>>, %arg18: memref<8x8x128xf32, #tpu.memory_space<vmem>>, %arg19: memref<8x8x128xf32, #tpu.memory_space<vmem>>, %arg20: memref<8x8x128xf32, #tpu.memory_space<vmem>>, %arg21: memref<8x8x128xf32, #tpu.memory_space<vmem>>, %arg22: memref<9x8x128xf32, #tpu.memory_space<vmem>>, %arg23: memref<9x8x128xf32, #tpu.memory_space<vmem>>, %arg24: memref<8x8x128xf32, #tpu.memory_space<vmem>>, %arg25: memref<8x128xf32, #tpu.memory_space<vmem>>, %arg26: memref<8x128xf32, #tpu.memory_space<vmem>>, %arg27: memref<8x128xf32, #tpu.memory_space<vmem>>) attributes {dimension_semantics = [#tpu.dimension_semantics<parallel>], iteration_bounds = array<i64: 1>, scalar_prefetch = 0 : i64, scratch_operands = 11 : i64, tpu.core_type = #tpu.core_type<tc>, window_params = [{pipeline_mode = #tpu.pipeline_mode<synchronous>, transform_indices = @transform_0, window_bounds = array<i64: 1, 1>}, {pipeline_mode = #tpu.pipeline_mode<synchronous>, transform_indices = @transform_1, window_bounds = array<i64: 8, 1>}, {pipeline_mode = #tpu.pipeline_mode<synchronous>, transform_indices = @transform_2, window_bounds = array<i64: 3, 8, 8, 1>}, {pipeline_mode = #tpu.pipeline_mode<synchronous>, transform_indices = @transform_3, window_bounds = array<i64: 3, 3, 8, 1>}, {pipeline_mode = #tpu.pipeline_mode<synchronous>, transform_indices = @transform_4, window_bounds = array<i64: 3, 3, 8, 1>}, {transform_indices = @transform_5, window_bounds = array<i64: 8, 10, 128>}, {transform_indices = @transform_6, window_bounds = array<i64: 4, 128>}, {transform_indices = @transform_7, window_bounds = array<i64: 9, 128>}, {transform_indices = @transform_8, window_bounds = array<i64: 9, 128>}, {transform_indices = @transform_9, window_bounds = array<i64: 9, 128>}, {transform_indices = @transform_10, window_bounds = array<i64: 8, 128>}, {transform_indices = @transform_11, window_bounds = array<i64: 8, 128>}, {transform_indices = @transform_12, window_bounds = array<i64: 8, 128>}, {transform_indices = @transform_13, window_bounds = array<i64: 1, 128>}, {transform_indices = @transform_14, window_bounds = array<i64: 8, 128>}, {transform_indices = @transform_15, window_bounds = array<i64: 8, 128>}]} {
    %c0 = arith.constant 0 : index
    %c0_0 = arith.constant 0 : index
    %c0_1 = arith.constant 0 : index
    %0 = vector.load %arg6[%c0, %c0_0, %c0_1] : memref<8x10x128xf32, #tpu.memory_space<vmem>>, vector<8x10x128xf32>
    %c0_2 = arith.constant 0 : index
    %c0_3 = arith.constant 0 : index
    %1 = vector.load %arg7[%c0_2, %c0_3] : memref<4x128xf32, #tpu.memory_space<vmem>>, vector<4x128xf32>
    %2 = vector.extract_strided_slice %0 {offsets = [0, 0, 0], sizes = [8, 1, 128], strides = [1, 1, 1]} : vector<8x10x128xf32> to vector<8x1x128xf32>
    %3 = vector.extract_strided_slice %0 {offsets = [0, 1, 0], sizes = [8, 1, 128], strides = [1, 1, 1]} : vector<8x10x128xf32> to vector<8x1x128xf32>
    %4 = vector.extract_strided_slice %0 {offsets = [0, 2, 0], sizes = [8, 8, 128], strides = [1, 1, 1]} : vector<8x10x128xf32> to vector<8x8x128xf32>
    %5 = vector.extract_strided_slice %1 {offsets = [0, 0], sizes = [1, 128], strides = [1, 1]} : vector<4x128xf32> to vector<1x128xf32>
    %6 = vector.extract_strided_slice %1 {offsets = [1, 0], sizes = [1, 128], strides = [1, 1]} : vector<4x128xf32> to vector<1x128xf32>
    %7 = vector.extract_strided_slice %1 {offsets = [2, 0], sizes = [1, 128], strides = [1, 1]} : vector<4x128xf32> to vector<1x128xf32>
    %c0_4 = arith.constant 0 : index
    %c0_5 = arith.constant 0 : index
    %8 = vector.load %arg1[%c0_4, %c0_5] : memref<1x1xf32, #tpu.memory_space<vmem>>, vector<1x1xf32>
    %c0_6 = arith.constant 0 : index
    %c0_7 = arith.constant 0 : index
    %9 = vector.load %arg2[%c0_6, %c0_7] : memref<8x1xf32, #tpu.memory_space<vmem>>, vector<8x1xf32>
    %c0_8 = arith.constant 0 : index
    %c0_9 = arith.constant 0 : index
    %c0_10 = arith.constant 0 : index
    %c0_11 = arith.constant 0 : index
    %10 = vector.load %arg3[%c0_8, %c0_9, %c0_10, %c0_11] : memref<3x8x8x1xf32, #tpu.memory_space<vmem>>, vector<3x8x8x1xf32>
    %c0_12 = arith.constant 0 : index
    %c0_13 = arith.constant 0 : index
    %c0_14 = arith.constant 0 : index
    %c0_15 = arith.constant 0 : index
    %11 = vector.load %arg4[%c0_12, %c0_13, %c0_14, %c0_15] : memref<3x3x8x1xf32, #tpu.memory_space<vmem>>, vector<3x3x8x1xf32>
    %c0_16 = arith.constant 0 : index
    %c0_17 = arith.constant 0 : index
    %c0_18 = arith.constant 0 : index
    %c0_19 = arith.constant 0 : index
    %12 = vector.load %arg5[%c0_16, %c0_17, %c0_18, %c0_19] : memref<3x3x8x1xf32, #tpu.memory_space<vmem>>, vector<3x3x8x1xf32>
    %13 = vector.shape_cast %2 : vector<8x1x128xf32> to vector<8x1x1x128xf32>
    %14 = vector.extract_strided_slice %10 {offsets = [0, 0, 0, 0], sizes = [1, 8, 8, 1], strides = [1, 1, 1, 1]} : vector<3x8x8x1xf32> to vector<1x8x8x1xf32>
    %15 = vector.shape_cast %14 : vector<1x8x8x1xf32> to vector<8x8x1xf32>
    %16 = vector.shape_cast %15 : vector<8x8x1xf32> to vector<1x8x8x1xf32>
    %17 = vector.broadcast %13 : vector<8x1x1x128xf32> to vector<8x8x8x128xf32>
    %18 = vector.broadcast %16 : vector<1x8x8x1xf32> to vector<8x8x8x128xf32>
    %19 = arith.mulf %17, %18 : vector<8x8x8x128xf32>
    %20 = vector.shape_cast %3 : vector<8x1x128xf32> to vector<8x1x1x128xf32>
    %21 = vector.extract_strided_slice %10 {offsets = [1, 0, 0, 0], sizes = [1, 8, 8, 1], strides = [1, 1, 1, 1]} : vector<3x8x8x1xf32> to vector<1x8x8x1xf32>
    %22 = vector.shape_cast %21 : vector<1x8x8x1xf32> to vector<8x8x1xf32>
    %23 = vector.shape_cast %22 : vector<8x8x1xf32> to vector<1x8x8x1xf32>
    %24 = vector.broadcast %20 : vector<8x1x1x128xf32> to vector<8x8x8x128xf32>
    %25 = vector.broadcast %23 : vector<1x8x8x1xf32> to vector<8x8x8x128xf32>
    %26 = arith.mulf %24, %25 : vector<8x8x8x128xf32>
    %27 = arith.addf %19, %26 : vector<8x8x8x128xf32>
    %28 = vector.extract_strided_slice %10 {offsets = [2, 0, 0, 0], sizes = [1, 8, 8, 1], strides = [1, 1, 1, 1]} : vector<3x8x8x1xf32> to vector<1x8x8x1xf32>
    %29 = vector.shape_cast %28 : vector<1x8x8x1xf32> to vector<8x8x1xf32>
    %30 = vector.shape_cast %29 : vector<8x8x1xf32> to vector<1x8x8x1xf32>
    %31 = vector.broadcast %30 : vector<1x8x8x1xf32> to vector<8x8x8x128xf32>
    %32 = arith.addf %27, %31 : vector<8x8x8x128xf32>
    %33 = math.exp %32 : vector<8x8x8x128xf32>
    %34 = vector.shape_cast %4 : vector<8x8x128xf32> to vector<8x8x1x128xf32>
    %35 = vector.broadcast %34 : vector<8x8x1x128xf32> to vector<8x8x8x128xf32>
    %36 = arith.mulf %33, %35 : vector<8x8x8x128xf32>
    %cst = arith.constant dense<0.000000e+00> : vector<8x8x128xf32>
    %37 = vector.multi_reduction <add>, %36, %cst [1] : vector<8x8x8x128xf32> to vector<8x8x128xf32>
    %cst_20 = arith.constant 9.99999997E-7 : f32
    %38 = vector.broadcast %cst_20 : f32 to vector<1x128xf32>
    %39 = arith.maximumf %5, %38 : vector<1x128xf32>
    %40 = tpu.reciprocal %39 {approx = true} : vector<1x128xf32> -> vector<1x128xf32>
    %cst_21 = arith.constant 1.000000e+00 : f32
    %41 = vector.broadcast %cst_21 : f32 to vector<1x1xf32>
    %42 = arith.divf %41, %8 : vector<1x1xf32>
    %cst_22 = arith.constant 0.000000e+00 : f32
    %43 = vector.broadcast %cst_22 : f32 to vector<8x8x128xf32>
    %44 = arith.subf %43, %37 : vector<8x8x128xf32>
    %45 = vector.shape_cast %40 : vector<1x128xf32> to vector<1x1x128xf32>
    %46 = vector.broadcast %45 : vector<1x1x128xf32> to vector<8x8x128xf32>
    %47 = arith.mulf %44, %46 : vector<8x8x128xf32>
    %48 = math.exp %47 : vector<8x8x128xf32>
    %cst_23 = arith.constant 0.000000e+00 : f32
    %49 = vector.broadcast %cst_23 : f32 to vector<8x8x128xf32>
    %50 = arith.subf %49, %37 : vector<8x8x128xf32>
    %51 = vector.shape_cast %42 : vector<1x1xf32> to vector<1x1x1xf32>
    %52 = vector.broadcast %51 : vector<1x1x1xf32> to vector<8x8x128xf32>
    %53 = arith.mulf %50, %52 : vector<8x8x128xf32>
    %54 = math.exp %53 : vector<8x8x128xf32>
    %55 = vector.shape_cast %5 : vector<1x128xf32> to vector<1x1x1x128xf32>
    %56 = vector.shape_cast %37 : vector<8x8x128xf32> to vector<8x1x8x128xf32>
    %57 = vector.extract_strided_slice %11 {offsets = [0, 0, 0, 0], sizes = [1, 3, 8, 1], strides = [1, 1, 1, 1]} : vector<3x3x8x1xf32> to vector<1x3x8x1xf32>
    %58 = vector.shape_cast %57 : vector<1x3x8x1xf32> to vector<3x8x1xf32>
    %59 = vector.shape_cast %58 : vector<3x8x1xf32> to vector<1x3x8x1xf32>
    %60 = vector.broadcast %56 : vector<8x1x8x128xf32> to vector<8x3x8x128xf32>
    %61 = vector.broadcast %59 : vector<1x3x8x1xf32> to vector<8x3x8x128xf32>
    %62 = arith.mulf %60, %61 : vector<8x3x8x128xf32>
    %63 = vector.extract_strided_slice %11 {offsets = [1, 0, 0, 0], sizes = [1, 3, 8, 1], strides = [1, 1, 1, 1]} : vector<3x3x8x1xf32> to vector<1x3x8x1xf32>
    %64 = vector.shape_cast %63 : vector<1x3x8x1xf32> to vector<3x8x1xf32>
    %65 = vector.shape_cast %64 : vector<3x8x1xf32> to vector<1x3x8x1xf32>
    %66 = vector.broadcast %55 : vector<1x1x1x128xf32> to vector<1x3x8x128xf32>
    %67 = vector.broadcast %65 : vector<1x3x8x1xf32> to vector<1x3x8x128xf32>
    %68 = arith.mulf %66, %67 : vector<1x3x8x128xf32>
    %69 = vector.broadcast %68 : vector<1x3x8x128xf32> to vector<8x3x8x128xf32>
    %70 = arith.addf %62, %69 : vector<8x3x8x128xf32>
    %71 = vector.extract_strided_slice %11 {offsets = [2, 0, 0, 0], sizes = [1, 3, 8, 1], strides = [1, 1, 1, 1]} : vector<3x3x8x1xf32> to vector<1x3x8x1xf32>
    %72 = vector.shape_cast %71 : vector<1x3x8x1xf32> to vector<3x8x1xf32>
    %73 = vector.shape_cast %72 : vector<3x8x1xf32> to vector<1x3x8x1xf32>
    %74 = vector.broadcast %73 : vector<1x3x8x1xf32> to vector<8x3x8x128xf32>
    %75 = arith.addf %70, %74 : vector<8x3x8x128xf32>
    %cst_24 = arith.constant dense<0xFF800000> : vector<8x8x128xf32>
    %76 = vector.multi_reduction <maximumf>, %75, %cst_24 [1] : vector<8x3x8x128xf32> to vector<8x8x128xf32>
    %77 = vector.shape_cast %76 : vector<8x8x128xf32> to vector<8x1x8x128xf32>
    %78 = vector.broadcast %77 : vector<8x1x8x128xf32> to vector<8x3x8x128xf32>
    %79 = arith.subf %75, %78 : vector<8x3x8x128xf32>
    %80 = math.exp %79 : vector<8x3x8x128xf32>
    %81 = vector.extract_strided_slice %80 {offsets = [0, 0, 0, 0], sizes = [8, 1, 8, 128], strides = [1, 1, 1, 1]} : vector<8x3x8x128xf32> to vector<8x1x8x128xf32>
    %82 = vector.shape_cast %81 : vector<8x1x8x128xf32> to vector<8x8x128xf32>
    %83 = vector.extract_strided_slice %80 {offsets = [0, 1, 0, 0], sizes = [8, 1, 8, 128], strides = [1, 1, 1, 1]} : vector<8x3x8x128xf32> to vector<8x1x8x128xf32>
    %84 = vector.shape_cast %83 : vector<8x1x8x128xf32> to vector<8x8x128xf32>
    %85 = arith.addf %82, %84 : vector<8x8x128xf32>
    %86 = vector.extract_strided_slice %80 {offsets = [0, 2, 0, 0], sizes = [8, 1, 8, 128], strides = [1, 1, 1, 1]} : vector<8x3x8x128xf32> to vector<8x1x8x128xf32>
    %87 = vector.shape_cast %86 : vector<8x1x8x128xf32> to vector<8x8x128xf32>
    %88 = arith.addf %85, %87 : vector<8x8x128xf32>
    %89 = tpu.reciprocal %88 {approx = true} : vector<8x8x128xf32> -> vector<8x8x128xf32>
    %90 = vector.extract_strided_slice %80 {offsets = [0, 0, 0, 0], sizes = [8, 1, 8, 128], strides = [1, 1, 1, 1]} : vector<8x3x8x128xf32> to vector<8x1x8x128xf32>
    %91 = vector.shape_cast %90 : vector<8x1x8x128xf32> to vector<8x8x128xf32>
    %92 = arith.mulf %91, %89 : vector<8x8x128xf32>
    %93 = vector.extract_strided_slice %80 {offsets = [0, 1, 0, 0], sizes = [8, 1, 8, 128], strides = [1, 1, 1, 1]} : vector<8x3x8x128xf32> to vector<8x1x8x128xf32>
    %94 = vector.shape_cast %93 : vector<8x1x8x128xf32> to vector<8x8x128xf32>
    %95 = arith.mulf %94, %89 : vector<8x8x128xf32>
    %96 = vector.shape_cast %37 : vector<8x8x128xf32> to vector<8x1x8x128xf32>
    %97 = vector.extract_strided_slice %12 {offsets = [0, 0, 0, 0], sizes = [1, 3, 8, 1], strides = [1, 1, 1, 1]} : vector<3x3x8x1xf32> to vector<1x3x8x1xf32>
    %98 = vector.shape_cast %97 : vector<1x3x8x1xf32> to vector<3x8x1xf32>
    %99 = vector.shape_cast %98 : vector<3x8x1xf32> to vector<1x3x8x1xf32>
    %100 = vector.broadcast %96 : vector<8x1x8x128xf32> to vector<8x3x8x128xf32>
    %101 = vector.broadcast %99 : vector<1x3x8x1xf32> to vector<8x3x8x128xf32>
    %102 = arith.mulf %100, %101 : vector<8x3x8x128xf32>
    %103 = vector.extract_strided_slice %12 {offsets = [1, 0, 0, 0], sizes = [1, 3, 8, 1], strides = [1, 1, 1, 1]} : vector<3x3x8x1xf32> to vector<1x3x8x1xf32>
    %104 = vector.shape_cast %103 : vector<1x3x8x1xf32> to vector<3x8x1xf32>
    %105 = vector.shape_cast %104 : vector<3x8x1xf32> to vector<1x3x8x1xf32>
    %106 = vector.shape_cast %8 : vector<1x1xf32> to vector<1x1x1x1xf32>
    %107 = vector.broadcast %106 : vector<1x1x1x1xf32> to vector<1x3x8x1xf32>
    %108 = arith.mulf %107, %105 : vector<1x3x8x1xf32>
    %109 = vector.broadcast %108 : vector<1x3x8x1xf32> to vector<8x3x8x128xf32>
    %110 = arith.addf %102, %109 : vector<8x3x8x128xf32>
    %111 = vector.extract_strided_slice %12 {offsets = [2, 0, 0, 0], sizes = [1, 3, 8, 1], strides = [1, 1, 1, 1]} : vector<3x3x8x1xf32> to vector<1x3x8x1xf32>
    %112 = vector.shape_cast %111 : vector<1x3x8x1xf32> to vector<3x8x1xf32>
    %113 = vector.shape_cast %112 : vector<3x8x1xf32> to vector<1x3x8x1xf32>
    %114 = vector.broadcast %113 : vector<1x3x8x1xf32> to vector<8x3x8x128xf32>
    %115 = arith.addf %110, %114 : vector<8x3x8x128xf32>
    %cst_25 = arith.constant dense<0xFF800000> : vector<8x8x128xf32>
    %116 = vector.multi_reduction <maximumf>, %115, %cst_25 [1] : vector<8x3x8x128xf32> to vector<8x8x128xf32>
    %117 = vector.shape_cast %116 : vector<8x8x128xf32> to vector<8x1x8x128xf32>
    %118 = vector.broadcast %117 : vector<8x1x8x128xf32> to vector<8x3x8x128xf32>
    %119 = arith.subf %115, %118 : vector<8x3x8x128xf32>
    %120 = math.exp %119 : vector<8x3x8x128xf32>
    %121 = vector.extract_strided_slice %120 {offsets = [0, 0, 0, 0], sizes = [8, 1, 8, 128], strides = [1, 1, 1, 1]} : vector<8x3x8x128xf32> to vector<8x1x8x128xf32>
    %122 = vector.shape_cast %121 : vector<8x1x8x128xf32> to vector<8x8x128xf32>
    %123 = vector.extract_strided_slice %120 {offsets = [0, 1, 0, 0], sizes = [8, 1, 8, 128], strides = [1, 1, 1, 1]} : vector<8x3x8x128xf32> to vector<8x1x8x128xf32>
    %124 = vector.shape_cast %123 : vector<8x1x8x128xf32> to vector<8x8x128xf32>
    %125 = arith.addf %122, %124 : vector<8x8x128xf32>
    %126 = vector.extract_strided_slice %120 {offsets = [0, 2, 0, 0], sizes = [8, 1, 8, 128], strides = [1, 1, 1, 1]} : vector<8x3x8x128xf32> to vector<8x1x8x128xf32>
    %127 = vector.shape_cast %126 : vector<8x1x8x128xf32> to vector<8x8x128xf32>
    %128 = arith.addf %125, %127 : vector<8x8x128xf32>
    %129 = tpu.reciprocal %128 {approx = true} : vector<8x8x128xf32> -> vector<8x8x128xf32>
    %130 = vector.extract_strided_slice %120 {offsets = [0, 0, 0, 0], sizes = [8, 1, 8, 128], strides = [1, 1, 1, 1]} : vector<8x3x8x128xf32> to vector<8x1x8x128xf32>
    %131 = vector.shape_cast %130 : vector<8x1x8x128xf32> to vector<8x8x128xf32>
    %132 = arith.mulf %131, %129 : vector<8x8x128xf32>
    %133 = vector.extract_strided_slice %120 {offsets = [0, 1, 0, 0], sizes = [8, 1, 8, 128], strides = [1, 1, 1, 1]} : vector<8x3x8x128xf32> to vector<8x1x8x128xf32>
    %134 = vector.shape_cast %133 : vector<8x1x8x128xf32> to vector<8x8x128xf32>
    %135 = arith.mulf %134, %129 : vector<8x8x128xf32>
    %cst_26 = arith.constant 1.000000e+00 : f32
    %136 = vector.broadcast %cst_26 : f32 to vector<8x8x128xf32>
    %137 = arith.subf %136, %48 : vector<8x8x128xf32>
    %cst_27 = arith.constant 1.000000e+00 : f32
    %138 = vector.broadcast %cst_27 : f32 to vector<8x8x128xf32>
    %139 = arith.subf %138, %54 : vector<8x8x128xf32>
    %140 = arith.mulf %137, %95 : vector<8x8x128xf32>
    %141 = arith.mulf %137, %92 : vector<8x8x128xf32>
    %142 = arith.mulf %139, %135 : vector<8x8x128xf32>
    %143 = arith.mulf %139, %132 : vector<8x8x128xf32>
    %144 = arith.addf %54, %143 : vector<8x8x128xf32>
    %145 = vector.shape_cast %9 : vector<8x1xf32> to vector<1x8x1xf32>
    %146 = arith.addf %92, %95 : vector<8x8x128xf32>
    %147 = arith.mulf %137, %146 : vector<8x8x128xf32>
    %148 = vector.broadcast %145 : vector<1x8x1xf32> to vector<8x8x128xf32>
    %149 = arith.mulf %147, %148 : vector<8x8x128xf32>
    %cst_28 = arith.constant dense<0.000000e+00> : vector<8x128xf32>
    %150 = vector.multi_reduction <add>, %149, %cst_28 [1] : vector<8x8x128xf32> to vector<8x128xf32>
    %c0_29 = arith.constant 0 : index
    %c0_30 = arith.constant 0 : index
    %151 = vector.load %arg12[%c0_29, %c0_30] : memref<8x128xf32, #tpu.memory_space<vmem>>, vector<8x128xf32>
    tpu.vector_store %arg12[%c0_29, %c0_30], %150 {strides = array<i32>} : memref<8x128xf32, #tpu.memory_space<vmem>>, vector<8x128xf32>,
    %152 = arith.addf %132, %135 : vector<8x8x128xf32>
    %153 = arith.mulf %139, %152 : vector<8x8x128xf32>
    %154 = vector.broadcast %145 : vector<1x8x1xf32> to vector<8x8x128xf32>
    %155 = arith.mulf %153, %154 : vector<8x8x128xf32>
    %cst_31 = arith.constant dense<0.000000e+00> : vector<8x128xf32>
    %156 = vector.multi_reduction <add>, %155, %cst_31 [1] : vector<8x8x128xf32> to vector<8x128xf32>
    %c0_32 = arith.constant 0 : index
    %c0_33 = arith.constant 0 : index
    %157 = vector.load %arg13[%c0_32, %c0_33] : memref<8x128xf32, #tpu.memory_space<vmem>>, vector<8x128xf32>
    tpu.vector_store %arg13[%c0_32, %c0_33], %156 {strides = array<i32>} : memref<8x128xf32, #tpu.memory_space<vmem>>, vector<8x128xf32>,
    %158 = vector.broadcast %145 : vector<1x8x1xf32> to vector<8x8x128xf32>
    %159 = arith.mulf %48, %158 : vector<8x8x128xf32>
    %cst_34 = arith.constant dense<0.000000e+00> : vector<8x128xf32>
    %160 = vector.multi_reduction <add>, %159, %cst_34 [1] : vector<8x8x128xf32> to vector<8x128xf32>
    %c0_35 = arith.constant 0 : index
    %c0_36 = arith.constant 0 : index
    %161 = vector.load %arg15[%c0_35, %c0_36] : memref<8x128xf32, #tpu.memory_space<vmem>>, vector<8x128xf32>
    tpu.vector_store %arg15[%c0_35, %c0_36], %160 {strides = array<i32>} : memref<8x128xf32, #tpu.memory_space<vmem>>, vector<8x128xf32>,
    %162 = vector.broadcast %145 : vector<1x8x1xf32> to vector<8x8x128xf32>
    %163 = arith.mulf %54, %162 : vector<8x8x128xf32>
    %cst_37 = arith.constant dense<0.000000e+00> : vector<8x128xf32>
    %164 = vector.multi_reduction <add>, %163, %cst_37 [1] : vector<8x8x128xf32> to vector<8x128xf32>
    %c0_38 = arith.constant 0 : index
    %c0_39 = arith.constant 0 : index
    %165 = vector.load %arg16[%c0_38, %c0_39] : memref<8x128xf32, #tpu.memory_space<vmem>>, vector<8x128xf32>
    tpu.vector_store %arg16[%c0_38, %c0_39], %164 {strides = array<i32>} : memref<8x128xf32, #tpu.memory_space<vmem>>, vector<8x128xf32>,
    %c0_40 = arith.constant 0 : index
    %c0_41 = arith.constant 0 : index
    %c0_42 = arith.constant 0 : index
    %166 = vector.load %arg17[%c0_40, %c0_41, %c0_42] : memref<8x8x128xf32, #tpu.memory_space<vmem>>, vector<8x8x128xf32>
    tpu.vector_store %arg17[%c0_40, %c0_41, %c0_42], %48 {strides = array<i32>} : memref<8x8x128xf32, #tpu.memory_space<vmem>>, vector<8x8x128xf32>,
    %c0_43 = arith.constant 0 : index
    %c0_44 = arith.constant 0 : index
    %c0_45 = arith.constant 0 : index
    %167 = vector.load %arg18[%c0_43, %c0_44, %c0_45] : memref<8x8x128xf32, #tpu.memory_space<vmem>>, vector<8x8x128xf32>
    tpu.vector_store %arg18[%c0_43, %c0_44, %c0_45], %141 {strides = array<i32>} : memref<8x8x128xf32, #tpu.memory_space<vmem>>, vector<8x8x128xf32>,
    %c0_46 = arith.constant 0 : index
    %c0_47 = arith.constant 0 : index
    %c0_48 = arith.constant 0 : index
    %168 = vector.load %arg19[%c0_46, %c0_47, %c0_48] : memref<8x8x128xf32, #tpu.memory_space<vmem>>, vector<8x8x128xf32>
    tpu.vector_store %arg19[%c0_46, %c0_47, %c0_48], %140 {strides = array<i32>} : memref<8x8x128xf32, #tpu.memory_space<vmem>>, vector<8x8x128xf32>,
    %c0_49 = arith.constant 0 : index
    %c0_50 = arith.constant 0 : index
    %c0_51 = arith.constant 0 : index
    %169 = vector.load %arg20[%c0_49, %c0_50, %c0_51] : memref<8x8x128xf32, #tpu.memory_space<vmem>>, vector<8x8x128xf32>
    tpu.vector_store %arg20[%c0_49, %c0_50, %c0_51], %142 {strides = array<i32>} : memref<8x8x128xf32, #tpu.memory_space<vmem>>, vector<8x8x128xf32>,
    %c0_52 = arith.constant 0 : index
    %c0_53 = arith.constant 0 : index
    %c0_54 = arith.constant 0 : index
    %170 = vector.load %arg21[%c0_52, %c0_53, %c0_54] : memref<8x8x128xf32, #tpu.memory_space<vmem>>, vector<8x8x128xf32>
    tpu.vector_store %arg21[%c0_52, %c0_53, %c0_54], %144 {strides = array<i32>} : memref<8x8x128xf32, #tpu.memory_space<vmem>>, vector<8x8x128xf32>,
    %171 = vector.shape_cast %6 : vector<1x128xf32> to vector<1x128xf32>
    %172 = vector.broadcast %171 : vector<1x128xf32> to vector<8x128xf32>
    %c8 = arith.constant 8 : index
    %c0_55 = arith.constant 0 : index
    %c0_56 = arith.constant 0 : index
    %173 = vector.load %arg22[%c8, %c0_55, %c0_56] : memref<9x8x128xf32, #tpu.memory_space<vmem>>, vector<1x8x128xf32>
    %174 = vector.shape_cast %173 : vector<1x8x128xf32> to vector<8x128xf32>
    %175 = vector.shape_cast %172 : vector<8x128xf32> to vector<1x8x128xf32>
    tpu.vector_store %arg22[%c8, %c0_55, %c0_56], %175 {strides = array<i32>} : memref<9x8x128xf32, #tpu.memory_space<vmem>>, vector<1x8x128xf32>,
    %176 = vector.shape_cast %7 : vector<1x128xf32> to vector<1x128xf32>
    %177 = vector.broadcast %176 : vector<1x128xf32> to vector<8x128xf32>
    %c8_57 = arith.constant 8 : index
    %c0_58 = arith.constant 0 : index
    %c0_59 = arith.constant 0 : index
    %178 = vector.load %arg23[%c8_57, %c0_58, %c0_59] : memref<9x8x128xf32, #tpu.memory_space<vmem>>, vector<1x8x128xf32>
    %179 = vector.shape_cast %178 : vector<1x8x128xf32> to vector<8x128xf32>
    %180 = vector.shape_cast %177 : vector<8x128xf32> to vector<1x8x128xf32>
    tpu.vector_store %arg23[%c8_57, %c0_58, %c0_59], %180 {strides = array<i32>} : memref<9x8x128xf32, #tpu.memory_space<vmem>>, vector<1x8x128xf32>,
    %c0_i32 = arith.constant 0 : i32
    %c8_i32 = arith.constant 8 : i32
    %181 = arith.addi %c0_i32, %c8_i32 : i32
    %c1_i32 = arith.constant 1 : i32
    scf.for %arg28 = %c0_i32 to %181 step %c1_i32  : i32 {
      %c1_i32_91 = arith.constant 1 : i32
      %210 = arith.muli %arg28, %c1_i32_91 : i32
      %c0_i32_92 = arith.constant 0 : i32
      %211 = arith.addi %c0_i32_92, %210 : i32
      %c7_i32 = arith.constant 7 : i32
      %212 = arith.subi %c7_i32, %211 : i32
      %c1_i32_93 = arith.constant 1 : i32
      %213 = arith.addi %212, %c1_i32_93 : i32
      %214 = arith.index_cast %213 : i32 to index
      %c0_94 = arith.constant 0 : index
      %c0_95 = arith.constant 0 : index
      %215 = vector.load %arg22[%214, %c0_94, %c0_95] : memref<9x8x128xf32, #tpu.memory_space<vmem>>, vector<1x8x128xf32>
      %216 = vector.shape_cast %215 : vector<1x8x128xf32> to vector<8x128xf32>
      %c1_i32_96 = arith.constant 1 : i32
      %217 = arith.addi %212, %c1_i32_96 : i32
      %218 = arith.index_cast %217 : i32 to index
      %c0_97 = arith.constant 0 : index
      %c0_98 = arith.constant 0 : index
      %219 = vector.load %arg23[%218, %c0_97, %c0_98] : memref<9x8x128xf32, #tpu.memory_space<vmem>>, vector<1x8x128xf32>
      %220 = vector.shape_cast %219 : vector<1x8x128xf32> to vector<8x128xf32>
      %221 = arith.index_cast %212 : i32 to index
      %c0_99 = arith.constant 0 : index
      %c0_100 = arith.constant 0 : index
      %222 = vector.load %arg17[%221, %c0_99, %c0_100] : memref<8x8x128xf32, #tpu.memory_space<vmem>>, vector<1x8x128xf32>
      %223 = vector.shape_cast %222 : vector<1x8x128xf32> to vector<8x128xf32>
      %224 = arith.index_cast %212 : i32 to index
      %c0_101 = arith.constant 0 : index
      %c0_102 = arith.constant 0 : index
      %225 = vector.load %arg18[%224, %c0_101, %c0_102] : memref<8x8x128xf32, #tpu.memory_space<vmem>>, vector<1x8x128xf32>
      %226 = vector.shape_cast %225 : vector<1x8x128xf32> to vector<8x128xf32>
      %227 = arith.index_cast %212 : i32 to index
      %c0_103 = arith.constant 0 : index
      %c0_104 = arith.constant 0 : index
      %228 = vector.load %arg19[%227, %c0_103, %c0_104] : memref<8x8x128xf32, #tpu.memory_space<vmem>>, vector<1x8x128xf32>
      %229 = vector.shape_cast %228 : vector<1x8x128xf32> to vector<8x128xf32>
      %230 = arith.index_cast %212 : i32 to index
      %c0_105 = arith.constant 0 : index
      %c0_106 = arith.constant 0 : index
      %231 = vector.load %arg20[%230, %c0_105, %c0_106] : memref<8x8x128xf32, #tpu.memory_space<vmem>>, vector<1x8x128xf32>
      %232 = vector.shape_cast %231 : vector<1x8x128xf32> to vector<8x128xf32>
      %233 = arith.index_cast %212 : i32 to index
      %c0_107 = arith.constant 0 : index
      %c0_108 = arith.constant 0 : index
      %234 = vector.load %arg21[%233, %c0_107, %c0_108] : memref<8x8x128xf32, #tpu.memory_space<vmem>>, vector<1x8x128xf32>
      %235 = vector.shape_cast %234 : vector<1x8x128xf32> to vector<8x128xf32>
      %236 = arith.mulf %232, %220 : vector<8x128xf32>
      %cst_109 = arith.constant 1.000000e+00 : f32
      %237 = vector.broadcast %cst_109 : f32 to vector<8x128xf32>
      %238 = arith.subf %237, %236 : vector<8x128xf32>
      %cst_110 = arith.constant 1.000000e+00 : f32
      %239 = vector.broadcast %cst_110 : f32 to vector<8x128xf32>
      %240 = arith.divf %239, %238 : vector<8x128xf32>
      %241 = arith.mulf %223, %216 : vector<8x128xf32>
      %242 = arith.mulf %226, %220 : vector<8x128xf32>
      %243 = arith.addf %241, %242 : vector<8x128xf32>
      %244 = arith.mulf %243, %240 : vector<8x128xf32>
      %245 = arith.mulf %235, %244 : vector<8x128xf32>
      %246 = arith.addf %229, %245 : vector<8x128xf32>
      %247 = arith.index_cast %212 : i32 to index
      %c0_111 = arith.constant 0 : index
      %c0_112 = arith.constant 0 : index
      %248 = vector.load %arg22[%247, %c0_111, %c0_112] : memref<9x8x128xf32, #tpu.memory_space<vmem>>, vector<1x8x128xf32>
      %249 = vector.shape_cast %248 : vector<1x8x128xf32> to vector<8x128xf32>
      %250 = vector.shape_cast %246 : vector<8x128xf32> to vector<1x8x128xf32>
      tpu.vector_store %arg22[%247, %c0_111, %c0_112], %250 {strides = array<i32>} : memref<9x8x128xf32, #tpu.memory_space<vmem>>, vector<1x8x128xf32>,
      %251 = arith.mulf %235, %235 : vector<8x128xf32>
      %252 = arith.mulf %251, %220 : vector<8x128xf32>
      %253 = arith.mulf %252, %240 : vector<8x128xf32>
      %254 = arith.addf %232, %253 : vector<8x128xf32>
      %255 = arith.index_cast %212 : i32 to index
      %c0_113 = arith.constant 0 : index
      %c0_114 = arith.constant 0 : index
      %256 = vector.load %arg23[%255, %c0_113, %c0_114] : memref<9x8x128xf32, #tpu.memory_space<vmem>>, vector<1x8x128xf32>
      %257 = vector.shape_cast %256 : vector<1x8x128xf32> to vector<8x128xf32>
      %258 = vector.shape_cast %254 : vector<8x128xf32> to vector<1x8x128xf32>
      tpu.vector_store %arg23[%255, %c0_113, %c0_114], %258 {strides = array<i32>} : memref<9x8x128xf32, #tpu.memory_space<vmem>>, vector<1x8x128xf32>,
      %259 = arith.index_cast %212 : i32 to index
      %c0_115 = arith.constant 0 : index
      %c0_116 = arith.constant 0 : index
      %260 = vector.load %arg24[%259, %c0_115, %c0_116] : memref<8x8x128xf32, #tpu.memory_space<vmem>>, vector<1x8x128xf32>
      %261 = vector.shape_cast %260 : vector<1x8x128xf32> to vector<8x128xf32>
      %262 = vector.shape_cast %240 : vector<8x128xf32> to vector<1x8x128xf32>
      tpu.vector_store %arg24[%259, %c0_115, %c0_116], %262 {strides = array<i32>} : memref<8x8x128xf32, #tpu.memory_space<vmem>>, vector<1x8x128xf32>,
    }
    %c8_i32_60 = arith.constant 8 : i32
    %c0_61 = arith.constant 0 : index
    %c0_62 = arith.constant 0 : index
    %c0_63 = arith.constant 0 : index
    %182 = vector.load %arg22[%c0_61, %c0_62, %c0_63] : memref<9x8x128xf32, #tpu.memory_space<vmem>>, vector<1x8x128xf32>
    %183 = vector.shape_cast %182 : vector<1x8x128xf32> to vector<8x128xf32>
    %184 = vector.broadcast %9 : vector<8x1xf32> to vector<8x128xf32>
    %185 = arith.mulf %183, %184 : vector<8x128xf32>
    %cst_64 = arith.constant dense<0.000000e+00> : vector<128xf32>
    %186 = vector.multi_reduction <add>, %185, %cst_64 [0] : vector<8x128xf32> to vector<128xf32>
    %187 = vector.shape_cast %186 : vector<128xf32> to vector<1x128xf32>
    %c0_65 = arith.constant 0 : index
    %c0_66 = arith.constant 0 : index
    %188 = vector.load %arg14[%c0_65, %c0_66] : memref<1x128xf32, #tpu.memory_space<vmem>>, vector<1x128xf32>
    tpu.vector_store %arg14[%c0_65, %c0_66], %187 {strides = array<i32>} : memref<1x128xf32, #tpu.memory_space<vmem>>, vector<1x128xf32>,
    %cst_67 = arith.constant 1.361000e+03 : f32
    %189 = vector.broadcast %cst_67 : f32 to vector<1x128xf32>
    %190 = arith.mulf %5, %189 : vector<1x128xf32>
    %191 = vector.broadcast %9 : vector<8x1xf32> to vector<8x128xf32>
    %192 = vector.broadcast %190 : vector<1x128xf32> to vector<8x128xf32>
    %193 = arith.mulf %191, %192 : vector<8x128xf32>
    %cst_68 = arith.constant 0.000000e+00 : f32
    %194 = vector.broadcast %cst_68 : f32 to vector<8x128xf32>
    %c0_69 = arith.constant 0 : index
    %c0_70 = arith.constant 0 : index
    %c0_71 = arith.constant 0 : index
    %195 = vector.load %arg22[%c0_69, %c0_70, %c0_71] : memref<9x8x128xf32, #tpu.memory_space<vmem>>, vector<1x8x128xf32>
    %196 = vector.shape_cast %195 : vector<1x8x128xf32> to vector<8x128xf32>
    %197 = arith.mulf %193, %196 : vector<8x128xf32>
    %c0_72 = arith.constant 0 : index
    %c0_73 = arith.constant 0 : index
    %198 = vector.load %arg25[%c0_72, %c0_73] : memref<8x128xf32, #tpu.memory_space<vmem>>, vector<8x128xf32>
    tpu.vector_store %arg25[%c0_72, %c0_73], %193 {strides = array<i32>} : memref<8x128xf32, #tpu.memory_space<vmem>>, vector<8x128xf32>,
    %c0_74 = arith.constant 0 : index
    %c0_75 = arith.constant 0 : index
    %199 = vector.load %arg26[%c0_74, %c0_75] : memref<8x128xf32, #tpu.memory_space<vmem>>, vector<8x128xf32>
    tpu.vector_store %arg26[%c0_74, %c0_75], %194 {strides = array<i32>} : memref<8x128xf32, #tpu.memory_space<vmem>>, vector<8x128xf32>,
    %c0_76 = arith.constant 0 : index
    %c0_77 = arith.constant 0 : index
    %200 = vector.load %arg27[%c0_76, %c0_77] : memref<8x128xf32, #tpu.memory_space<vmem>>, vector<8x128xf32>
    tpu.vector_store %arg27[%c0_76, %c0_77], %197 {strides = array<i32>} : memref<8x128xf32, #tpu.memory_space<vmem>>, vector<8x128xf32>,
    %cst_78 = arith.constant dense<0.000000e+00> : vector<128xf32>
    %201 = vector.multi_reduction <add>, %193, %cst_78 [0] : vector<8x128xf32> to vector<128xf32>
    %202 = vector.shape_cast %201 : vector<128xf32> to vector<1x128xf32>
    %c0_79 = arith.constant 0 : index
    %c0_80 = arith.constant 0 : index
    %203 = vector.load %arg8[%c0_79, %c0_80] : memref<9x128xf32, #tpu.memory_space<vmem>>, vector<1x128xf32>
    tpu.vector_store %arg8[%c0_79, %c0_80], %202 {strides = array<i32>} : memref<9x128xf32, #tpu.memory_space<vmem>>, vector<1x128xf32>,
    %cst_81 = arith.constant 0.000000e+00 : f32
    %204 = vector.broadcast %cst_81 : f32 to vector<1x128xf32>
    %c0_82 = arith.constant 0 : index
    %c0_83 = arith.constant 0 : index
    %205 = vector.load %arg9[%c0_82, %c0_83] : memref<9x128xf32, #tpu.memory_space<vmem>>, vector<1x128xf32>
    tpu.vector_store %arg9[%c0_82, %c0_83], %204 {strides = array<i32>} : memref<9x128xf32, #tpu.memory_space<vmem>>, vector<1x128xf32>,
    %cst_84 = arith.constant dense<0.000000e+00> : vector<128xf32>
    %206 = vector.multi_reduction <add>, %197, %cst_84 [0] : vector<8x128xf32> to vector<128xf32>
    %207 = vector.shape_cast %206 : vector<128xf32> to vector<1x128xf32>
    %c0_85 = arith.constant 0 : index
    %c0_86 = arith.constant 0 : index
    %208 = vector.load %arg10[%c0_85, %c0_86] : memref<9x128xf32, #tpu.memory_space<vmem>>, vector<1x128xf32>
    tpu.vector_store %arg10[%c0_85, %c0_86], %207 {strides = array<i32>} : memref<9x128xf32, #tpu.memory_space<vmem>>, vector<1x128xf32>,
    %c0_i32_87 = arith.constant 0 : i32
    %c8_i32_88 = arith.constant 8 : i32
    %209 = arith.addi %c0_i32_87, %c8_i32_88 : i32
    %c1_i32_89 = arith.constant 1 : i32
    scf.for %arg28 = %c0_i32_87 to %209 step %c1_i32_89  : i32 {
      %c1_i32_91 = arith.constant 1 : i32
      %210 = arith.muli %arg28, %c1_i32_91 : i32
      %c0_i32_92 = arith.constant 0 : i32
      %211 = arith.addi %c0_i32_92, %210 : i32
      %c0_93 = arith.constant 0 : index
      %c0_94 = arith.constant 0 : index
      %212 = vector.load %arg25[%c0_93, %c0_94] : memref<8x128xf32, #tpu.memory_space<vmem>>, vector<8x128xf32>
      %c0_95 = arith.constant 0 : index
      %c0_96 = arith.constant 0 : index
      %213 = vector.load %arg26[%c0_95, %c0_96] : memref<8x128xf32, #tpu.memory_space<vmem>>, vector<8x128xf32>
      %c0_97 = arith.constant 0 : index
      %c0_98 = arith.constant 0 : index
      %214 = vector.load %arg27[%c0_97, %c0_98] : memref<8x128xf32, #tpu.memory_space<vmem>>, vector<8x128xf32>
      %215 = arith.index_cast %211 : i32 to index
      %c0_99 = arith.constant 0 : index
      %c0_100 = arith.constant 0 : index
      %216 = vector.load %arg17[%215, %c0_99, %c0_100] : memref<8x8x128xf32, #tpu.memory_space<vmem>>, vector<1x8x128xf32>
      %217 = vector.shape_cast %216 : vector<1x8x128xf32> to vector<8x128xf32>
      %218 = arith.index_cast %211 : i32 to index
      %c0_101 = arith.constant 0 : index
      %c0_102 = arith.constant 0 : index
      %219 = vector.load %arg18[%218, %c0_101, %c0_102] : memref<8x8x128xf32, #tpu.memory_space<vmem>>, vector<1x8x128xf32>
      %220 = vector.shape_cast %219 : vector<1x8x128xf32> to vector<8x128xf32>
      %221 = arith.index_cast %211 : i32 to index
      %c0_103 = arith.constant 0 : index
      %c0_104 = arith.constant 0 : index
      %222 = vector.load %arg20[%221, %c0_103, %c0_104] : memref<8x8x128xf32, #tpu.memory_space<vmem>>, vector<1x8x128xf32>
      %223 = vector.shape_cast %222 : vector<1x8x128xf32> to vector<8x128xf32>
      %224 = arith.index_cast %211 : i32 to index
      %c0_105 = arith.constant 0 : index
      %c0_106 = arith.constant 0 : index
      %225 = vector.load %arg21[%224, %c0_105, %c0_106] : memref<8x8x128xf32, #tpu.memory_space<vmem>>, vector<1x8x128xf32>
      %226 = vector.shape_cast %225 : vector<1x8x128xf32> to vector<8x128xf32>
      %c1_i32_107 = arith.constant 1 : i32
      %227 = arith.addi %211, %c1_i32_107 : i32
      %228 = arith.index_cast %227 : i32 to index
      %c0_108 = arith.constant 0 : index
      %c0_109 = arith.constant 0 : index
      %229 = vector.load %arg22[%228, %c0_108, %c0_109] : memref<9x8x128xf32, #tpu.memory_space<vmem>>, vector<1x8x128xf32>
      %230 = vector.shape_cast %229 : vector<1x8x128xf32> to vector<8x128xf32>
      %c1_i32_110 = arith.constant 1 : i32
      %231 = arith.addi %211, %c1_i32_110 : i32
      %232 = arith.index_cast %231 : i32 to index
      %c0_111 = arith.constant 0 : index
      %c0_112 = arith.constant 0 : index
      %233 = vector.load %arg23[%232, %c0_111, %c0_112] : memref<9x8x128xf32, #tpu.memory_space<vmem>>, vector<1x8x128xf32>
      %234 = vector.shape_cast %233 : vector<1x8x128xf32> to vector<8x128xf32>
      %235 = arith.index_cast %211 : i32 to index
      %c0_113 = arith.constant 0 : index
      %c0_114 = arith.constant 0 : index
      %236 = vector.load %arg24[%235, %c0_113, %c0_114] : memref<8x8x128xf32, #tpu.memory_space<vmem>>, vector<1x8x128xf32>
      %237 = vector.shape_cast %236 : vector<1x8x128xf32> to vector<8x128xf32>
      %238 = arith.mulf %217, %212 : vector<8x128xf32>
      %239 = arith.mulf %220, %212 : vector<8x128xf32>
      %240 = arith.mulf %226, %213 : vector<8x128xf32>
      %241 = arith.addf %239, %240 : vector<8x128xf32>
      %242 = arith.mulf %223, %230 : vector<8x128xf32>
      %243 = arith.mulf %242, %238 : vector<8x128xf32>
      %244 = arith.addf %241, %243 : vector<8x128xf32>
      %245 = arith.mulf %244, %237 : vector<8x128xf32>
      %246 = arith.mulf %238, %230 : vector<8x128xf32>
      %247 = arith.mulf %245, %234 : vector<8x128xf32>
      %248 = arith.addf %246, %247 : vector<8x128xf32>
      %249 = arith.addf %212, %213 : vector<8x128xf32>
      %250 = arith.addf %249, %248 : vector<8x128xf32>
      %251 = arith.subf %250, %238 : vector<8x128xf32>
      %252 = arith.subf %251, %245 : vector<8x128xf32>
      %253 = arith.subf %252, %214 : vector<8x128xf32>
      %cst_115 = arith.constant dense<0.000000e+00> : vector<128xf32>
      %254 = vector.multi_reduction <add>, %238, %cst_115 [0] : vector<8x128xf32> to vector<128xf32>
      %255 = vector.shape_cast %254 : vector<128xf32> to vector<1x128xf32>
      %c1_i32_116 = arith.constant 1 : i32
      %256 = arith.addi %211, %c1_i32_116 : i32
      %257 = arith.index_cast %256 : i32 to index
      %c0_117 = arith.constant 0 : index
      %258 = vector.load %arg8[%257, %c0_117] : memref<9x128xf32, #tpu.memory_space<vmem>>, vector<1x128xf32>
      tpu.vector_store %arg8[%257, %c0_117], %255 {strides = array<i32>} : memref<9x128xf32, #tpu.memory_space<vmem>>, vector<1x128xf32>,
      %cst_118 = arith.constant dense<0.000000e+00> : vector<128xf32>
      %259 = vector.multi_reduction <add>, %245, %cst_118 [0] : vector<8x128xf32> to vector<128xf32>
      %260 = vector.shape_cast %259 : vector<128xf32> to vector<1x128xf32>
      %c1_i32_119 = arith.constant 1 : i32
      %261 = arith.addi %211, %c1_i32_119 : i32
      %262 = arith.index_cast %261 : i32 to index
      %c0_120 = arith.constant 0 : index
      %263 = vector.load %arg9[%262, %c0_120] : memref<9x128xf32, #tpu.memory_space<vmem>>, vector<1x128xf32>
      tpu.vector_store %arg9[%262, %c0_120], %260 {strides = array<i32>} : memref<9x128xf32, #tpu.memory_space<vmem>>, vector<1x128xf32>,
      %cst_121 = arith.constant dense<0.000000e+00> : vector<128xf32>
      %264 = vector.multi_reduction <add>, %248, %cst_121 [0] : vector<8x128xf32> to vector<128xf32>
      %265 = vector.shape_cast %264 : vector<128xf32> to vector<1x128xf32>
      %c1_i32_122 = arith.constant 1 : i32
      %266 = arith.addi %211, %c1_i32_122 : i32
      %267 = arith.index_cast %266 : i32 to index
      %c0_123 = arith.constant 0 : index
      %268 = vector.load %arg10[%267, %c0_123] : memref<9x128xf32, #tpu.memory_space<vmem>>, vector<1x128xf32>
      tpu.vector_store %arg10[%267, %c0_123], %265 {strides = array<i32>} : memref<9x128xf32, #tpu.memory_space<vmem>>, vector<1x128xf32>,
      %cst_124 = arith.constant dense<0.000000e+00> : vector<128xf32>
      %269 = vector.multi_reduction <add>, %253, %cst_124 [0] : vector<8x128xf32> to vector<128xf32>
      %270 = vector.shape_cast %269 : vector<128xf32> to vector<1x128xf32>
      %271 = arith.index_cast %211 : i32 to index
      %c0_125 = arith.constant 0 : index
      %272 = vector.load %arg11[%271, %c0_125] : memref<8x128xf32, #tpu.memory_space<vmem>>, vector<1x128xf32>
      tpu.vector_store %arg11[%271, %c0_125], %270 {strides = array<i32>} : memref<8x128xf32, #tpu.memory_space<vmem>>, vector<1x128xf32>,
      %c0_126 = arith.constant 0 : index
      %c0_127 = arith.constant 0 : index
      %273 = vector.load %arg25[%c0_126, %c0_127] : memref<8x128xf32, #tpu.memory_space<vmem>>, vector<8x128xf32>
      tpu.vector_store %arg25[%c0_126, %c0_127], %238 {strides = array<i32>} : memref<8x128xf32, #tpu.memory_space<vmem>>, vector<8x128xf32>,
      %c0_128 = arith.constant 0 : index
      %c0_129 = arith.constant 0 : index
      %274 = vector.load %arg26[%c0_128, %c0_129] : memref<8x128xf32, #tpu.memory_space<vmem>>, vector<8x128xf32>
      tpu.vector_store %arg26[%c0_128, %c0_129], %245 {strides = array<i32>} : memref<8x128xf32, #tpu.memory_space<vmem>>, vector<8x128xf32>,
      %c0_130 = arith.constant 0 : index
      %c0_131 = arith.constant 0 : index
      %275 = vector.load %arg27[%c0_130, %c0_131] : memref<8x128xf32, #tpu.memory_space<vmem>>, vector<8x128xf32>
      tpu.vector_store %arg27[%c0_130, %c0_131], %248 {strides = array<i32>} : memref<8x128xf32, #tpu.memory_space<vmem>>, vector<8x128xf32>,
    }
    %c8_i32_90 = arith.constant 8 : i32
    return
  }
  func.func @transform_0(%arg0: i32) -> (i32, i32) {
    %c0_i32 = arith.constant 0 : i32
    %c0_i32_0 = arith.constant 0 : i32
    %c0_i32_1 = arith.constant 0 : i32
    return %c0_i32, %c0_i32_0 : i32, i32
  }
  func.func @transform_1(%arg0: i32) -> (i32, i32) {
    %c0_i32 = arith.constant 0 : i32
    %c0_i32_0 = arith.constant 0 : i32
    %c0_i32_1 = arith.constant 0 : i32
    return %c0_i32, %c0_i32_0 : i32, i32
  }
  func.func @transform_2(%arg0: i32) -> (i32, i32, i32, i32) {
    %c0_i32 = arith.constant 0 : i32
    %c0_i32_0 = arith.constant 0 : i32
    %c0_i32_1 = arith.constant 0 : i32
    %c0_i32_2 = arith.constant 0 : i32
    %c0_i32_3 = arith.constant 0 : i32
    return %c0_i32, %c0_i32_0, %c0_i32_1, %c0_i32_2 : i32, i32, i32, i32
  }
  func.func @transform_3(%arg0: i32) -> (i32, i32, i32, i32) {
    %c0_i32 = arith.constant 0 : i32
    %c0_i32_0 = arith.constant 0 : i32
    %c0_i32_1 = arith.constant 0 : i32
    %c0_i32_2 = arith.constant 0 : i32
    %c0_i32_3 = arith.constant 0 : i32
    return %c0_i32, %c0_i32_0, %c0_i32_1, %c0_i32_2 : i32, i32, i32, i32
  }
  func.func @transform_4(%arg0: i32) -> (i32, i32, i32, i32) {
    %c0_i32 = arith.constant 0 : i32
    %c0_i32_0 = arith.constant 0 : i32
    %c0_i32_1 = arith.constant 0 : i32
    %c0_i32_2 = arith.constant 0 : i32
    %c0_i32_3 = arith.constant 0 : i32
    return %c0_i32, %c0_i32_0, %c0_i32_1, %c0_i32_2 : i32, i32, i32, i32
  }
  func.func @transform_5(%arg0: i32) -> (i32, i32, i32) {
    %c0_i32 = arith.constant 0 : i32
    %c0_i32_0 = arith.constant 0 : i32
    %c0_i32_1 = arith.constant 0 : i32
    return %c0_i32, %c0_i32_0, %arg0 : i32, i32, i32
  }
  func.func @transform_6(%arg0: i32) -> (i32, i32) {
    %c0_i32 = arith.constant 0 : i32
    %c0_i32_0 = arith.constant 0 : i32
    return %c0_i32, %arg0 : i32, i32
  }
  func.func @transform_7(%arg0: i32) -> (i32, i32) {
    %c0_i32 = arith.constant 0 : i32
    %c0_i32_0 = arith.constant 0 : i32
    return %c0_i32, %arg0 : i32, i32
  }
  func.func @transform_8(%arg0: i32) -> (i32, i32) {
    %c0_i32 = arith.constant 0 : i32
    %c0_i32_0 = arith.constant 0 : i32
    return %c0_i32, %arg0 : i32, i32
  }
  func.func @transform_9(%arg0: i32) -> (i32, i32) {
    %c0_i32 = arith.constant 0 : i32
    %c0_i32_0 = arith.constant 0 : i32
    return %c0_i32, %arg0 : i32, i32
  }
  func.func @transform_10(%arg0: i32) -> (i32, i32) {
    %c0_i32 = arith.constant 0 : i32
    %c0_i32_0 = arith.constant 0 : i32
    return %c0_i32, %arg0 : i32, i32
  }
  func.func @transform_11(%arg0: i32) -> (i32, i32) {
    %c0_i32 = arith.constant 0 : i32
    %c0_i32_0 = arith.constant 0 : i32
    return %c0_i32, %arg0 : i32, i32
  }
  func.func @transform_12(%arg0: i32) -> (i32, i32) {
    %c0_i32 = arith.constant 0 : i32
    %c0_i32_0 = arith.constant 0 : i32
    return %c0_i32, %arg0 : i32, i32
  }
  func.func @transform_13(%arg0: i32) -> (i32, i32) {
    %c0_i32 = arith.constant 0 : i32
    %c0_i32_0 = arith.constant 0 : i32
    return %c0_i32, %arg0 : i32, i32
  }
  func.func @transform_14(%arg0: i32) -> (i32, i32) {
    %c0_i32 = arith.constant 0 : i32
    %c0_i32_0 = arith.constant 0 : i32
    return %c0_i32, %arg0 : i32, i32
  }
  func.func @transform_15(%arg0: i32) -> (i32, i32) {
    %c0_i32 = arith.constant 0 : i32
    %c0_i32_0 = arith.constant 0 : i32
    return %c0_i32, %arg0 : i32, i32
  }
}

</mosaic_0001>

<bundles_post_ra>
// kernel: tpu_custom_call.1
= control target key start
LH: loop header
LB: loop body
LE: loop exit
PB: predicated region body
PF: predicated region fallthrough
CT: control target
= control target key end

     0   :  { %s6258_s0 = inlined_call_operand.<no memory space> [shape: f32[1,1], index: 0, kind: input, shape index: {}]   ;;  %s6259_s1 = inlined_call_operand.vmem [shape: f32[8,1], index: 1, kind: input, shape index: {}]   ;;  %s6260_s2 = inlined_call_operand.vmem [shape: f32[3,8,8,1], index: 2, kind: input, shape index: {}]   ;;  %s6261_s3 = inlined_call_operand.vmem [shape: f32[3,3,8,1], index: 3, kind: input, shape index: {}]   ;;  %s6262_s4 = inlined_call_operand.vmem [shape: f32[3,3,8,1], index: 4, kind: input, shape index: {}]   ;;  %s6263_s5 = inlined_call_operand.vmem [shape: f32[8,10,128], index: 5, kind: input, shape index: {}]   ;;  %s6264_s6 = inlined_call_operand.vmem [shape: f32[4,128], index: 6, kind: input, shape index: {}]   ;;  %s6265_s7 = inlined_call_operand.hbm [shape: f32[9,128], index: 7, kind: output, shape index: {0}]   ;;  %s6266_s8 = inlined_call_operand.hbm [shape: f32[9,128], index: 8, kind: output, shape index: {1}]   ;;  %s6267_s9 = inlined_call_operand.hbm [shape: f32[9,128], index: 9, kind: output, shape index: {2}]   ;;  %s6268_s10 = inlined_call_operand.hbm [shape: f32[8,128], index: 10, kind: output, shape index: {3}]   ;;  %s6269_s11 = inlined_call_operand.hbm [shape: f32[8,128], index: 11, kind: output, shape index: {4}]   ;;  %s6270_s12 = inlined_call_operand.hbm [shape: f32[8,128], index: 12, kind: output, shape index: {5}]   ;;  %s6271_s13 = inlined_call_operand.hbm [shape: f32[1,128], index: 13, kind: output, shape index: {6}]   ;;  %s6272_s14 = inlined_call_operand.hbm [shape: f32[8,128], index: 14, kind: output, shape index: {7}]   ;;  %s6273_s15 = inlined_call_operand.hbm [shape: f32[8,128], index: 15, kind: output, shape index: {8}]  }
   0x1   :  { %v21_v0 = vstv %s6258_s0 }
   0x2   :  { %22 = vst [vmem:[#allocation13] sm:$0x1] %v21_v0 }
   0x3   :  { %23 = vsyncpa [#allocation15], 0 }
   0x4   :  { %24 = vsyncpa [#allocation17], 0 }
   0x5   :  { %25 = vsyncpa [#allocation20], 0 }
   0x6   :  { %26 = vsyncpa [#allocation23], 0  ;;  %v69_v1 = vld [vmem:[%s6260_s2 + $0x40] sm:$0xff]  ;;  %v3614_v3 = vmov 0   ;;  %v70_v4 = vld [vmem:[%s6260_s2 + $0x48] sm:$0xff] }
   0x7   :  { %v61_v2 = vld [vmem:[%s6260_s2] sm:$0xff]  ;;  %3104 = vset.pattern.permute.xlu1 %v3614_v3  ;;  %3103 = vset.pattern.permute.xlu0 %v3614_v3  ;;  %v62_v5 = vld [vmem:[%s6260_s2 + $0x8] sm:$0xff]  ;;  %v71_v6 = vld [vmem:[%s6260_s2 + $0x50] sm:$0xff] }
   0x8   :  { %273 = vperm.xlu1 %3104, %v69_v1   ;;  %137 = vperm.xlu0 %3103, %v61_v2   ;;  %v63_v7 = vld [vmem:[%s6260_s2 + $0x10] sm:$0xff]  ;;  %v72_v8 = vld [vmem:[%s6260_s2 + $0x58] sm:$0xff]  ;;  %v78_v10 = vld [vmem:[%s6260_s2 + $0x88] sm:$0xff] }
   0x9   :  { %v64_v9 = vld [vmem:[%s6260_s2 + $0x18] sm:$0xff]  ;;  %v77_v11 = vld [vmem:[%s6260_s2 + $0x80] sm:$0xff] }
   0xc   :  { %278 = vperm.xlu1 %3104, %v70_v4   ;;  %142 = vperm.xlu0 %3103, %v62_v5  }
  0x10   :  { %283 = vperm.xlu1 %3104, %v71_v6   ;;  %147 = vperm.xlu0 %3103, %v63_v7  }
  0x14   :  { %288 = vperm.xlu1 %3104, %v72_v8   ;;  %152 = vperm.xlu0 %3103, %v64_v9  }
  0x15   :  { %27 = vsyncpa [#allocation26], 0  ;;  %v73_v12 = vld [vmem:[%s6260_s2 + $0x60] sm:$0xff]  ;;  %v66_v14 = vld [vmem:[%s6260_s2 + $0x28] sm:$0xff]  ;;  %v103_v26 = vlaneseq  ;;  %v3615_v50 = vmov 1966171168  }
  0x16   :  { %v65_v13 = vld [vmem:[%s6260_s2 + $0x20] sm:$0xff]  ;;  %v79_v15 = vld [vmem:[%s6260_s2 + $0x90] sm:$0xff]  ;;  %v80_v16 = vld [vmem:[%s6260_s2 + $0x98] sm:$0xff]  ;;  %v689_v51 = vunpack.c.l.s4 %v3615_v50  ;;  %vm2415_vm0 = vcmask 1041409   ;;  %vm2417_vm1 = vcmask 1042434   ;;  %vm2419_vm2 = vcmask 1043459  }
  0x17   :  { %v74_v17 = vld [vmem:[%s6260_s2 + $0x68] sm:$0xff]  ;;  %v75_v18 = vld [vmem:[%s6260_s2 + $0x70] sm:$0xff]  ;;  %v68_v20 = vld [vmem:[%s6260_s2 + $0x38] sm:$0xff]  ;;  %v3789_v29 = vshrl.u32 %v103_v26, 7  ;;  %vm2421_vm3 = vcmask 1044484   ;;  %vm2423_vm4 = vcmask 1045509  }
  0x18   :  { %446 = vperm.xlu1 %3104, %v78_v10   ;;  %441 = vperm.xlu0 %3103, %v77_v11   ;;  %v67_v19 = vld [vmem:[%s6260_s2 + $0x30] sm:$0xff]  ;;  %v81_v21 = vld [vmem:[%s6260_s2 + $0xa0] sm:$0xff]  ;;  %v82_v22 = vld [vmem:[%s6260_s2 + $0xa8] sm:$0xff]  ;;  %v690_v55 = vunpack.c.0.s8 %v689_v51  ;;  %vm2425_vm5 = vcmask 1046534   ;;  %vm2427_vm6 = vcmask 1047559  }
  0x19   :  { %v76_v23 = vld [vmem:[%s6260_s2 + $0x78] sm:$0xff]  ;;  %v83_v25 = vld [vmem:[%s6260_s2 + $0xb0] sm:$0xff]  ;;  %v86_v27 = vld [vmem:[%s6261_s3 + $0x8] sm:$0xff]  ;;  %6341 = vst [vmem:[#allocation33_spill] sm:$0xff] %v3789_v29  ;;  %v3798_v32 = vsub.s32 0, %v3789_v29 }
  0x1a   :  { %v84_v24 = vld [vmem:[%s6260_s2 + $0xb8] sm:$0xff]  ;;  %v85_v28 = vld [vmem:[%s6261_s3] sm:$0xff]  ;;  %v95_v33 = vld [vmem:[%s6262_s4 + $0x8] sm:$0xff]  ;;  %v3848_v58 = vsub.s32 %v690_v55, %v3789_v29 }
  0x1b   :  { %v89_v30 = vld [vmem:[%s6261_s3 + $0x20] sm:$0xff]  ;;  %v88_v31 = vld [vmem:[%s6261_s3 + $0x18] sm:$0xff]  ;;  %6342 = vst [vmem:[#allocation34_spill] sm:$0xff] %v3798_v32  ;;  %v59_v35 = vld [vmem:[#allocation13] sm:$0x1] }
  0x1c   :  { %293 = vperm.xlu1 %3104, %v73_v12   ;;  %157 = vperm.xlu0 %3103, %v65_v13   ;;  %v94_v34 = vld [vmem:[%s6262_s4] sm:$0xff]  ;;  %v2063_v36 = vrot.slane %v59_v35, %v3798_v32  ;;  %v90_v37 = vld [vmem:[%s6261_s3 + $0x28] sm:$0xff]  ;;  %v87_v38 = vld [vmem:[%s6261_s3 + $0x10] sm:$0xff]  ;;  %3113 = vrcp.f32 %v59_v35 }
  0x1d   :  { %v97_v39 = vld [vmem:[%s6262_s4 + $0x18] sm:$0xff]  ;;  %v96_v41 = vld [vmem:[%s6262_s4 + $0x10] sm:$0xff]  ;;  %v98_v42 = vld [vmem:[%s6262_s4 + $0x20] sm:$0xff] }
  0x1e   :  { %v2065_v40 = vmul.f32 %v2063_v36, %v97_v39  ;;  %v2066_v43 = vmul.f32 %v2063_v36, %v98_v42  ;;  %v91_v44 = vld [vmem:[%s6261_s3 + $0x30] sm:$0xff]  ;;  %v99_v45 = vld [vmem:[%s6262_s4 + $0x28] sm:$0xff]  ;;  %v92_v47 = vld [vmem:[%s6261_s3 + $0x38] sm:$0xff] }
  0x1f   :  { %v2067_v46 = vmul.f32 %v2063_v36, %v99_v45  ;;  %v100_v48 = vld [vmem:[%s6262_s4 + $0x30] sm:$0xff]  ;;  %v101_v49 = vld [vmem:[%s6262_s4 + $0x38] sm:$0xff]  ;;  %v93_v53 = vld [vmem:[%s6261_s3 + $0x40] sm:$0xff] }
  0x20   :  { %162 = vperm.xlu1 %3104, %v66_v14   ;;  %451 = vperm.xlu0 %3103, %v79_v15   ;;  %v102_v54 = vld [vmem:[%s6262_s4 + $0x40] sm:$0xff]  ;;  %v3858_v60 = vld [vmem:[%s6263_s5 + $0x10] sm:$0xff] }
  0x21   :  { %v60_v57 = vld [vmem:[%s6259_s1] sm:$0xff]  ;;  %v3868_v62 = vld [vmem:[%s6263_s5 + $0x30] sm:$0xff]  ;;  %v765_v4 = vrot.slane %v3858_v60, %v3848_v58 }
  0x22   :  { %v3853_v59 = vld [vmem:[%s6263_s5] sm:$0xff]  ;;  %v3880_v1 = vld [vmem:[%s6263_s5 + $0x50] sm:$0xff]  ;;  %v907_v6 = vrot.slane %v3868_v62, %v3848_v58 }
  0x23   :  { %v3863_v61 = vld [vmem:[%s6263_s5 + $0x20] sm:$0xff]  ;;  %v694_v0 = vrot.slane %v3853_v59, %v3848_v58  ;;  %v3890_v3 = vld [vmem:[%s6263_s5 + $0x70] sm:$0xff]  ;;  %v1049_v8 = vrot.slane %v3880_v1, %v3848_v58  ;;  %v773_v12 = vcombine.high %v765_v4, %v765_v4  ;;  %v3971_v51 = vrot.slane %v3880_v1, %v3798_v32 }
  0x24   :  { %456 = vperm.xlu1 %3104, %v80_v16   ;;  %298 = vperm.xlu0 %3103, %v74_v17   ;;  %v3873_v63 = vld [vmem:[%s6263_s5 + $0x40] sm:$0xff]  ;;  %v836_v5 = vrot.slane %v3863_v61, %v3848_v58  ;;  %v1191_v10 = vrot.slane %v3890_v3, %v3848_v58  ;;  %v915_v14 = vcombine.high %v907_v6, %v907_v6  ;;  %v3907_v16 = vsub.s32 1, %v3789_v29  ;;  %v4154_v29 = vld.sshfl [vmem:[%s6263_s5 + $0x8] sm:$0x11 pattern:$0x75316420] }
  0x25   :  { %v3885_v2 = vld [vmem:[%s6263_s5 + $0x60] sm:$0xff]  ;;  %v978_v7 = vrot.slane %v3873_v63, %v3848_v58  ;;  %v702_v11 = vcombine.high %v694_v0, %v694_v0  ;;  %v1057_v17 = vcombine.high %v1049_v8, %v1049_v8  ;;  %v3967_v50 = vrot.slane %v3873_v63, %v3798_v32  ;;  %6347 = vst [vmem:[#allocation39_spill] sm:$0xff] %v3971_v51 }
  0x26   :  { %v1120_v9 = vrot.slane %v3885_v2, %v3848_v58  ;;  %v844_v13 = vcombine.high %v836_v5, %v836_v5  ;;  %6343 = vst [vmem:[#allocation35_spill] sm:$0xff] %v3907_v16  ;;  %v3939_v35 = vrot.slane %v3873_v63, %v3907_v16  ;;  %v3943_v36 = vrot.slane %v3880_v1, %v3907_v16 }
  0x27   :  { %v986_v15 = vcombine.high %v978_v7, %v978_v7  ;;  %v1079_v26 = vrot.slane %v1057_v17, %v3848_v58  ;;  %6346 = vst [vmem:[#allocation38_spill] sm:$0xff] %v3967_v50  ;;  %v781_v17 = vrot.slane %v765_v4, %v3848_v58  ;;  %v829_v4 = vcombine.high %v3863_v61, %v3863_v61 }
  0x28   :  { %303 = vperm.xlu1 %3104, %v75_v18   ;;  %167 = vperm.xlu0 %3103, %v67_v19   ;;  %v1128_v18 = vcombine.high %v1120_v9, %v1120_v9  ;;  %v1199_v19 = vcombine.high %v1191_v10, %v1191_v10 }
  0x29   :  { %v3114_v52 = vpop.eup %3113 }
  0x2a   :  { %v1739_v56 = vrot.slane %v3114_v52, %v3798_v32  ;;  %v3975_v52 = vrot.slane %v3885_v2, %v3798_v32 }
  0x2c   :  { %172 = vperm.xlu1 %3104, %v68_v20   ;;  %461 = vperm.xlu0 %3103, %v81_v21   ;;  %v724_v20 = vrot.slane %v702_v11, %v3848_v58  ;;  %v795_v21 = vrot.slane %v773_v12, %v3848_v58  ;;  %6348 = vst [vmem:[#allocation40_spill] sm:$0xff] %v3975_v52 }
  0x2e   :  { %v805_v39 = vcombine.high %v795_v21, %v795_v21  ;;  %v1065_v21 = vrot.slane %v1049_v8, %v3848_v58  ;;  %v1042_v8 = vcombine.high %v3880_v1, %v3880_v1 }
  0x30   :  { %466 = vperm.xlu1 %3104, %v82_v22   ;;  %308 = vperm.xlu0 %3103, %v76_v23   ;;  %v866_v22 = vrot.slane %v844_v13, %v3848_v58  ;;  %v937_v23 = vrot.slane %v915_v14, %v3848_v58  ;;  %v3985_v55 = vrot.slane %v805_v39, %v3798_v32 }
  0x31   :  { %v843_v39 = vrot.slane %v829_v4, %v3848_v58 }
  0x32   :  { %6350 = vst [vmem:[#allocation42_spill] sm:$0xff] %v3985_v55 }
  0x34   :  { %476 = vperm.xlu1 %3104, %v84_v24   ;;  %471 = vperm.xlu0 %3103, %v83_v25   ;;  %v1008_v24 = vrot.slane %v986_v15, %v3848_v58  ;;  %v3916_v25 = vrot.slane %v3853_v59, %v3907_v16  ;;  %v710_v15 = vrot.slane %v694_v0, %v3848_v58 }
  0x35   :  { %v758_v0 = vcombine.high %v3858_v60, %v3858_v60 }
  0x36   :  { %v1018_v42 = vcombine.high %v1008_v24, %v1008_v24  ;;  %v687_v24 = vcombine.high %v3853_v59, %v3853_v59 }
  0x38   :  { %1775 = vperm.xlu1 %3104, %v86_v27   ;;  %1770 = vperm.xlu0 %3103, %v85_v28   ;;  %v1150_v27 = vrot.slane %v1128_v18, %v3848_v58  ;;  %v1221_v28 = vrot.slane %v1199_v19, %v3848_v58  ;;  %v3994_v11 = vrot.slane %v1018_v42, %v3798_v32 }
  0x39   :  { %v852_v18 = vrot.slane %v836_v5, %v3848_v58  ;;  %v923_v19 = vrot.slane %v907_v6, %v3848_v58  ;;  %v900_v5 = vcombine.high %v3868_v62, %v3868_v62  ;;  %v971_v6 = vcombine.high %v3873_v63, %v3873_v63 }
  0x3a   :  { %v1160_v45 = vcombine.high %v1150_v27, %v1150_v27  ;;  %6353 = vst [vmem:[#allocation45_spill] sm:$0xff] %v3994_v11  ;;  %v1087_v27 = vcombine.high %v1065_v21, %v1065_v21  ;;  %v772_v63 = vrot.slane %v758_v0, %v3848_v58 }
  0x3b   :  { %v914_v1 = vrot.slane %v900_v5, %v3848_v58 }
  0x3c   :  { %1818 = vperm.xlu1 %3104, %v89_v30   ;;  %1813 = vperm.xlu0 %3103, %v88_v31   ;;  %v3923_v30 = vrot.slane %v3858_v60, %v3907_v16  ;;  %v3927_v31 = vrot.slane %v3863_v61, %v3907_v16  ;;  %v4000_v13 = vrot.slane %v1160_v45, %v3798_v32 }
  0x3d   :  { %v4065_v21 = vrot.slane %v772_v63, %v3848_v58 }
  0x3e   :  { %6355 = vst [vmem:[#allocation47_spill] sm:$0xff] %v4000_v13 }
  0x3f   :  { %6366 = vst [vmem:[#allocation58_spill] sm:$0xff] %v4065_v21 }
  0x40   :  { %2027 = vperm.xlu1 %3104, %v95_v33   ;;  %2022 = vperm.xlu0 %3103, %v94_v34   ;;  %v3931_v33 = vrot.slane %v3868_v62, %v3907_v16  ;;  %v3935_v34 = vrot.slane %v3853_v59, %v3798_v32  ;;  %v1184_v59 = vcombine.high %v3890_v3, %v3890_v3 }
  0x42   :  { %v1198_v42 = vrot.slane %v1184_v59, %v3848_v58 }
  0x44   :  { %1823 = vperm.xlu1 %3104, %v90_v37   ;;  %1780 = vperm.xlu0 %3103, %v87_v38   ;;  %v3947_v37 = vrot.slane %v3858_v60, %v3798_v32  ;;  %v734_v38 = vcombine.high %v724_v20, %v724_v20  ;;  %v994_v20 = vrot.slane %v978_v7, %v3848_v58 }
  0x45   :  { %v732_v7 = vcombine.high %v710_v15, %v710_v15  ;;  %v803_v60 = vcombine.high %v781_v17, %v781_v17  ;;  %v4053_v17 = vrot.slane %v1087_v27, %v3798_v32  ;;  %v4083_v5 = vrot.slane %v1198_v42, %v3848_v58 }
  0x47   :  { %6362 = vst [vmem:[#allocation54_spill] sm:$0xff] %v4053_v17  ;;  %6372 = vst [vmem:[#allocation64_spill] sm:$0xff] %v4083_v5 }
  0x48   :  { %2032 = vperm.xlu0 %3103, %v96_v41   ;;  %2070 = vperm.xlu1 %3104, %v2065_v40   ;;  %v876_v40 = vcombine.high %v866_v22, %v866_v22  ;;  %v947_v41 = vcombine.high %v937_v23, %v937_v23  ;;  %v1136_v22 = vrot.slane %v1120_v9, %v3848_v58 }
  0x49   :  { %v1207_v23 = vrot.slane %v1191_v10, %v3848_v58  ;;  %v1113_v9 = vcombine.high %v3885_v2, %v3885_v2  ;;  %v874_v10 = vcombine.high %v852_v18, %v852_v18 }
  0x4b   :  { %v4044_v45 = vrot.slane %v874_v10, %v3798_v32 }
  0x4c   :  { %2075 = vperm.xlu0 %3103, %v2066_v43   ;;  %1855 = vperm.xlu1 %3104, %v91_v44   ;;  %v3951_v43 = vrot.slane %v3885_v2, %v3907_v16  ;;  %v1089_v44 = vcombine.high %v1079_v26, %v1079_v26  ;;  %v945_v26 = vcombine.high %v923_v19, %v923_v19 }
  0x4d   :  { %v985_v2 = vrot.slane %v971_v6, %v3848_v58  ;;  %6359 = vst [vmem:[#allocation51_spill] sm:$0xff] %v4044_v45 }
  0x4e   :  { %v3997_v12 = vrot.slane %v1089_v44, %v3798_v32  ;;  %v4041_v44 = vrot.slane %v803_v60, %v3798_v32  ;;  %v4173_v60 = vld.sshfl [vmem:[%s6263_s5 + $0x28] sm:$0x11 pattern:$0x75316420] }
  0x4f   :  { %v987_v59 = vcombine.high %v985_v2, %v985_v2 }
  0x50   :  { %1860 = vperm.xlu0 %3103, %v92_v47   ;;  %2080 = vperm.xlu1 %3104, %v2067_v46   ;;  %v1231_v46 = vcombine.high %v1221_v28, %v1221_v28  ;;  %v3955_v47 = vrot.slane %v3890_v3, %v3907_v16  ;;  %6354 = vst [vmem:[#allocation46_spill] sm:$0xff] %v3997_v12  ;;  %6358 = vst [vmem:[#allocation50_spill] sm:$0xff] %v4041_v44 }
  0x51   :  { %v1158_v28 = vcombine.high %v1136_v22, %v1136_v22  ;;  %v4068_v22 = vrot.slane %v843_v39, %v3848_v58 }
  0x52   :  { %v4003_v14 = vrot.slane %v1231_v46, %v3798_v32  ;;  %v4047_v46 = vrot.slane %v945_v26, %v3798_v32 }
  0x53   :  { %v4056_v18 = vrot.slane %v1158_v28, %v3798_v32  ;;  %6367 = vst [vmem:[#allocation59_spill] sm:$0xff] %v4068_v22  ;;  %v4178_v28 = vld.sshfl [vmem:[%s6263_s5 + $0x38] sm:$0x11 pattern:$0x75316420] }
  0x54   :  { %2109 = vperm.xlu0 %3103, %v100_v48   ;;  %2114 = vperm.xlu1 %3104, %v101_v49   ;;  %v3959_v48 = vrot.slane %v3863_v61, %v3798_v32  ;;  %v3963_v49 = vrot.slane %v3868_v62, %v3798_v32  ;;  %6356 = vst [vmem:[#allocation48_spill] sm:$0xff] %v4003_v14  ;;  %6360 = vst [vmem:[#allocation52_spill] sm:$0xff] %v4047_v46 }
  0x55   :  { %v1016_v61 = vcombine.high %v994_v20, %v994_v20  ;;  %v1229_v62 = vcombine.high %v1207_v23, %v1207_v23  ;;  %6363 = vst [vmem:[#allocation55_spill] sm:$0xff] %v4056_v18  ;;  %v4071_v23 = vrot.slane %v914_v1, %v3848_v58 }
  0x56   :  { %6344 = vst [vmem:[#allocation36_spill] sm:$0xff] %v3959_v48  ;;  %6345 = vst [vmem:[#allocation37_spill] sm:$0xff] %v3963_v49 }
  0x57   :  { %v4050_v15 = vrot.slane %v1016_v61, %v3798_v32  ;;  %v4059_v19 = vrot.slane %v1229_v62, %v3798_v32  ;;  %6368 = vst [vmem:[#allocation60_spill] sm:$0xff] %v4071_v23  ;;  %v1200_v61 = vcombine.high %v1198_v42, %v1198_v42  ;;  %v1230_v62 = vcombine.high %v4083_v5, %v4083_v5 }
  0x58   :  { %1865 = vperm.xlu0 %3103, %v93_v53   ;;  %2119 = vperm.xlu1 %3104, %v102_v54   ;;  %v3979_v53 = vrot.slane %v3890_v3, %v3798_v32  ;;  %v3982_v54 = vrot.slane %v734_v38, %v3798_v32  ;;  %v701_v38 = vrot.slane %v687_v24, %v3848_v58 }
  0x59   :  { %v1056_v3 = vrot.slane %v1042_v8, %v3848_v58  ;;  %6361 = vst [vmem:[#allocation53_spill] sm:$0xff] %v4050_v15  ;;  %6364 = vst [vmem:[#allocation56_spill] sm:$0xff] %v4059_v19  ;;  %v4074_v24 = vrot.slane %v985_v2, %v3848_v58  ;;  %v845_v8 = vcombine.high %v843_v39, %v843_v39 }
  0x5a   :  { %6349 = vst [vmem:[#allocation41_spill] sm:$0xff] %v3982_v54  ;;  %v4062_v20 = vrot.slane %v701_v38, %v3848_v58  ;;  %v703_v6 = vcombine.high %v701_v38, %v701_v38 }
  0x5b   :  { %6369 = vst [vmem:[#allocation61_spill] sm:$0xff] %v4074_v24  ;;  %v4077_v0 = vrot.slane %v1056_v3, %v3848_v58  ;;  %v1058_v10 = vcombine.high %v1056_v3, %v1056_v3 }
  0x5c   :  { %2348 = vperm.xlu1 %3104, %v60_v57   ;;  %1741 = vperm.xlu0 %3103, %v1739_v56   ;;  %v3988_v56 = vrot.slane %v876_v40, %v3798_v32  ;;  %v3991_v57 = vrot.slane %v947_v41, %v3798_v32  ;;  %v4035_v40 = vrot.slane %v732_v7, %v3798_v32 }
  0x5d   :  { %v1127_v41 = vrot.slane %v1113_v9, %v3848_v58  ;;  %6365 = vst [vmem:[#allocation57_spill] sm:$0xff] %v4062_v20  ;;  %6370 = vst [vmem:[#allocation62_spill] sm:$0xff] %v4077_v0  ;;  %v774_v7 = vcombine.high %v772_v63, %v772_v63  ;;  %v916_v9 = vcombine.high %v914_v1, %v914_v1 }
  0x5e   :  { %6351 = vst [vmem:[#allocation43_spill] sm:$0xff] %v3988_v56  ;;  %6352 = vst [vmem:[#allocation44_spill] sm:$0xff] %v3991_v57  ;;  %v4102_v2 = vrot.slane %v703_v6, %v3848_v58  ;;  %v4114_v63 = vrot.slane %v987_v59, %v3848_v58  ;;  %v4117_v39 = vrot.slane %v1058_v10, %v3848_v58 }
  0x5f   :  { %6357 = vst [vmem:[#allocation49_spill] sm:$0xff] %v4035_v40  ;;  %v4080_v4 = vrot.slane %v1127_v41, %v3848_v58  ;;  %v1129_v26 = vcombine.high %v1127_v41, %v1127_v41  ;;  %v4105_v3 = vrot.slane %v774_v7, %v3848_v58  ;;  %v4108_v41 = vrot.slane %v845_v8, %v3848_v58 }
  0x60   :  { %6373 = vst [vmem:[#allocation65_spill] sm:$0xff] %v4102_v2  ;;  %v4111_v42 = vrot.slane %v916_v9, %v3848_v58  ;;  %6377 = vst [vmem:[#allocation69_spill] sm:$0xff] %v4114_v63  ;;  %v4123_v6 = vrot.slane %v1200_v61, %v3848_v58  ;;  %v733_v7 = vcombine.high %v4062_v20, %v4062_v20 }
  0x61   :  { %6371 = vst [vmem:[#allocation63_spill] sm:$0xff] %v4080_v4  ;;  %6374 = vst [vmem:[#allocation66_spill] sm:$0xff] %v4105_v3  ;;  %v4120_v1 = vrot.slane %v1129_v26, %v3848_v58  ;;  %v804_v8 = vcombine.high %v4065_v21, %v4065_v21  ;;  %v875_v9 = vcombine.high %v4068_v22, %v4068_v22  ;;  %v4168_v26 = vld.sshfl [vmem:[%s6263_s5 + $0x18] sm:$0x11 pattern:$0x75316420] }
  0x62   :  { %6375 = vst [vmem:[#allocation67_spill] sm:$0xff] %v4108_v41  ;;  %6376 = vst [vmem:[#allocation68_spill] sm:$0xff] %v4111_v42  ;;  %v946_v59 = vcombine.high %v4071_v23, %v4071_v23  ;;  %v1017_v10 = vcombine.high %v4074_v24, %v4074_v24  ;;  %v1088_v61 = vcombine.high %v4077_v0, %v4077_v0  ;;  %v4200_v0 = vld.sshfl [vmem:[%s6263_s5 + $0x58] sm:$0x11 pattern:$0x75316420] }
  0x63   :  { %6378 = vst [vmem:[#allocation70_spill] sm:$0xff] %v4117_v39  ;;  %6379 = vst [vmem:[#allocation71_spill] sm:$0xff] %v4120_v1  ;;  %v1159_v38 = vcombine.high %v4080_v4, %v4080_v4  ;;  %v4163_v4 = vrot.slane %v733_v7, %v3798_v32  ;;  %v4183_v7 = vld.sshfl [vmem:[%s6263_s5 + $0x48] sm:$0x11 pattern:$0x75316420]  ;;  %v4186_v27 = vrot.slane %v804_v8, %v3798_v32 }
  0x64   :  { %6380 = vst [vmem:[#allocation72_spill] sm:$0xff] %v4123_v6  ;;  %v4189_v5 = vrot.slane %v875_v9, %v3798_v32  ;;  %v4195_v16 = vrot.slane %v1017_v10, %v3798_v32  ;;  %v4205_v23 = vrot.slane %v1088_v61, %v3798_v32  ;;  %v4211_v9 = vrot.slane %v1230_v62, %v3798_v32  ;;  %v3061_v10 = vld.sshfl [vmem:[%s6263_s5 + $0x68] sm:$0x11 pattern:$0x75316420] }
  0x65   :  { %6381 = vst [vmem:[#allocation73_spill] sm:$0xff] %v4163_v4  ;;  %6382 = vst [vmem:[#allocation74_spill] sm:$0xff] %v4186_v27  ;;  %v4192_v4 = vrot.slane %v946_v59, %v3798_v32  ;;  %v4208_v8 = vrot.slane %v1159_v38, %v3798_v32  ;;  %v735_v59 = vcombine.high %v4102_v2, %v4102_v2 }
  0x66   :  { %6383 = vst [vmem:[#allocation75_spill] sm:$0xff] %v4189_v5  ;;  %6385 = vst [vmem:[#allocation77_spill] sm:$0xff] %v4195_v16  ;;  %v806_v16 = vcombine.high %v4105_v3, %v4105_v3  ;;  %v877_v61 = vcombine.high %v4108_v41, %v4108_v41  ;;  %v948_v38 = vcombine.high %v4111_v42, %v4111_v42 }
  0x67   :  { %6384 = vst [vmem:[#allocation76_spill] sm:$0xff] %v4192_v4  ;;  %6386 = vst [vmem:[#allocation78_spill] sm:$0xff] %v4205_v23  ;;  %v1019_v62 = vcombine.high %v4114_v63, %v4114_v63  ;;  %v1161_v23 = vcombine.high %v4120_v1, %v4120_v1  ;;  %v1232_v4 = vcombine.high %v4123_v6, %v4123_v6 }
  0x68   :  { %6387 = vst [vmem:[#allocation79_spill] sm:$0xff] %v4208_v8  ;;  %6388 = vst [vmem:[#allocation80_spill] sm:$0xff] %v4211_v9  ;;  %v3062_v9 = vld.sshfl [vmem:[%s6263_s5 + $0x78] sm:$0x11 pattern:$0x75316420]  ;;  %v1090_v8 = vcombine.high %v4117_v39, %v4117_v39  ;;  %v743_v5 = vcombine.high %v4154_v29, %v4154_v29  ;;  %v814_v27 = vcombine.high %v4168_v26, %v4168_v26 }
  0x69   :  { %v885_v63 = vcombine.high %v4173_v60, %v4173_v60  ;;  %v956_v42 = vcombine.high %v4178_v28, %v4178_v28  ;;  %v1027_v39 = vcombine.high %v4183_v7, %v4183_v7  ;;  %v4246_v1 = vrot.slane %v735_v59, %v3798_v32 }
  0x6a   :  { %v1098_v6 = vcombine.high %v4200_v0, %v4200_v0  ;;  %v1169_v41 = vcombine.high %v3061_v10, %v3061_v10  ;;  %v1240_v3 = vcombine.high %v3062_v9, %v3062_v9  ;;  %v4251_v2 = vrot.slane %v806_v16, %v3798_v32 }
  0x6b   :  { %6389 = vst [vmem:[#allocation81_spill] sm:$0xff] %v4246_v1  ;;  %v4254_v22 = vrot.slane %v877_v61, %v3798_v32  ;;  %v4257_v21 = vrot.slane %v948_v38, %v3798_v32  ;;  %v4260_v20 = vrot.slane %v1019_v62, %v3798_v32  ;;  %v4265_v59 = vrot.slane %v1090_v8, %v3798_v32 }
  0x6c   :  { %6390 = vst [vmem:[#allocation82_spill] sm:$0xff] %v4251_v2  ;;  %v4268_v1 = vrot.slane %v1161_v23, %v3798_v32  ;;  %v4271_v16 = vrot.slane %v1232_v4, %v3798_v32  ;;  %v4274_v61 = vrot.slane %v743_v5, %v3848_v58  ;;  %v4277_v38 = vrot.slane %v814_v27, %v3848_v58 }
  0x6d   :  { %6391 = vst [vmem:[#allocation83_spill] sm:$0xff] %v4254_v22  ;;  %6392 = vst [vmem:[#allocation84_spill] sm:$0xff] %v4257_v21  ;;  %v4280_v62 = vrot.slane %v885_v63, %v3848_v58  ;;  %v4286_v8 = vrot.slane %v1027_v39, %v3848_v58  ;;  %v4289_v23 = vrot.slane %v1098_v6, %v3848_v58 }
  0x6e   :  { %6393 = vst [vmem:[#allocation85_spill] sm:$0xff] %v4260_v20  ;;  %6394 = vst [vmem:[#allocation86_spill] sm:$0xff] %v4265_v59  ;;  %v4283_v20 = vrot.slane %v956_v42, %v3848_v58  ;;  %v4292_v4 = vrot.slane %v1169_v41, %v3848_v58  ;;  %v4295_v5 = vrot.slane %v1240_v3, %v3848_v58 }
  0x6f   :  { %6395 = vst [vmem:[#allocation87_spill] sm:$0xff] %v4268_v1  ;;  %6396 = vst [vmem:[#allocation88_spill] sm:$0xff] %v4271_v16  ;;  %v750_v27 = vrot.slane %v4154_v29, %v3848_v58  ;;  %v821_v63 = vrot.slane %v4168_v26, %v3848_v58  ;;  %v892_v42 = vrot.slane %v4173_v60, %v3848_v58 }
  0x70   :  { %6397 = vst [vmem:[#allocation89_spill] sm:$0xff] %v4274_v61  ;;  %6398 = vst [vmem:[#allocation90_spill] sm:$0xff] %v4277_v38  ;;  %v963_v39 = vrot.slane %v4178_v28, %v3848_v58  ;;  %v1034_v6 = vrot.slane %v4183_v7, %v3848_v58  ;;  %v1105_v3 = vrot.slane %v4200_v0, %v3848_v58  ;;  %v4324_v0 = vld [vmem:[%s6264_s6] sm:$0xf] }
  0x71   :  { %6399 = vst [vmem:[#allocation91_spill] sm:$0xff] %v4280_v62  ;;  %6400 = vst [vmem:[#allocation92_spill] sm:$0xff] %v4283_v20  ;;  %v1176_v29 = vrot.slane %v3061_v10, %v3848_v58  ;;  %v1247_v16 = vrot.slane %v3062_v9, %v3848_v58  ;;  %v4333_v28 = vrot.slane %v750_v27, %v3798_v32 }
  0x72   :  { %6401 = vst [vmem:[#allocation93_spill] sm:$0xff] %v4286_v8  ;;  %6402 = vst [vmem:[#allocation94_spill] sm:$0xff] %v4289_v23  ;;  %v4336_v7 = vrot.slane %v821_v63, %v3798_v32  ;;  %v4339_v41 = vrot.slane %v892_v42, %v3798_v32  ;;  %v4342_v8 = vrot.slane %v963_v39, %v3798_v32 }
  0x73   :  { %6403 = vst [vmem:[#allocation95_spill] sm:$0xff] %v4292_v4  ;;  %6404 = vst [vmem:[#allocation96_spill] sm:$0xff] %v4295_v5  ;;  %v4345_v58 = vrot.slane %v1034_v6, %v3798_v32  ;;  %v4348_v9 = vrot.slane %v1105_v3, %v3798_v32  ;;  %v4351_v60 = vrot.slane %v1176_v29, %v3798_v32 }
  0x74   :  { %6405 = vst [vmem:[#allocation97_spill] sm:$0xff] %v4324_v0  ;;  %6406 = vst [vmem:[#allocation98_spill] sm:$0xff] %v4333_v28  ;;  %v4354_v27 = vrot.slane %v1247_v16, %v3798_v32  ;;  %v4358_v63 = vrot.slane %v4324_v0, %v3798_v32 }
  0x75   :  { %6407 = vst [vmem:[#allocation99_spill] sm:$0xff] %v4336_v7  ;;  %6408 = vst [vmem:[#allocation100_spill] sm:$0xff] %v4339_v41 }
  0x76   :  { %6409 = vst [vmem:[#allocation101_spill] sm:$0xff] %v4342_v8  ;;  %6410 = vst [vmem:[#allocation102_spill] sm:$0xff] %v4345_v58 }
  0x77   :  { %6411 = vst [vmem:[#allocation103_spill] sm:$0xff] %v4348_v9  ;;  %6412 = vst [vmem:[#allocation104_spill] sm:$0xff] %v4351_v60 }
  0x78   :  { %6413 = vst [vmem:[#allocation105_spill] sm:$0xff] %v4354_v27  ;;  %6414 = vst [vmem:[#allocation106_spill] sm:$0xff] %v4358_v63 }
  0x83   :  { %v4202_v24 = vpop.permute.xlu1 %273  ;;  %v138_v22 = vpop.permute.xlu0 %137 }
  0x84   :  { %v4362_v42 = vmul.f32 %v4202_v24, %v3916_v25  ;;  %v4366_v39 = vmul.f32 %v4202_v24, %v3923_v30  ;;  %v4370_v6 = vmul.f32 %v4202_v24, %v3927_v31  ;;  %v4374_v16 = vmul.f32 %v4202_v24, %v3931_v33 }
  0x85   :  { %v4378_v3 = vmul.f32 %v4202_v24, %v3939_v35  ;;  %v4382_v29 = vmul.f32 %v4202_v24, %v3943_v36  ;;  %v4386_v63 = vmul.f32 %v4202_v24, %v3951_v43  ;;  %v4390_v5 = vmul.f32 %v4202_v24, %v3955_v47 }
  0x86   :  { %v4393_v4 = vmul.f32 %v138_v22, %v3935_v34  ;;  %v4396_v23 = vmul.f32 %v138_v22, %v3947_v37  ;;  %v4399_v20 = vmul.f32 %v138_v22, %v3959_v48  ;;  %v4402_v62 = vmul.f32 %v138_v22, %v3963_v49 }
  0x87   :  { %v4262_v19 = vpop.permute.xlu1 %278  ;;  %v143_v26 = vpop.permute.xlu0 %142  ;;  %v4405_v38 = vmul.f32 %v138_v22, %v3967_v50  ;;  %v4408_v61 = vmul.f32 %v138_v22, %v3971_v51  ;;  %v4411_v24 = vmul.f32 %v138_v22, %v3975_v52  ;;  %v4414_v27 = vmul.f32 %v138_v22, %v3979_v53 }
  0x88   :  { %v312_v9 = vmul.f32 %v4262_v19, %v3916_v25  ;;  %v320_v58 = vmul.f32 %v4262_v19, %v3923_v30  ;;  %v328_v8 = vmul.f32 %v4262_v19, %v3927_v31  ;;  %v336_v41 = vmul.f32 %v4262_v19, %v3931_v33 }
  0x89   :  { %v344_v1 = vmul.f32 %v4262_v19, %v3939_v35  ;;  %v352_v22 = vmul.f32 %v4262_v19, %v3943_v36  ;;  %v360_v28 = vmul.f32 %v4262_v19, %v3951_v43  ;;  %v368_v59 = vmul.f32 %v4262_v19, %v3955_v47 }
  0x8a   :  { %v176_v21 = vmul.f32 %v143_v26, %v3935_v34  ;;  %v184_v2 = vmul.f32 %v143_v26, %v3947_v37  ;;  %v192_v0 = vmul.f32 %v143_v26, %v3959_v48  ;;  %v200_v32 = vmul.f32 %v143_v26, %v3963_v49 }
  0x8b   :  { %v284_v10 = vpop.permute.xlu1 %283  ;;  %v148_v7 = vpop.permute.xlu0 %147  ;;  %v208_v18 = vmul.f32 %v143_v26, %v3967_v50  ;;  %v216_v17 = vmul.f32 %v143_v26, %v3971_v51  ;;  %v224_v15 = vmul.f32 %v143_v26, %v3975_v52  ;;  %v232_v46 = vmul.f32 %v143_v26, %v3979_v53 }
  0x8c   :  { %v4441_v14 = vmul.f32 %v284_v10, %v3916_v25  ;;  %v4444_v19 = vmul.f32 %v284_v10, %v3923_v30  ;;  %v4447_v13 = vmul.f32 %v284_v10, %v3927_v31  ;;  %v4450_v12 = vmul.f32 %v284_v10, %v3931_v33 }
  0x8d   :  { %v4453_v11 = vmul.f32 %v284_v10, %v3939_v35  ;;  %v4456_v57 = vmul.f32 %v284_v10, %v3943_v36  ;;  %v4459_v26 = vmul.f32 %v284_v10, %v3951_v43  ;;  %v4462_v45 = vmul.f32 %v284_v10, %v3955_v47 }
  0x8e   :  { %6415 = vst [vmem:[#allocation107_spill] sm:$0xff] %v4444_v19  ;;  %6416 = vst [vmem:[#allocation108_spill] sm:$0xff] %v4447_v13  ;;  %v4465_v40 = vmul.f32 %v148_v7, %v3935_v34  ;;  %v4468_v56 = vmul.f32 %v148_v7, %v3947_v37  ;;  %v4471_v55 = vmul.f32 %v148_v7, %v3959_v48 }
  0x8f   :  { %v289_v60 = vpop.permute.xlu1 %288  ;;  %6417 = vst [vmem:[#allocation109_spill] sm:$0xff] %v4450_v12  ;;  %6418 = vst [vmem:[#allocation110_spill] sm:$0xff] %v4453_v11  ;;  %v4473_v54 = vpop.permute.xlu0 %152  ;;  %v376_v11 = vadd.f32 %v312_v9, %v176_v21  ;;  %v4482_v10 = vmul.f32 %v148_v7, %v3971_v51  ;;  %v4485_v12 = vmul.f32 %v148_v7, %v3975_v52 }
  0x90   :  { %6419 = vst [vmem:[#allocation111_spill] sm:$0xff] %v4456_v57  ;;  %6420 = vst [vmem:[#allocation112_spill] sm:$0xff] %v4459_v26  ;;  %v4476_v57 = vmul.f32 %v148_v7, %v3963_v49  ;;  %v4479_v26 = vmul.f32 %v148_v7, %v3967_v50  ;;  %v4488_v13 = vmul.f32 %v148_v7, %v3979_v53 }
  0x91   :  { %6421 = vst [vmem:[#allocation113_spill] sm:$0xff] %v4462_v45  ;;  %6422 = vst [vmem:[#allocation114_spill] sm:$0xff] %v4468_v56  ;;  %v384_v45 = vadd.f32 %v320_v58, %v184_v2  ;;  %v4491_v21 = vmul.f32 %v289_v60, %v3916_v25  ;;  %v4494_v9 = vmul.f32 %v289_v60, %v3923_v30 }
  0x92   :  { %6423 = vst [vmem:[#allocation115_spill] sm:$0xff] %v4471_v55  ;;  %6424 = vst [vmem:[#allocation116_spill] sm:$0xff] %v4476_v57  ;;  %v392_v55 = vadd.f32 %v328_v8, %v192_v0  ;;  %v400_v57 = vadd.f32 %v336_v41, %v200_v32  ;;  %v4497_v56 = vmul.f32 %v289_v60, %v3927_v31 }
  0x93   :  { %v447_v44 = vpop.permute.xlu1 %446  ;;  %6425 = vst [vmem:[#allocation117_spill] sm:$0xff] %v4479_v26  ;;  %6426 = vst [vmem:[#allocation118_spill] sm:$0xff] %v4485_v12  ;;  %v4500_v2 = vmul.f32 %v289_v60, %v3931_v33  ;;  %v408_v58 = vadd.f32 %v344_v1, %v208_v18  ;;  %v4503_v7 = vmul.f32 %v289_v60, %v3939_v35 }
  0x94   :  { %v480_v19 = vadd.f32 %v447_v44, %v376_v11  ;;  %6427 = vst [vmem:[#allocation119_spill] sm:$0xff] %v4491_v21  ;;  %6428 = vst [vmem:[#allocation120_spill] sm:$0xff] %v4494_v9  ;;  %v488_v26 = vadd.f32 %v447_v44, %v384_v45  ;;  %v496_v12 = vadd.f32 %v447_v44, %v392_v55 }
  0x95   :  { %6429 = vst [vmem:[#allocation121_spill] sm:$0xff] %v4497_v56  ;;  %6430 = vst [vmem:[#allocation122_spill] sm:$0xff] %v4500_v2  ;;  %v4506_v11 = vmul.f32 %v289_v60, %v3943_v36  ;;  %v416_v8 = vadd.f32 %v352_v22, %v216_v17  ;;  %v504_v0 = vadd.f32 %v447_v44, %v400_v57  ;;  %v442_v56 = vpop.permute.xlu0 %441 }
  0x96   :  { %6431 = vst [vmem:[#allocation123_spill] sm:$0xff] %v4503_v7  ;;  %v4509_v9 = vmul.f32 %v289_v60, %v3951_v43  ;;  %v424_v32 = vadd.f32 %v360_v28, %v224_v15  ;;  %v512_v45 = vadd.f32 %v447_v44, %v408_v58  ;;  %v545_v41 = vmul.f32 1.442695, %v480_v19 }
  0x97   :  { %6432 = vst [vmem:[#allocation124_spill] sm:$0xff] %v4506_v11  ;;  %v4512_v21 = vmul.f32 %v289_v60, %v3955_v47  ;;  %v520_v18 = vadd.f32 %v447_v44, %v416_v8  ;;  %v561_v55 = vmul.f32 1.442695, %v488_v26  ;;  %v375_v1 = vadd.f32 %v4362_v42, %v4393_v4 }
  0x98   :  { %v432_v7 = vadd.f32 %v368_v59, %v232_v46  ;;  %v528_v2 = vadd.f32 %v447_v44, %v424_v32  ;;  %v577_v11 = vmul.f32 1.442695, %v496_v12  ;;  %v383_v57 = vadd.f32 %v4366_v39, %v4396_v23 }
  0x99   :  { %v4520_v15 = vmul.f32 %v4473_v54, %v3935_v34  ;;  %v593_v17 = vmul.f32 1.442695, %v504_v0  ;;  %v391_v60 = vadd.f32 %v4370_v6, %v4399_v20  ;;  %v479_v28 = vadd.f32 %v442_v56, %v375_v1 }
  0x9a   :  { %v536_v22 = vadd.f32 %v447_v44, %v432_v7  ;;  %3115 = vpow2.f32 %v545_v41  ;;  %v609_v19 = vmul.f32 1.442695, %v512_v45  ;;  %v487_v26 = vadd.f32 %v442_v56, %v383_v57  ;;  %v294_v7 = vpop.permute.xlu1 %293 }
  0x9b   :  { %3117 = vpow2.f32 %v561_v55  ;;  %v625_v46 = vmul.f32 1.442695, %v520_v18  ;;  %v399_v12 = vadd.f32 %v4374_v16, %v4402_v62  ;;  %v495_v59 = vadd.f32 %v442_v56, %v391_v60 }
  0x9c   :  { %3119 = vpow2.f32 %v577_v11  ;;  %v641_v23 = vmul.f32 1.442695, %v528_v2  ;;  %v407_v4 = vadd.f32 %v4378_v3, %v4405_v38  ;;  %v415_v42 = vadd.f32 %v4382_v29, %v4408_v61  ;;  %v158_v61 = vpop.permute.xlu0 %157 }
  0x9d   :  { %3121 = vpow2.f32 %v593_v17  ;;  %v423_v44 = vadd.f32 %v4386_v63, %v4411_v24  ;;  %v503_v20 = vadd.f32 %v442_v56, %v399_v12  ;;  %v543_v39 = vmul.f32 1.442695, %v479_v28  ;;  %v6438_v12 = vld [vmem:[#allocation114_spill] sm:$0xff] }
  0x9e   :  { %3123 = vpow2.f32 %v609_v19  ;;  %v431_v6 = vadd.f32 %v4390_v5, %v4414_v27  ;;  %v511_v62 = vadd.f32 %v442_v56, %v407_v4  ;;  %v559_v16 = vmul.f32 1.442695, %v487_v26 }
  0x9f   :  { %v4536_v2 = vmul.f32 %v4473_v54, %v3947_v37  ;;  %3125 = vpow2.f32 %v625_v46  ;;  %v519_v38 = vadd.f32 %v442_v56, %v415_v42  ;;  %v575_v3 = vmul.f32 1.442695, %v495_v59  ;;  %v6439_v59 = vld [vmem:[#allocation107_spill] sm:$0xff] }
  0xa0   :  { %3127 = vpow2.f32 %v641_v23  ;;  %v657_v29 = vmul.f32 1.442695, %v536_v22  ;;  %v527_v58 = vadd.f32 %v442_v56, %v423_v44  ;;  %v535_v63 = vadd.f32 %v442_v56, %v431_v6  ;;  %v6440_v44 = vld [vmem:[#allocation115_spill] sm:$0xff] }
  0xa1   :  { %v4540_v24 = vmul.f32 %v4473_v54, %v3959_v48  ;;  %v4544_v5 = vmul.f32 %v4473_v54, %v3963_v49  ;;  %3129 = vpow2.f32 %v543_v39  ;;  %v591_v27 = vmul.f32 1.442695, %v503_v20  ;;  %v6441_v20 = vld [vmem:[#allocation108_spill] sm:$0xff] }
  0xa2   :  { %v4548_v11 = vmul.f32 %v4473_v54, %v3967_v50  ;;  %v4552_v8 = vmul.f32 %v4473_v54, %v3971_v51  ;;  %3131 = vpow2.f32 %v559_v16  ;;  %v607_v56 = vmul.f32 1.442695, %v511_v62  ;;  %v163_v16 = vpop.permute.xlu1 %162 }
  0xa3   :  { %v4556_v0 = vmul.f32 %v4473_v54, %v3975_v52  ;;  %v4560_v32 = vmul.f32 %v4473_v54, %v3979_v53  ;;  %3133 = vpow2.f32 %v575_v3  ;;  %v623_v45 = vmul.f32 1.442695, %v519_v38  ;;  %v4574_v54 = vpop.permute.xlu0 %451  ;;  %v6442_v38 = vld [vmem:[#allocation116_spill] sm:$0xff]  ;;  %v6443_v3 = vld [vmem:[#allocation109_spill] sm:$0xff] }
  0xa4   :  { %3135 = vpow2.f32 %v657_v29  ;;  %v639_v41 = vmul.f32 1.442695, %v527_v58  ;;  %v655_v18 = vmul.f32 1.442695, %v535_v63  ;;  %v4563_v55 = vmul.f32 %v294_v7, %v3916_v25 }
  0xa5   :  { %3137 = vpow2.f32 %v591_v27  ;;  %v4566_v1 = vmul.f32 %v294_v7, %v3923_v30  ;;  %v4569_v57 = vmul.f32 %v294_v7, %v3927_v31  ;;  %v4572_v17 = vmul.f32 %v294_v7, %v3931_v33 }
  0xa6   :  { %3139 = vpow2.f32 %v607_v56  ;;  %v4577_v60 = vmul.f32 %v294_v7, %v3939_v35  ;;  %v4580_v28 = vmul.f32 %v294_v7, %v3943_v36  ;;  %v377_v22 = vadd.f32 %v4441_v14, %v4465_v40 }
  0xa7   :  { %6433 = vst [vmem:[#allocation125_spill] sm:$0xff] %v4572_v17  ;;  %v3116_v19 = vpop.eup %3115  ;;  %3141 = vpow2.f32 %v623_v45  ;;  %v4585_v26 = vmul.f32 %v294_v7, %v3951_v43  ;;  %v4588_v46 = vmul.f32 %v294_v7, %v3955_v47  ;;  %v385_v23 = vadd.f32 %v6439_v59, %v6438_v12 }
  0xa8   :  { %6434 = vst [vmem:[#allocation126_spill] sm:$0xff] %v4577_v60  ;;  %6435 = vst [vmem:[#allocation127_spill] sm:$0xff] %v4580_v28  ;;  %v3118_v4 = vpop.eup %3117  ;;  %3143 = vpow2.f32 %v639_v41  ;;  %v4593_v42 = vmul.f32 %v158_v61, %v3935_v34  ;;  %v393_v39 = vadd.f32 %v6441_v20, %v6440_v44  ;;  %v481_v14 = vadd.f32 %v4574_v54, %v377_v22  ;;  %v6451_v20 = vld [vmem:[#allocation117_spill] sm:$0xff]  ;;  %v6456_v60 = vld [vmem:[#allocation42_spill] sm:$0xff] }
  0xa9   :  { %6436 = vst [vmem:[#allocation128_spill] sm:$0xff] %v4585_v26  ;;  %6437 = vst [vmem:[#allocation129_spill] sm:$0xff] %v4588_v46  ;;  %v3120_v40 = vpop.eup %3119  ;;  %v4599_v6 = vmul.f32 %v158_v61, %v3947_v37  ;;  %v4602_v62 = vmul.f32 %v158_v61, %v3959_v48  ;;  %v401_v29 = vadd.f32 %v6443_v3, %v6442_v38  ;;  %3145 = vpow2.f32 %v655_v18  ;;  %v6453_v26 = vld [vmem:[#allocation41_spill] sm:$0xff] }
  0xaa   :  { %v489_v58 = vadd.f32 %v4574_v54, %v385_v23  ;;  %v3122_v63 = vpop.eup %3121  ;;  %v4608_v27 = vmul.f32 %v158_v61, %v3963_v49  ;;  %v4611_v7 = vmul.f32 %v158_v61, %v3967_v50  ;;  %v497_v56 = vadd.f32 %v4574_v54, %v393_v39  ;;  %v6452_v39 = vld [vmem:[#allocation110_spill] sm:$0xff] }
  0xab   :  { %v3124_v45 = vpop.eup %3123  ;;  %v4615_v41 = vmul.f32 %v158_v61, %v3971_v51  ;;  %v4618_v22 = vmul.f32 %v158_v61, %v3975_v52  ;;  %v4621_v12 = vmul.f32 %v158_v61, %v3979_v53  ;;  %v505_v18 = vadd.f32 %v4574_v54, %v401_v29  ;;  %v6455_v61 = vld [vmem:[#allocation111_spill] sm:$0xff] }
  0xac   :  { %6444 = vst [vmem:[#allocation114_spill] sm:$0xff] %v4608_v27  ;;  %6445 = vst [vmem:[#allocation107_spill] sm:$0xff] %v4611_v7  ;;  %v3126_v59 = vpop.eup %3125  ;;  %v4625_v23 = vmul.f32 %v163_v16, %v3935_v34  ;;  %v4628_v44 = vmul.f32 %v163_v16, %v3947_v37  ;;  %v409_v38 = vadd.f32 %v6452_v39, %v6451_v20  ;;  %v547_v3 = vmul.f32 1.442695, %v481_v14 }
  0xad   :  { %6446 = vst [vmem:[#allocation115_spill] sm:$0xff] %v4615_v41  ;;  %6447 = vst [vmem:[#allocation108_spill] sm:$0xff] %v4618_v22  ;;  %v3128_v46 = vpop.eup %3127  ;;  %v1576_v28 = vmul.f32 %v3116_v19, %v6453_v26  ;;  %v4634_v22 = vmul.f32 %v163_v16, %v3959_v48  ;;  %v417_v29 = vadd.f32 %v6455_v61, %v4482_v10  ;;  %v579_v20 = vmul.f32 1.442695, %v497_v56  ;;  %v6459_v19 = vld [vmem:[#allocation118_spill] sm:$0xff]  ;;  %v6460_v26 = vld [vmem:[#allocation112_spill] sm:$0xff] }
  0xae   :  { %6448 = vst [vmem:[#allocation116_spill] sm:$0xff] %v4621_v12  ;;  %6449 = vst [vmem:[#allocation109_spill] sm:$0xff] %v4625_v23  ;;  %v563_v12 = vmul.f32 1.442695, %v489_v58  ;;  %v3130_v41 = vpop.eup %3129  ;;  %v1584_v23 = vmul.f32 %v3118_v4, %v6456_v60  ;;  %v4640_v7 = vmul.f32 %v163_v16, %v3963_v49  ;;  %v4644_v39 = vmul.f32 %v163_v16, %v3967_v50  ;;  %v6461_v61 = vld [vmem:[#allocation43_spill] sm:$0xff]  ;;  %v6463_v4 = vld [vmem:[#allocation113_spill] sm:$0xff] }
  0xaf   :  { %6450 = vst [vmem:[#allocation130_spill] sm:$0xff] %v4628_v44  ;;  %6454 = vst [vmem:[#allocation117_spill] sm:$0xff] %v4634_v22  ;;  %v513_v44 = vadd.f32 %v4574_v54, %v409_v38  ;;  %v3132_v14 = vpop.eup %3131  ;;  %v425_v22 = vadd.f32 %v6460_v26, %v6459_v19  ;;  %v521_v17 = vadd.f32 %v4574_v54, %v417_v29  ;;  %v595_v10 = vmul.f32 1.442695, %v505_v18  ;;  %v6466_v29 = vld [vmem:[#allocation50_spill] sm:$0xff] }
  0xb0   :  { %6457 = vst [vmem:[#allocation110_spill] sm:$0xff] %v4640_v7  ;;  %6458 = vst [vmem:[#allocation41_spill] sm:$0xff] %v4644_v39  ;;  %v3134_v58 = vpop.eup %3133  ;;  %v1592_v27 = vmul.f32 %v3120_v40, %v6461_v61  ;;  %v4651_v60 = vmul.f32 %v163_v16, %v3971_v51  ;;  %v433_v38 = vadd.f32 %v6463_v4, %v4488_v13  ;;  %3147 = vpow2.f32 %v547_v3  ;;  %v6464_v7 = vld [vmem:[#allocation49_spill] sm:$0xff]  ;;  %v6467_v51 = vld [vmem:[#allocation51_spill] sm:$0xff] }
  0xb1   :  { %v3136_v56 = vpop.eup %3135  ;;  %v1575_v50 = vmul.f32 %v3130_v41, %v6464_v7  ;;  %v4657_v39 = vmul.f32 %v163_v16, %v3975_v52  ;;  %v529_v19 = vadd.f32 %v4574_v54, %v425_v22  ;;  %3149 = vpow2.f32 %v563_v12  ;;  %v6468_v4 = vld [vmem:[#allocation44_spill] sm:$0xff]  ;;  %v6469_v22 = vld [vmem:[#allocation45_spill] sm:$0xff]  ;;  %v6470_v52 = vld [vmem:[#allocation46_spill] sm:$0xff] }
  0xb2   :  { %6462 = vst [vmem:[#allocation111_spill] sm:$0xff] %v4651_v60  ;;  %v3138_v18 = vpop.eup %3137  ;;  %v1583_v26 = vmul.f32 %v3132_v14, %v6466_v29  ;;  %v537_v40 = vadd.f32 %v4574_v54, %v433_v38  ;;  %3151 = vpow2.f32 %v579_v20  ;;  %v611_v61 = vmul.f32 1.442695, %v513_v44  ;;  %v6471_v14 = vld [vmem:[#allocation47_spill] sm:$0xff]  ;;  %v6472_v20 = vld [vmem:[#allocation48_spill] sm:$0xff] }
  0xb3   :  { %6465 = vst [vmem:[#allocation42_spill] sm:$0xff] %v4657_v39  ;;  %v3140_v60 = vpop.eup %3139  ;;  %v1591_v13 = vmul.f32 %v3134_v58, %v6467_v51  ;;  %v4664_v3 = vmul.f32 %v163_v16, %v3979_v53  ;;  %3153 = vpow2.f32 %v595_v10  ;;  %v627_v7 = vmul.f32 1.442695, %v521_v17  ;;  %v6473_v38 = vld [vmem:[#allocation52_spill] sm:$0xff]  ;;  %v457_v58 = vpop.permute.xlu1 %456 }
  0xb4   :  { %v3142_v41 = vpop.eup %3141  ;;  %v1600_v39 = vmul.f32 %v3122_v63, %v6468_v4  ;;  %v1608_v12 = vmul.f32 %v3124_v45, %v6469_v22  ;;  %v1616_v49 = vmul.f32 %v3126_v59, %v6470_v52  ;;  %v1624_v29 = vmul.f32 %v3128_v46, %v6471_v14  ;;  %v6474_v63 = vld [vmem:[#allocation119_spill] sm:$0xff]  ;;  %v6475_v52 = vld [vmem:[#allocation53_spill] sm:$0xff] }
  0xb5   :  { %v3144_v54 = vpop.eup %3143  ;;  %v1632_v44 = vmul.f32 %v3136_v56, %v6472_v20  ;;  %v1599_v48 = vmul.f32 %v3138_v18, %v6473_v38  ;;  %v4672_v51 = vadd.f32 %v1576_v28, %v1575_v50  ;;  %v643_v16 = vmul.f32 1.442695, %v529_v19  ;;  %v6476_v56 = vld [vmem:[#allocation120_spill] sm:$0xff]  ;;  %v6477_v50 = vld [vmem:[#allocation54_spill] sm:$0xff]  ;;  %v6478_v19 = vld [vmem:[#allocation55_spill] sm:$0xff]  ;;  %v299_v38 = vpop.permute.xlu0 %298 }
  0xb6   :  { %v4674_v10 = vadd.f32 %v1584_v23, %v1583_v26  ;;  %3155 = vpow2.f32 %v611_v61  ;;  %v659_v17 = vmul.f32 1.442695, %v537_v40  ;;  %v378_v45 = vadd.f32 %v6474_v63, %v4520_v15  ;;  %v3146_v4 = vpop.eup %3145  ;;  %v6479_v23 = vld [vmem:[#allocation121_spill] sm:$0xff]  ;;  %v6480_v61 = vld [vmem:[#allocation122_spill] sm:$0xff]  ;;  %v6481_v14 = vld [vmem:[#allocation123_spill] sm:$0xff] }
  0xb7   :  { %v1607_v59 = vmul.f32 %v3140_v60, %v6475_v52  ;;  %v4679_v46 = vadd.f32 %v1592_v27, %v1591_v13  ;;  %3157 = vpow2.f32 %v627_v7  ;;  %v386_v18 = vadd.f32 %v6476_v56, %v4536_v2  ;;  %v6482_v27 = vld [vmem:[#allocation124_spill] sm:$0xff] }
  0xb8   :  { %v1615_v28 = vmul.f32 %v3142_v41, %v6477_v50  ;;  %v1623_v22 = vmul.f32 %v3144_v54, %v6478_v19  ;;  %v394_v26 = vadd.f32 %v6479_v23, %v4540_v24  ;;  %v482_v40 = vadd.f32 %v457_v58, %v378_v45  ;;  %v6483_v20 = vld [vmem:[#allocation56_spill] sm:$0xff] }
  0xb9   :  { %v402_v15 = vadd.f32 %v6480_v61, %v4544_v5  ;;  %v410_v60 = vadd.f32 %v6481_v14, %v4548_v11  ;;  %v418_v13 = vadd.f32 %v6482_v27, %v4552_v8  ;;  %v490_v7 = vadd.f32 %v457_v58, %v386_v18  ;;  %v304_v27 = vpop.permute.xlu1 %303 }
  0xba   :  { %v1631_v2 = vmul.f32 %v3146_v4, %v6483_v20  ;;  %v426_v41 = vadd.f32 %v4509_v9, %v4556_v0  ;;  %v434_v54 = vadd.f32 %v4512_v21, %v4560_v32  ;;  %v498_v24 = vadd.f32 %v457_v58, %v394_v26 }
  0xbb   :  { %v1660_v63 = vadd.f32 %v1600_v39, %v1599_v48  ;;  %v506_v45 = vadd.f32 %v457_v58, %v402_v15  ;;  %v514_v5 = vadd.f32 %v457_v58, %v410_v60  ;;  %v522_v52 = vadd.f32 %v457_v58, %v418_v13  ;;  %v6493_v13 = vld [vmem:[#allocation59_spill] sm:$0xff] }
  0xbc   :  { %v4698_v56 = vadd.f32 %v1608_v12, %v1607_v59  ;;  %v530_v11 = vadd.f32 %v457_v58, %v426_v41  ;;  %v538_v50 = vadd.f32 %v457_v58, %v434_v54  ;;  %v549_v8 = vmul.f32 1.442695, %v482_v40  ;;  %v6491_v40 = vld [vmem:[#allocation58_spill] sm:$0xff] }
  0xbd   :  { %v3148_v18 = vpop.eup %3147  ;;  %v4700_v19 = vadd.f32 %v1616_v49, %v1615_v28  ;;  %v4702_v4 = vadd.f32 %v1624_v29, %v1623_v22  ;;  %3159 = vpow2.f32 %v643_v16  ;;  %v565_v9 = vmul.f32 1.442695, %v490_v7  ;;  %v6488_v29 = vld [vmem:[#allocation57_spill] sm:$0xff]  ;;  %v6489_v28 = vld [vmem:[#allocation34_spill] sm:$0xff] }
  0xbe   :  { %6484 = vst [vmem:[#allocation118_spill] sm:$0xff] %v4698_v56  ;;  %v3150_v0 = vpop.eup %3149  ;;  %v4704_v21 = vadd.f32 %v1632_v44, %v1631_v2  ;;  %3161 = vpow2.f32 %v659_v17  ;;  %v581_v48 = vmul.f32 1.442695, %v498_v24  ;;  %v4707_v32 = vmul.f32 %v299_v38, %v3916_v25  ;;  %v168_v17 = vpop.permute.xlu0 %167  ;;  %v6495_v24 = vld [vmem:[#allocation60_spill] sm:$0xff] }
  0xbf   :  { %6485 = vst [vmem:[#allocation112_spill] sm:$0xff] %v4700_v19  ;;  %6486 = vst [vmem:[#allocation43_spill] sm:$0xff] %v4702_v4  ;;  %v3152_v39 = vpop.eup %3151  ;;  %v597_v12 = vmul.f32 1.442695, %v506_v45  ;;  %v613_v59 = vmul.f32 1.442695, %v514_v5  ;;  %v4710_v23 = vmul.f32 %v299_v38, %v3923_v30  ;;  %v6490_v16 = vrot.slane %v6488_v29, %v6489_v28 }
  0xc0   :  { %6487 = vst [vmem:[#allocation113_spill] sm:$0xff] %v4704_v21  ;;  %v629_v58 = vmul.f32 1.442695, %v522_v52  ;;  %v3154_v49 = vpop.eup %3153  ;;  %3163 = vpow2.f32 %v549_v8  ;;  %v645_v44 = vmul.f32 1.442695, %v530_v11  ;;  %v6492_v61 = vrot.slane %v6491_v40, %v6489_v28  ;;  %v6524_v19 = vld [vmem:[#allocation39_spill] sm:$0xff] }
  0xc1   :  { %v1577_v22 = vmul.f32 %v3148_v18, %v6490_v16  ;;  %v661_v26 = vmul.f32 1.442695, %v538_v50  ;;  %3165 = vpow2.f32 %v565_v9  ;;  %v4719_v14 = vmul.f32 %v299_v38, %v3927_v31  ;;  %v6525_v56 = vld [vmem:[#allocation40_spill] sm:$0xff] }
  0xc2   :  { %v1585_v15 = vmul.f32 %v3150_v0, %v6492_v61  ;;  %v4722_v60 = vmul.f32 %v299_v38, %v3931_v33  ;;  %v6494_v7 = vrot.slane %v6493_v13, %v6489_v28  ;;  %3167 = vpow2.f32 %v581_v48 }
  0xc3   :  { %v4728_v2 = vmul.f32 %v299_v38, %v3939_v35  ;;  %v4731_v41 = vmul.f32 %v299_v38, %v3943_v36  ;;  %v3156_v54 = vpop.eup %3155  ;;  %v6496_v45 = vrot.slane %v6495_v24, %v6489_v28  ;;  %3169 = vpow2.f32 %v597_v12  ;;  %v6511_v24 = vld [vmem:[#allocation125_spill] sm:$0xff] }
  0xc4   :  { %v1593_v20 = vmul.f32 %v3152_v39, %v6494_v7  ;;  %v4737_v52 = vmul.f32 %v299_v38, %v3951_v43  ;;  %v4740_v11 = vmul.f32 %v299_v38, %v3955_v47  ;;  %v3158_v50 = vpop.eup %3157  ;;  %v4743_v8 = vadd.f32 %v4672_v51, %v1577_v22  ;;  %v6499_v39 = vld [vmem:[#allocation61_spill] sm:$0xff] }
  0xc5   :  { %v1601_v5 = vmul.f32 %v3154_v49, %v6496_v45  ;;  %3171 = vpow2.f32 %v613_v59  ;;  %v4746_v18 = vmul.f32 %v304_v27, %v3916_v25  ;;  %v4749_v9 = vmul.f32 %v304_v27, %v3923_v30 }
  0xc6   :  { %6497 = vst [vmem:[#allocation49_spill] sm:$0xff] %v4743_v8  ;;  %v4752_v0 = vadd.f32 %v4674_v10, %v1585_v15  ;;  %3173 = vpow2.f32 %v629_v58  ;;  %v4755_v48 = vmul.f32 %v304_v27, %v3927_v31  ;;  %v4758_v38 = vmul.f32 %v304_v27, %v3931_v33  ;;  %v462_v10 = vpop.permute.xlu0 %461  ;;  %v6503_v58 = vld [vmem:[#allocation62_spill] sm:$0xff]  ;;  %v4789_v15 = vpop.permute.xlu1 %172  ;;  %v6520_v8 = vld [vmem:[#allocation128_spill] sm:$0xff] }
  0xc7   :  { %v6500_v51 = vrot.slane %v6499_v39, %v6489_v28  ;;  %v4766_v59 = vadd.f32 %v4679_v46, %v1593_v20  ;;  %3175 = vpow2.f32 %v645_v44  ;;  %v4769_v49 = vmul.f32 %v304_v27, %v3939_v35  ;;  %v6509_v20 = vld [vmem:[#allocation36_spill] sm:$0xff] }
  0xc8   :  { %6498 = vst [vmem:[#allocation50_spill] sm:$0xff] %v4752_v0  ;;  %v6504_v29 = vrot.slane %v6503_v58, %v6489_v28  ;;  %v4776_v22 = vadd.f32 %v1660_v63, %v1601_v5  ;;  %3177 = vpow2.f32 %v661_v26  ;;  %v379_v40 = vadd.f32 %v4563_v55, %v4593_v42  ;;  %v6512_v5 = vld [vmem:[#allocation107_spill] sm:$0xff]  ;;  %v6519_v0 = vld [vmem:[#allocation108_spill] sm:$0xff]  ;;  %v6531_v28 = vld [vmem:[#allocation117_spill] sm:$0xff] }
  0xc9   :  { %v4763_v12 = vmul.f32 %v3156_v54, %v6500_v51  ;;  %6502 = vst [vmem:[#allocation44_spill] sm:$0xff] %v4766_v59  ;;  %v4781_v61 = vmul.f32 %v304_v27, %v3943_v36  ;;  %v4784_v46 = vmul.f32 %v304_v27, %v3951_v43  ;;  %v4787_v44 = vmul.f32 %v304_v27, %v3955_v47  ;;  %v6510_v54 = vld [vmem:[#allocation114_spill] sm:$0xff]  ;;  %v6515_v51 = vld [vmem:[#allocation37_spill] sm:$0xff] }
  0xca   :  { %v4774_v16 = vmul.f32 %v3158_v50, %v6504_v29  ;;  %6506 = vst [vmem:[#allocation46_spill] sm:$0xff] %v4776_v22  ;;  %v387_v13 = vadd.f32 %v4566_v1, %v4599_v6  ;;  %v4794_v63 = vmul.f32 %v168_v17, %v3935_v34  ;;  %v4797_v26 = vmul.f32 %v168_v17, %v3947_v37  ;;  %v4801_v7 = vpop.eup %3159  ;;  %v6513_v1 = vld [vmem:[#allocation126_spill] sm:$0xff] }
  0xcb   :  { %6501 = vst [vmem:[#allocation51_spill] sm:$0xff] %v4763_v12  ;;  %6507 = vst [vmem:[#allocation47_spill] sm:$0xff] %v4787_v44  ;;  %v395_v55 = vadd.f32 %v4569_v57, %v4602_v62  ;;  %v483_v42 = vadd.f32 %v462_v10, %v379_v40  ;;  %v4804_v27 = vmul.f32 %v168_v17, %v6509_v20  ;;  %v4810_v39 = vpop.eup %3161  ;;  %v6516_v29 = vld [vmem:[#allocation38_spill] sm:$0xff]  ;;  %v6517_v62 = vld [vmem:[#allocation115_spill] sm:$0xff] }
  0xcc   :  { %6505 = vst [vmem:[#allocation45_spill] sm:$0xff] %v4774_v16  ;;  %6508 = vst [vmem:[#allocation48_spill] sm:$0xff] %v4801_v7  ;;  %v403_v45 = vadd.f32 %v6511_v24, %v6510_v54  ;;  %v411_v6 = vadd.f32 %v6513_v1, %v6512_v5  ;;  %v491_v50 = vadd.f32 %v462_v10, %v387_v13  ;;  %v6518_v40 = vld [vmem:[#allocation127_spill] sm:$0xff]  ;;  %v6521_v54 = vld [vmem:[#allocation116_spill] sm:$0xff] }
  0xcd   :  { %6514 = vst [vmem:[#allocation52_spill] sm:$0xff] %v4810_v39  ;;  %v4813_v58 = vmul.f32 %v168_v17, %v6515_v51  ;;  %v4816_v57 = vmul.f32 %v168_v17, %v6516_v29  ;;  %v419_v22 = vadd.f32 %v6518_v40, %v6517_v62  ;;  %v499_v59 = vadd.f32 %v462_v10, %v395_v55  ;;  %v6522_v24 = vld [vmem:[#allocation129_spill] sm:$0xff]  ;;  %v4824_v1 = vpop.eup %3163 }
  0xce   :  { %v427_v21 = vadd.f32 %v6520_v8, %v6519_v0  ;;  %v435_v4 = vadd.f32 %v6522_v24, %v6521_v54  ;;  %v507_v5 = vadd.f32 %v462_v10, %v403_v45  ;;  %v515_v13 = vadd.f32 %v462_v10, %v411_v6  ;;  %6523 = vst [vmem:[#allocation119_spill] sm:$0xff] %v4824_v1  ;;  %v4832_v62 = vpop.eup %3165  ;;  %v467_v45 = vpop.permute.xlu1 %466 }
  0xcf   :  { %v4827_v16 = vmul.f32 %v168_v17, %v6524_v19  ;;  %v4830_v12 = vmul.f32 %v168_v17, %v6525_v56  ;;  %v523_v39 = vadd.f32 %v462_v10, %v419_v22  ;;  %v551_v7 = vmul.f32 1.442695, %v483_v42  ;;  %6526 = vst [vmem:[#allocation53_spill] sm:$0xff] %v4832_v62  ;;  %v4837_v6 = vpop.eup %3167  ;;  %v6528_v22 = vld [vmem:[#allocation109_spill] sm:$0xff] }
  0xd0   :  { %v4835_v55 = vmul.f32 %v168_v17, %v3979_v53  ;;  %v531_v8 = vadd.f32 %v462_v10, %v427_v21  ;;  %v539_v0 = vadd.f32 %v462_v10, %v435_v4  ;;  %v567_v40 = vmul.f32 1.442695, %v491_v50  ;;  %6527 = vst [vmem:[#allocation120_spill] sm:$0xff] %v4837_v6  ;;  %v4845_v62 = vpop.eup %3169 }
  0xd1   :  { %v182_v54 = vmul.f32 %v4789_v15, %v3935_v34  ;;  %v190_v24 = vmul.f32 %v4789_v15, %v3947_v37  ;;  %v583_v1 = vmul.f32 1.442695, %v499_v59  ;;  %v380_v42 = vadd.f32 %v4707_v32, %v6528_v22  ;;  %6529 = vst [vmem:[#allocation54_spill] sm:$0xff] %v4845_v62  ;;  %v6530_v59 = vld [vmem:[#allocation130_spill] sm:$0xff]  ;;  %v309_v22 = vpop.permute.xlu0 %308 }
  0xd2   :  { %v4849_v21 = vmul.f32 %v4789_v15, %v6509_v20  ;;  %v4853_v4 = vmul.f32 %v4789_v15, %v6515_v51  ;;  %v599_v17 = vmul.f32 1.442695, %v507_v5  ;;  %v615_v10 = vmul.f32 1.442695, %v515_v13  ;;  %v4855_v34 = vpop.eup %3171  ;;  %v6533_v5 = vld [vmem:[#allocation110_spill] sm:$0xff] }
  0xd3   :  { %3179 = vpow2.f32 %v551_v7  ;;  %v631_v37 = vmul.f32 1.442695, %v523_v39  ;;  %v388_v50 = vadd.f32 %v4710_v23, %v6530_v59  ;;  %v484_v32 = vadd.f32 %v467_v45, %v380_v42  ;;  %v4859_v62 = vpop.eup %3173  ;;  %v6534_v39 = vld [vmem:[#allocation41_spill] sm:$0xff]  ;;  %v6535_v59 = vld [vmem:[#allocation111_spill] sm:$0xff] }
  0xd4   :  { %3181 = vpow2.f32 %v567_v40  ;;  %v647_v20 = vmul.f32 1.442695, %v531_v8  ;;  %v663_v6 = vmul.f32 1.442695, %v539_v0  ;;  %v396_v51 = vadd.f32 %v4719_v14, %v6531_v28  ;;  %v4863_v44 = vpop.eup %3175  ;;  %v6536_v28 = vld [vmem:[#allocation42_spill] sm:$0xff] }
  0xd5   :  { %6532 = vst [vmem:[#allocation55_spill] sm:$0xff] %v4863_v44  ;;  %3183 = vpow2.f32 %v583_v1  ;;  %v404_v7 = vadd.f32 %v4722_v60, %v6533_v5  ;;  %v412_v13 = vadd.f32 %v4728_v2, %v6534_v39  ;;  %v492_v23 = vadd.f32 %v467_v45, %v388_v50  ;;  %v4869_v42 = vpop.eup %3177 }
  0xd6   :  { %3185 = vpow2.f32 %v599_v17  ;;  %v420_v8 = vadd.f32 %v4731_v41, %v6535_v59  ;;  %v500_v0 = vadd.f32 %v467_v45, %v396_v51  ;;  %v318_v40 = vmul.f32 %v309_v22, %v3916_v25 }
  0xd7   :  { %3187 = vpow2.f32 %v615_v10  ;;  %v428_v14 = vadd.f32 %v4737_v52, %v6536_v28  ;;  %v508_v1 = vadd.f32 %v467_v45, %v404_v7  ;;  %v553_v44 = vmul.f32 1.442695, %v484_v32  ;;  %v4883_v7 = vpop.permute.xlu1 %476 }
  0xd8   :  { %3189 = vpow2.f32 %v631_v37  ;;  %v516_v60 = vadd.f32 %v467_v45, %v412_v13  ;;  %v524_v5 = vadd.f32 %v467_v45, %v420_v8  ;;  %v326_v2 = vmul.f32 %v309_v22, %v3923_v30  ;;  %v472_v8 = vpop.permute.xlu0 %471 }
  0xd9   :  { %v214_v17 = vmul.f32 %v4789_v15, %v6516_v29  ;;  %3191 = vpow2.f32 %v647_v20  ;;  %v436_v41 = vadd.f32 %v4740_v11, %v4664_v3  ;;  %v569_v50 = vmul.f32 1.442695, %v492_v23 }
  0xda   :  { %3193 = vpow2.f32 %v663_v6  ;;  %v532_v25 = vadd.f32 %v467_v45, %v428_v14  ;;  %v585_v10 = vmul.f32 1.442695, %v500_v0  ;;  %v382_v51 = vadd.f32 %v318_v40, %v182_v54 }
  0xdb   :  { %v222_v52 = vmul.f32 %v4789_v15, %v6524_v19  ;;  %v540_v37 = vadd.f32 %v467_v45, %v436_v41  ;;  %3195 = vpow2.f32 %v553_v44  ;;  %v601_v32 = vmul.f32 1.442695, %v508_v1 }
  0xdc   :  { %v617_v30 = vmul.f32 1.442695, %v516_v60  ;;  %v633_v39 = vmul.f32 1.442695, %v524_v5  ;;  %v334_v29 = vmul.f32 %v309_v22, %v3927_v31  ;;  %v390_v20 = vadd.f32 %v326_v2, %v190_v24 }
  0xdd   :  { %3197 = vpow2.f32 %v569_v50  ;;  %v342_v3 = vmul.f32 %v309_v22, %v3931_v33  ;;  %v350_v11 = vmul.f32 %v309_v22, %v3939_v35  ;;  %v358_v6 = vmul.f32 %v309_v22, %v3943_v36 }
  0xde   :  { %3199 = vpow2.f32 %v585_v10  ;;  %v649_v54 = vmul.f32 1.442695, %v532_v25  ;;  %v366_v19 = vmul.f32 %v309_v22, %v3951_v43  ;;  %v486_v44 = vadd.f32 %v4883_v7, %v382_v51  ;;  %v6538_v25 = vld [vmem:[#allocation35_spill] sm:$0xff]  ;;  %v6539_v10 = vld [vmem:[#allocation97_spill] sm:$0xff] }
  0xdf   :  { %v230_v45 = vmul.f32 %v4789_v15, %v6525_v56  ;;  %v238_v31 = vmul.f32 %v4789_v15, %v3979_v53  ;;  %3201 = vpow2.f32 %v601_v32  ;;  %v665_v24 = vmul.f32 1.442695, %v540_v37 }
  0xe0   :  { %v4895_v13 = vpop.eup %3179  ;;  %3203 = vpow2.f32 %v617_v30  ;;  %v374_v33 = vmul.f32 %v309_v22, %v3955_v47  ;;  %v398_v35 = vadd.f32 %v334_v29, %v4849_v21  ;;  %v494_v36 = vadd.f32 %v4883_v7, %v390_v20  ;;  %v6540_v29 = vld [vmem:[#allocation33_spill] sm:$0xff] }
  0xe1   :  { %v4900_v43 = vpop.eup %3181  ;;  %3205 = vpow2.f32 %v633_v39  ;;  %v406_v23 = vadd.f32 %v342_v3, %v4853_v4  ;;  %v414_v56 = vadd.f32 %v350_v11, %v214_v17  ;;  %v422_v59 = vadd.f32 %v358_v6, %v222_v52  ;;  %v6541_v11 = vld [vmem:[#allocation63_spill] sm:$0xff]  ;;  %v6542_v6 = vld [vmem:[#allocation34_spill] sm:$0xff] }
  0xe2   :  { %v4903_v53 = vpop.eup %3183  ;;  %3207 = vpow2.f32 %v649_v54  ;;  %v430_v15 = vadd.f32 %v366_v19, %v230_v45  ;;  %v557_v0 = vmul.f32 1.442695, %v486_v44  ;;  %v381_v47 = vadd.f32 %v4746_v18, %v4794_v63  ;;  %v6544_v19 = vld [vmem:[#allocation48_spill] sm:$0xff] }
  0xe3   :  { %v4907_v22 = vpop.eup %3185  ;;  %3209 = vpow2.f32 %v665_v24  ;;  %v389_v21 = vadd.f32 %v4749_v9, %v4797_v26  ;;  %v397_v4 = vadd.f32 %v4755_v48, %v4804_v27  ;;  %v405_v40 = vadd.f32 %v4758_v38, %v4813_v58  ;;  %v6537_v38 = vld [vmem:[#allocation47_spill] sm:$0xff] }
  0xe4   :  { %v4915_v28 = vpop.eup %3187  ;;  %v573_v14 = vmul.f32 1.442695, %v494_v36  ;;  %v413_v1 = vadd.f32 %v4769_v49, %v4816_v57  ;;  %v421_v18 = vadd.f32 %v4781_v61, %v4827_v16  ;;  %v485_v63 = vadd.f32 %v472_v8, %v381_v47  ;;  %v6547_v47 = vld [vmem:[#allocation52_spill] sm:$0xff] }
  0xe5   :  { %v4921_v60 = vpop.eup %3189  ;;  %v429_v9 = vadd.f32 %v4784_v46, %v4830_v12  ;;  %v493_v26 = vadd.f32 %v472_v8, %v389_v21  ;;  %v501_v48 = vadd.f32 %v472_v8, %v397_v4  ;;  %v509_v27 = vadd.f32 %v472_v8, %v405_v40 }
  0xe6   :  { %v4925_v5 = vpop.eup %3191  ;;  %3211 = vpow2.f32 %v557_v0  ;;  %v437_v58 = vadd.f32 %v6537_v38, %v4835_v55  ;;  %v517_v2 = vadd.f32 %v472_v8, %v413_v1  ;;  %v525_v49 = vadd.f32 %v472_v8, %v421_v18  ;;  %v6550_v1 = vld [vmem:[#allocation119_spill] sm:$0xff] }
  0xe7   :  { %v4929_v57 = vpop.eup %3193  ;;  %v533_v16 = vadd.f32 %v472_v8, %v429_v9  ;;  %v555_v61 = vmul.f32 1.442695, %v485_v63  ;;  %v571_v17 = vmul.f32 1.442695, %v493_v26  ;;  %v587_v41 = vmul.f32 1.442695, %v501_v48 }
  0xe8   :  { %v4931_v50 = vpop.eup %3195  ;;  %3213 = vpow2.f32 %v573_v14  ;;  %v541_v12 = vadd.f32 %v472_v8, %v437_v58  ;;  %v603_v46 = vmul.f32 1.442695, %v509_v27  ;;  %v2709_v51 = vrot.slane %v6539_v10, %v6538_v25  ;;  %v6545_v8 = vld [vmem:[#allocation64_spill] sm:$0xff]  ;;  %v6548_v14 = vld [vmem:[#allocation65_spill] sm:$0xff]  ;;  %v6551_v48 = vld [vmem:[#allocation51_spill] sm:$0xff] }
  0xe9   :  { %v438_v52 = vadd.f32 %v374_v33, %v238_v31  ;;  %v502_v37 = vadd.f32 %v4883_v7, %v398_v35  ;;  %3215 = vpow2.f32 %v555_v61  ;;  %v619_v55 = vmul.f32 1.442695, %v517_v2  ;;  %v6552_v27 = vld [vmem:[#allocation118_spill] sm:$0xff]  ;;  %v6555_v2 = vld [vmem:[#allocation53_spill] sm:$0xff] }
  0xea   :  { %v4936_v32 = vpop.eup %3197  ;;  %v510_v30 = vadd.f32 %v4883_v7, %v406_v23  ;;  %3217 = vpow2.f32 %v571_v17  ;;  %v635_v39 = vmul.f32 1.442695, %v525_v49  ;;  %v2714_v20 = vsub.s32 2, %v6540_v29  ;;  %2711 = vst [vmem:[#allocation7 + $0x40] sm:$0xff] %v2709_v51  ;;  %v6556_v17 = vld [vmem:[#allocation45_spill] sm:$0xff]  ;;  %v4983_v29 = vpop.permute.xlu0 %1770 }
  0xeb   :  { %v4940_v3 = vpop.eup %3199  ;;  %v6543_v54 = vrot.slane %v6541_v11, %v6542_v6  ;;  %v518_v45 = vadd.f32 %v4883_v7, %v414_v56  ;;  %3219 = vpow2.f32 %v587_v41  ;;  %v651_v31 = vmul.f32 1.442695, %v533_v16  ;;  %v6557_v41 = vld [vmem:[#allocation112_spill] sm:$0xff] }
  0xec   :  { %v4947_v24 = vpop.eup %3201  ;;  %v526_v33 = vadd.f32 %v4883_v7, %v422_v59  ;;  %3221 = vpow2.f32 %v603_v46  ;;  %v667_v35 = vmul.f32 1.442695, %v541_v12  ;;  %v2715_v36 = vrot.slane %v6539_v10, %v2714_v20  ;;  %v6558_v12 = vld [vmem:[#allocation43_spill] sm:$0xff]  ;;  %v6559_v10 = vld [vmem:[#allocation113_spill] sm:$0xff]  ;;  %v6563_v20 = vld [vmem:[#allocation68_spill] sm:$0xff] }
  0xed   :  { %v1625_v44 = vmul.f32 %v6544_v19, %v6543_v54  ;;  %v4951_v23 = vpop.eup %3203  ;;  %v6546_v0 = vrot.slane %v6545_v8, %v6542_v6  ;;  %v534_v4 = vadd.f32 %v4883_v7, %v430_v15  ;;  %v589_v56 = vmul.f32 1.442695, %v502_v37  ;;  %v6553_v15 = vld [vmem:[#allocation66_spill] sm:$0xff] }
  0xee   :  { %3223 = vpow2.f32 %v619_v55  ;;  %v4958_v40 = vpop.eup %3205  ;;  %v6549_v59 = vrot.slane %v6548_v14, %v6542_v6  ;;  %v542_v63 = vadd.f32 %v4883_v7, %v438_v52  ;;  %v605_v9 = vmul.f32 1.442695, %v510_v30  ;;  %2717 = vst [vmem:[#allocation8 + $0x40] sm:$0xff] %v2715_v36  ;;  %v6560_v52 = vld [vmem:[#allocation67_spill] sm:$0xff]  ;;  %v6562_v55 = vld [vmem:[#allocation120_spill] sm:$0xff]  ;;  %v6565_v54 = vld [vmem:[#allocation54_spill] sm:$0xff]  ;;  %v5001_v14 = vpop.permute.xlu1 %1775 }
  0xef   :  { %v1633_v21 = vmul.f32 %v6547_v47, %v6546_v0  ;;  %3225 = vpow2.f32 %v635_v39  ;;  %v4965_v26 = vpop.eup %3207  ;;  %v1668_v38 = vadd.f32 %v6552_v27, %v6551_v48  ;;  %v6554_v58 = vrot.slane %v6553_v15, %v6542_v6  ;;  %v6569_v0 = vld [vmem:[#allocation70_spill] sm:$0xff]  ;;  %v6577_v27 = vld [vmem:[#allocation73_spill] sm:$0xff] }
  0xf0   :  { %v1578_v18 = vmul.f32 %v6550_v1, %v6549_v59  ;;  %v621_v16 = vmul.f32 1.442695, %v518_v45  ;;  %3227 = vpow2.f32 %v651_v31  ;;  %v4973_v61 = vpop.eup %3209  ;;  %v1675_v7 = vadd.f32 %v6557_v41, %v6556_v17  ;;  %v6566_v45 = vld [vmem:[#allocation49_spill] sm:$0xff]  ;;  %v6572_v59 = vld [vmem:[#allocation71_spill] sm:$0xff]  ;;  %v6580_v17 = vld [vmem:[#allocation76_spill] sm:$0xff] }
  0xf1   :  { %v1586_v49 = vmul.f32 %v6555_v2, %v6554_v58  ;;  %v1682_v46 = vadd.f32 %v6558_v12, %v1625_v44  ;;  %v637_v25 = vmul.f32 1.442695, %v526_v33  ;;  %3229 = vpow2.f32 %v667_v35  ;;  %v6567_v35 = vld [vmem:[#allocation69_spill] sm:$0xff]  ;;  %v6578_v58 = vld [vmem:[#allocation74_spill] sm:$0xff] }
  0xf2   :  { %v1689_v51 = vadd.f32 %v6559_v10, %v1633_v21  ;;  %v6561_v37 = vrot.slane %v6560_v52, %v6542_v6  ;;  %3231 = vpow2.f32 %v589_v56  ;;  %v653_v39 = vmul.f32 1.442695, %v534_v4  ;;  %v6571_v4 = vld [vmem:[#allocation50_spill] sm:$0xff]  ;;  %v6581_v10 = vld [vmem:[#allocation44_spill] sm:$0xff] }
  0xf3   :  { %v6564_v11 = vrot.slane %v6563_v20, %v6542_v6  ;;  %v1641_v44 = vadd.f32 %v6566_v45, %v1578_v18  ;;  %3233 = vpow2.f32 %v605_v9  ;;  %v669_v31 = vmul.f32 1.442695, %v542_v63  ;;  %v4990_v33 = vpop.eup %3211  ;;  %v6574_v18 = vld [vmem:[#allocation55_spill] sm:$0xff]  ;;  %v6575_v9 = vld [vmem:[#allocation72_spill] sm:$0xff]  ;;  %v6584_v20 = vld [vmem:[#allocation46_spill] sm:$0xff] }
  0xf4   :  { %v1594_v30 = vmul.f32 %v6562_v55, %v6561_v37  ;;  %v6568_v36 = vrot.slane %v6567_v35, %v6542_v6  ;;  %v6570_v47 = vrot.slane %v6569_v0, %v6542_v6  ;;  %v1648_v56 = vadd.f32 %v6571_v4, %v1586_v49  ;;  %v6579_v49 = vld [vmem:[#allocation75_spill] sm:$0xff]  ;;  %v6586_v45 = vld [vmem:[#allocation80_spill] sm:$0xff] }
  0xf5   :  { %v1602_v19 = vmul.f32 %v6565_v54, %v6564_v11  ;;  %3235 = vpow2.f32 %v621_v16  ;;  %v6573_v1 = vrot.slane %v6572_v59, %v6542_v6  ;;  %v6576_v48 = vrot.slane %v6575_v9, %v6542_v6  ;;  %v6585_v54 = vld [vmem:[#allocation79_spill] sm:$0xff] }
  0xf6   :  { %v1610_v8 = vmul.f32 %v4855_v34, %v6568_v36  ;;  %v1618_v21 = vmul.f32 %v4859_v62, %v6570_v47  ;;  %v1579_v15 = vmul.f32 %v4895_v13, %v6577_v27  ;;  %3237 = vpow2.f32 %v637_v25  ;;  %v5013_v62 = vpop.eup %3213  ;;  %v6583_v13 = vld [vmem:[#allocation78_spill] sm:$0xff]  ;;  %v6589_v9 = vld [vmem:[#allocation83_spill] sm:$0xff]  ;;  %v6591_v27 = vld [vmem:[#allocation85_spill] sm:$0xff] }
  0xf7   :  { %v1626_v63 = vmul.f32 %v6574_v18, %v6573_v1  ;;  %v1634_v34 = vmul.f32 %v4869_v42, %v6576_v48  ;;  %v1587_v2 = vmul.f32 %v4900_v43, %v6578_v58  ;;  %v1595_v16 = vmul.f32 %v4903_v53, %v6579_v49  ;;  %v3216_v12 = vpop.eup %3215  ;;  %v6582_v42 = vld [vmem:[#allocation77_spill] sm:$0xff]  ;;  %v6592_v58 = vld [vmem:[#allocation86_spill] sm:$0xff] }
  0xf8   :  { %v1603_v41 = vmul.f32 %v4907_v22, %v6580_v17  ;;  %3239 = vpow2.f32 %v653_v39  ;;  %v1655_v52 = vadd.f32 %v6581_v10, %v1594_v30  ;;  %v1611_v37 = vmul.f32 %v4915_v28, %v6582_v42  ;;  %v3218_v55 = vpop.eup %3217  ;;  %v5031_v39 = vpop.permute.xlu0 %1813  ;;  %v6587_v1 = vld [vmem:[#allocation81_spill] sm:$0xff] }
  0xf9   :  { %v1619_v25 = vmul.f32 %v4921_v60, %v6583_v13  ;;  %3241 = vpow2.f32 %v669_v31  ;;  %v1662_v43 = vadd.f32 %v6584_v20, %v1602_v19  ;;  %v1669_v11 = vadd.f32 %v1668_v38, %v1610_v8  ;;  %v3220_v30 = vpop.eup %3219  ;;  %v3405_v60 = vld [vmem:[%s6264_s6] sm:$0xf]  ;;  %s6185_s6 = smov 0  }
  0xfa   :  { %v1627_v53 = vmul.f32 %v4925_v5, %v6585_v54  ;;  %v1635_v22 = vmul.f32 %v4929_v57, %v6586_v45  ;;  %v1676_v35 = vadd.f32 %v1675_v7, %v1618_v21  ;;  %v1683_v36 = vadd.f32 %v1682_v46, %v1626_v63  ;;  %v3222_v0 = vpop.eup %3221  ;;  %v5036_v5 = vpop.permute.xlu1 %1818  ;;  %v6588_v46 = vld [vmem:[#allocation82_spill] sm:$0xff]  ;;  %v6597_v42 = vld [vmem:[#allocation101_spill] sm:$0xff] }
  0xfb   :  { %v1690_v28 = vadd.f32 %v1689_v51, %v1634_v34  ;;  %v1695_v31 = vmax.f32 %v3405_v60, 1e-06  ;;  %v1642_v19 = vadd.f32 %v1641_v44, %v1579_v15  ;;  %v1649_v38 = vadd.f32 %v1648_v56, %v1587_v2  ;;  %v3224_v4 = vpop.eup %3223  ;;  %v6590_v56 = vld [vmem:[#allocation84_spill] sm:$0xff]  ;;  %v6602_v60 = vld [vmem:[#allocation105_spill] sm:$0xff] }
  0xfc   :  { %v1656_v8 = vadd.f32 %v1655_v52, %v1595_v16  ;;  %v1663_v47 = vadd.f32 %v1662_v43, %v1603_v41  ;;  %v1670_v57 = vadd.f32 %v1669_v11, %v1611_v37  ;;  %v1677_v59 = vadd.f32 %v1676_v35, %v1619_v25  ;;  %v3226_v21 = vpop.eup %3225  ;;  %v6594_v16 = vld [vmem:[#allocation87_spill] sm:$0xff]  ;;  %v5056_v37 = vpop.permute.xlu0 %2022 }
  0xfd   :  { %v1580_v7 = vmul.f32 %v4931_v50, %v6587_v1  ;;  %v1588_v51 = vmul.f32 %v4936_v32, %v6588_v46  ;;  %v1684_v18 = vadd.f32 %v1683_v36, %v1627_v53  ;;  %v1691_v63 = vadd.f32 %v1690_v28, %v1635_v22  ;;  %v3228_v34 = vpop.eup %3227  ;;  %v6593_v50 = vld [vmem:[#allocation98_spill] sm:$0xff]  ;;  %v6595_v41 = vld [vmem:[#allocation99_spill] sm:$0xff] }
  0xfe   :  { %v1596_v44 = vmul.f32 %v4940_v3, %v6589_v9  ;;  %v1604_v48 = vmul.f32 %v4947_v24, %v6590_v56  ;;  %v1612_v15 = vmul.f32 %v4951_v23, %v6591_v27  ;;  %v1620_v2 = vmul.f32 %v4958_v40, %v6592_v58  ;;  %v3230_v32 = vpop.eup %3229  ;;  %v6596_v3 = vld [vmem:[#allocation100_spill] sm:$0xff]  ;;  %v6607_v56 = vld [vmem:[#allocation91_spill] sm:$0xff] }
  0xff   :  { %v1581_v49 = vmul.f32 %v3216_v12, %v6593_v50  ;;  %3243 = vrcp.f32 %v1695_v31  ;;  %v1628_v17 = vmul.f32 %v4965_v26, %v6594_v16  ;;  %v1589_v10 = vmul.f32 %v3218_v55, %v6595_v41  ;;  %v3232_v13 = vpop.eup %3231  ;;  %v6598_v23 = vld [vmem:[#allocation88_spill] sm:$0xff]  ;;  %v6599_v12 = vld [vmem:[#allocation102_spill] sm:$0xff]  ;;  %v6600_v26 = vld [vmem:[#allocation103_spill] sm:$0xff] }
 0x100   :  { %v1597_v52 = vmul.f32 %v3220_v30, %v6596_v3  ;;  %v1605_v24 = vmul.f32 %v3222_v0, %v6597_v42  ;;  %v1636_v25 = vmul.f32 %v4973_v61, %v6598_v23  ;;  %v1643_v40 = vadd.f32 %v1642_v19, %v1580_v7  ;;  %v3234_v11 = vpop.eup %3233  ;;  %v6601_v55 = vld [vmem:[#allocation104_spill] sm:$0xff]  ;;  %v5063_v30 = vpop.permute.xlu1 %2027  ;;  %v6611_v50 = vld [vmem:[#allocation93_spill] sm:$0xff] }
 0x101   :  { %v1650_v20 = vadd.f32 %v1649_v38, %v1588_v51  ;;  %v1613_v43 = vmul.f32 %v3224_v4, %v6599_v12  ;;  %v1657_v54 = vadd.f32 %v1656_v8, %v1596_v44  ;;  %v1664_v53 = vadd.f32 %v1663_v47, %v1604_v48  ;;  %v6603_v47 = vld [vmem:[#allocation89_spill] sm:$0xff] }
 0x102   :  { %v1621_v45 = vmul.f32 %v3226_v21, %v6600_v26  ;;  %v1629_v22 = vmul.f32 %v3228_v34, %v6601_v55  ;;  %v3236_v35 = vpop.eup %3235  ;;  %v1671_v36 = vadd.f32 %v1670_v57, %v1612_v15  ;;  %v1678_v28 = vadd.f32 %v1677_v59, %v1620_v2  ;;  %v6605_v21 = vld [vmem:[#allocation90_spill] sm:$0xff]  ;;  %v6609_v34 = vld [vmem:[#allocation92_spill] sm:$0xff]  ;;  %v1781_v2 = vpop.permute.xlu0 %1780 }
 0x103   :  { %v1637_v31 = vmul.f32 %v3230_v32, %v6602_v60  ;;  %v1644_v0 = vadd.f32 %v1643_v40, %v1581_v49  ;;  %v3238_v61 = vpop.eup %3237  ;;  %v1685_v19 = vadd.f32 %v1684_v18, %v1628_v17  ;;  %v1651_v38 = vadd.f32 %v1650_v20, %v1589_v10  ;;  %v6613_v32 = vld [vmem:[#allocation94_spill] sm:$0xff]  ;;  %v6616_v10 = vld [vmem:[#allocation95_spill] sm:$0xff] }
 0x104   :  { %v1658_v1 = vadd.f32 %v1657_v54, %v1597_v52  ;;  %v1665_v4 = vadd.f32 %v1664_v53, %v1605_v24  ;;  %v1692_v8 = vadd.f32 %v1691_v63, %v1636_v25  ;;  %v6604_v46 = vrot.slane %v6603_v47, %v6542_v6  ;;  %v1824_v23 = vpop.permute.xlu1 %1823  ;;  %v6621_v25 = vld [vmem:[#allocation96_spill] sm:$0xff]  ;;  %v6626_v54 = vld [vmem:[#allocation106_spill] sm:$0xff] }
 0x105   :  { %v3240_v7 = vpop.eup %3239  ;;  %v6606_v9 = vrot.slane %v6605_v21, %v6542_v6  ;;  %v1672_v59 = vadd.f32 %v1671_v36, %v1613_v43  ;;  %v6608_v18 = vrot.slane %v6607_v56, %v6542_v6  ;;  %v6610_v27 = vrot.slane %v6609_v34, %v6542_v6 }
 0x106   :  { %v1582_v51 = vmul.f32 %v4990_v33, %v6604_v46  ;;  %v3242_v44 = vpop.eup %3241  ;;  %v1679_v15 = vadd.f32 %v1678_v28, %v1621_v45  ;;  %v1686_v58 = vadd.f32 %v1685_v19, %v1629_v22  ;;  %v6612_v33 = vrot.slane %v6611_v50, %v6542_v6  ;;  %v2033_v60 = vpop.permute.xlu0 %2032 }
 0x107   :  { %v1590_v57 = vmul.f32 %v5013_v62, %v6606_v9  ;;  %v1598_v48 = vmul.f32 %v3232_v13, %v6608_v18  ;;  %v1606_v63 = vmul.f32 %v3234_v11, %v6610_v27  ;;  %v6614_v62 = vrot.slane %v6613_v32, %v6542_v6 }
 0x108   :  { %v1614_v49 = vmul.f32 %v3236_v35, %v6612_v33  ;;  %v5086_v17 = vadd.f32 %v1644_v0, %v1582_v51  ;;  %v1693_v41 = vadd.f32 %v1692_v8, %v1637_v31  ;;  %v6617_v3 = vrot.slane %v6616_v10, %v6542_v6 }
 0x109   :  { %v1622_v16 = vmul.f32 %v3238_v61, %v6614_v62  ;;  %v5091_v42 = vadd.f32 %v1651_v38, %v1590_v57  ;;  %v5093_v24 = vadd.f32 %v1658_v1, %v1598_v48  ;;  %v5095_v13 = vadd.f32 %v1665_v4, %v1606_v63 }
 0x10a   :  { %6615 = vst [vmem:[#allocation121_spill] sm:$0xff] %v5086_v17  ;;  %v1630_v52 = vmul.f32 %v3240_v7, %v6617_v3  ;;  %v6622_v40 = vrot.slane %v6621_v25, %v6542_v6  ;;  %v5100_v12 = vadd.f32 %v1672_v59, %v1614_v49  ;;  %v5108_v53 = vmul.f32 %v5036_v5, %v6626_v54  ;;  %v5204_v27 = vpop.permute.xlu0 %2075 }
 0x10b   :  { %6618 = vst [vmem:[#allocation122_spill] sm:$0xff] %v5091_v42  ;;  %6619 = vst [vmem:[#allocation123_spill] sm:$0xff] %v5093_v24  ;;  %v5102_v43 = vadd.f32 %v1679_v15, %v1622_v16  ;;  %v5114_v45 = vmul.f32 %v5001_v14, %v5086_v17  ;;  %v5118_v55 = vmul.f32 %v5031_v39, %v6626_v54 }
 0x10c   :  { %6620 = vst [vmem:[#allocation124_spill] sm:$0xff] %v5095_v13  ;;  %v1638_v20 = vmul.f32 %v3242_v44, %v6622_v40  ;;  %6623 = vst [vmem:[#allocation56_spill] sm:$0xff] %v5100_v12  ;;  %v5104_v11 = vadd.f32 %v1686_v58, %v1630_v52  ;;  %v5121_v22 = vmul.f32 %v1824_v23, %v6626_v54  ;;  %v3244_v35 = vpop.eup %3243  ;;  %v2071_v54 = vpop.permute.xlu1 %2070 }
 0x10d   :  { %6624 = vst [vmem:[#allocation57_spill] sm:$0xff] %v5102_v43  ;;  %v5125_v36 = vmul.f32 %v5001_v14, %v5091_v42  ;;  %v5129_v5 = vmul.f32 %v5001_v14, %v5093_v24  ;;  %v5133_v28 = vmul.f32 %v5001_v14, %v5095_v13  ;;  %v1783_v39 = vmul.f32 %v4983_v29, %v5086_v17 }
 0x10e   :  { %6625 = vst [vmem:[#allocation58_spill] sm:$0xff] %v5104_v11  ;;  %v5110_v26 = vadd.f32 %v1693_v41, %v1638_v20  ;;  %v5139_v31 = vmul.f32 %v5001_v14, %v5100_v12  ;;  %v1786_v0 = vmul.f32 %v4983_v29, %v5091_v42  ;;  %v1789_v61 = vmul.f32 %v4983_v29, %v5093_v24 }
 0x10f   :  { %v1792_v19 = vmul.f32 %v4983_v29, %v5095_v13  ;;  %v5149_v38 = vmul.f32 %v5001_v14, %v5102_v43  ;;  %v5153_v1 = vmul.f32 %v5001_v14, %v5104_v11  ;;  %v1795_v4 = vmul.f32 %v4983_v29, %v5100_v12 }
 0x110   :  { %6627 = vst [vmem:[#allocation59_spill] sm:$0xff] %v5110_v26  ;;  %v1798_v7 = vmul.f32 %v4983_v29, %v5102_v43  ;;  %v5161_v8 = vmul.f32 %v5001_v14, %v5110_v26  ;;  %v5165_v47 = vmul.f32 %v4983_v29, %v5104_v11  ;;  %v5168_v46 = vrot.slane %v3244_v35, %v6542_v6 }
 0x111   :  { %v2036_v51 = vmul.f32 %v5063_v30, %v5086_v17  ;;  %v1804_v21 = vmul.f32 %v4983_v29, %v5110_v26  ;;  %v2039_v9 = vmul.f32 %v5063_v30, %v5091_v42  ;;  %v2042_v14 = vmul.f32 %v5063_v30, %v5093_v24 }
 0x112   :  { %6628 = vst [vmem:[#allocation60_spill] sm:$0xff] %v5168_v46  ;;  %v2045_v57 = vmul.f32 %v5063_v30, %v5095_v13  ;;  %v5182_v59 = vmul.f32 %v5063_v30, %v5100_v12  ;;  %v5186_v6 = vmul.f32 %v5063_v30, %v5102_v43  ;;  %v5190_v29 = vmul.f32 %v5063_v30, %v5104_v11 }
 0x113   :  { %v5194_v44 = vmul.f32 %v5063_v30, %v5110_v26  ;;  %v2035_v56 = vmul.f32 %v5056_v37, %v5086_v17  ;;  %v2038_v18 = vmul.f32 %v5056_v37, %v5091_v42  ;;  %v2041_v48 = vmul.f32 %v5056_v37, %v5093_v24 }
 0x114   :  { %v2044_v34 = vmul.f32 %v5056_v37, %v5095_v13  ;;  %v2047_v63 = vmul.f32 %v5056_v37, %v5100_v12  ;;  %v2050_v30 = vmul.f32 %v5056_v37, %v5102_v43  ;;  %v2053_v15 = vmul.f32 %v5056_v37, %v5104_v11 }
 0x115   :  { %v2056_v58 = vmul.f32 %v5056_v37, %v5110_v26  ;;  %v5215_v50 = vmul.f32 %v1781_v2, %v5086_v17  ;;  %v5218_v33 = vmul.f32 %v1781_v2, %v5091_v42  ;;  %v5221_v49 = vmul.f32 %v1781_v2, %v5093_v24 }
 0x116   :  { %v5224_v32 = vmul.f32 %v1781_v2, %v5095_v13  ;;  %v5227_v62 = vmul.f32 %v1781_v2, %v5100_v12  ;;  %v5230_v16 = vmul.f32 %v1781_v2, %v5102_v43  ;;  %v5233_v37 = vmul.f32 %v1781_v2, %v5104_v11 }
 0x117   :  { %v5236_v41 = vmul.f32 %v1781_v2, %v5110_v26  ;;  %v5239_v10 = vmul.f32 %v2033_v60, %v5086_v17  ;;  %v5242_v3 = vmul.f32 %v2033_v60, %v5091_v42  ;;  %v5245_v52 = vmul.f32 %v2033_v60, %v5093_v24 }
 0x118   :  { %v5248_v23 = vmul.f32 %v2033_v60, %v5095_v13  ;;  %v5251_v25 = vmul.f32 %v2033_v60, %v5100_v12  ;;  %v5254_v40 = vmul.f32 %v2033_v60, %v5102_v43  ;;  %v5257_v2 = vmul.f32 %v2033_v60, %v5104_v11  ;;  %v1861_v12 = vpop.permute.xlu0 %1860 }
 0x119   :  { %v5260_v20 = vmul.f32 %v2033_v60, %v5110_v26  ;;  %v5262_v35 = vadd.f32 %v2071_v54, %v2035_v56  ;;  %v5264_v46 = vadd.f32 %v2071_v54, %v2038_v18  ;;  %v5266_v24 = vadd.f32 %v2071_v54, %v2041_v48 }
 0x11a   :  { %v5268_v13 = vadd.f32 %v2071_v54, %v2044_v34  ;;  %v5270_v42 = vadd.f32 %v2071_v54, %v2047_v63  ;;  %v5272_v43 = vadd.f32 %v2071_v54, %v2050_v30  ;;  %v5274_v17 = vadd.f32 %v2071_v54, %v2053_v15 }
 0x11b   :  { %v5276_v11 = vadd.f32 %v2071_v54, %v2056_v58  ;;  %v5279_v60 = vadd.f32 %v5204_v27, %v2036_v51  ;;  %v5282_v56 = vadd.f32 %v5204_v27, %v2039_v9  ;;  %v5285_v18 = vadd.f32 %v5204_v27, %v2042_v14  ;;  %v1856_v58 = vpop.permute.xlu1 %1855 }
 0x11c   :  { %v5288_v48 = vadd.f32 %v5204_v27, %v2045_v57  ;;  %v1829_v34 = vadd.f32 %v5118_v55, %v1783_v39  ;;  %v1832_v63 = vadd.f32 %v5118_v55, %v1786_v0  ;;  %v1835_v30 = vadd.f32 %v5118_v55, %v1789_v61 }
 0x11d   :  { %v1838_v15 = vadd.f32 %v5118_v55, %v1792_v19  ;;  %v1830_v51 = vadd.f32 %v5108_v53, %v5114_v45  ;;  %v1833_v9 = vadd.f32 %v5108_v53, %v5125_v36  ;;  %v1836_v14 = vadd.f32 %v5108_v53, %v5129_v5 }
 0x11e   :  { %v1839_v57 = vadd.f32 %v5108_v53, %v5133_v28  ;;  %v1841_v39 = vadd.f32 %v5118_v55, %v1795_v4  ;;  %v1844_v0 = vadd.f32 %v5118_v55, %v1798_v7  ;;  %v1842_v61 = vadd.f32 %v5108_v53, %v5139_v31  ;;  %v2110_v4 = vpop.permute.xlu0 %2109 }
 0x11f   :  { %v1845_v45 = vadd.f32 %v5108_v53, %v5149_v38  ;;  %v1847_v36 = vadd.f32 %v5118_v55, %v5165_v47  ;;  %v1850_v19 = vadd.f32 %v5118_v55, %v1804_v21  ;;  %v1848_v5 = vadd.f32 %v5108_v53, %v5153_v1 }
 0x120   :  { %v1851_v28 = vadd.f32 %v5108_v53, %v5161_v8  ;;  %v5315_v54 = vadd.f32 %v1856_v58, %v1829_v34  ;;  %v5317_v7 = vadd.f32 %v1856_v58, %v1832_v63  ;;  %v5319_v31 = vadd.f32 %v1856_v58, %v1835_v30 }
 0x121   :  { %v5321_v26 = vadd.f32 %v1856_v58, %v1838_v15  ;;  %v5323_v38 = vadd.f32 %v1861_v12, %v1830_v51  ;;  %v5325_v47 = vadd.f32 %v1861_v12, %v1833_v9  ;;  %v5327_v55 = vadd.f32 %v1861_v12, %v1836_v14 }
 0x122   :  { %v5329_v21 = vadd.f32 %v1861_v12, %v1839_v57  ;;  %v5331_v1 = vadd.f32 %v1856_v58, %v1841_v39  ;;  %v5333_v53 = vadd.f32 %v1856_v58, %v1844_v0  ;;  %v5335_v8 = vadd.f32 %v1861_v12, %v1842_v61  ;;  %v2081_v0 = vpop.permute.xlu1 %2080  ;;  %v5365_v61 = vpop.permute.xlu0 %1865 }
 0x123   :  { %v5337_v34 = vadd.f32 %v1861_v12, %v1845_v45  ;;  %v5339_v63 = vadd.f32 %v1856_v58, %v1847_v36  ;;  %v5341_v30 = vadd.f32 %v1856_v58, %v1850_v19  ;;  %v5343_v15 = vadd.f32 %v1861_v12, %v1848_v5 }
 0x124   :  { %6629 = vst [vmem:[#allocation61_spill] sm:$0xff] %v5335_v8  ;;  %v5345_v51 = vadd.f32 %v1861_v12, %v1851_v28  ;;  %v2096_v9 = vadd.f32 %v5204_v27, %v5182_v59  ;;  %v2099_v14 = vadd.f32 %v5204_v27, %v5186_v6  ;;  %v2102_v57 = vadd.f32 %v5204_v27, %v5190_v29 }
 0x125   :  { %v5355_v39 = vadd.f32 %v5204_v27, %v5194_v44  ;;  %v1892_v58 = vmax.f32 %v5315_v54, %v5323_v38  ;;  %v1894_v12 = vmax.f32 %v5317_v7, %v5325_v47  ;;  %v1896_v59 = vmax.f32 %v5319_v31, %v5327_v55 }
 0x126   :  { %v1898_v6 = vmax.f32 %v5321_v26, %v5329_v21  ;;  %v1900_v29 = vmax.f32 %v5331_v1, %v5335_v8  ;;  %v1831_v27 = vadd.f32 %v5121_v22, %v5215_v50  ;;  %v1834_v45 = vadd.f32 %v5121_v22, %v5218_v33 }
 0x127   :  { %v5380_v5 = vadd.f32 %v2081_v0, %v5239_v10  ;;  %v5383_v28 = vadd.f32 %v2081_v0, %v5242_v3  ;;  %v5386_v44 = vadd.f32 %v2081_v0, %v5245_v52  ;;  %v1837_v50 = vadd.f32 %v5121_v22, %v5221_v49 }
 0x128   :  { %v1870_v33 = vadd.f32 %v5365_v61, %v1831_v27  ;;  %v1873_v8 = vadd.f32 %v5365_v61, %v1834_v45  ;;  %v5393_v36 = vadd.f32 %v2081_v0, %v5248_v23  ;;  %v5396_v19 = vadd.f32 %v2081_v0, %v5251_v25  ;;  %v2115_v27 = vpop.permute.xlu1 %2114 }
 0x129   :  { %v5399_v10 = vadd.f32 %v2081_v0, %v5254_v40  ;;  %v5402_v3 = vadd.f32 %v2081_v0, %v5257_v2  ;;  %v5405_v52 = vadd.f32 %v2081_v0, %v5260_v20  ;;  %v5408_v49 = vadd.f32 %v2110_v4, %v5262_v35 }
 0x12a   :  { %6630 = vst [vmem:[#allocation62_spill] sm:$0xff] %v5393_v36  ;;  %v1876_v45 = vadd.f32 %v5365_v61, %v1837_v50  ;;  %v1893_v23 = vmax.f32 %v1892_v58, %v1870_v33  ;;  %v5412_v36 = vadd.f32 %v2110_v4, %v5264_v46  ;;  %v5415_v25 = vadd.f32 %v2110_v4, %v5266_v24 }
 0x12b   :  { %6631 = vst [vmem:[#allocation36_spill] sm:$0xff] %v5399_v10  ;;  %6632 = vst [vmem:[#allocation114_spill] sm:$0xff] %v5402_v3  ;;  %v1840_v40 = vadd.f32 %v5121_v22, %v5224_v32  ;;  %v1895_v2 = vmax.f32 %v1894_v12, %v1873_v8  ;;  %v5420_v20 = vadd.f32 %v2110_v4, %v5268_v13 }
 0x12c   :  { %6633 = vst [vmem:[#allocation125_spill] sm:$0xff] %v5405_v52  ;;  %v5423_v35 = vadd.f32 %v2110_v4, %v5270_v42  ;;  %v5426_v0 = vadd.f32 %v2110_v4, %v5272_v43  ;;  %v5429_v58 = vadd.f32 %v2110_v4, %v5274_v17  ;;  %v5432_v46 = vadd.f32 %v2110_v4, %v5276_v11 }
 0x12d   :  { %v5435_v24 = vadd.f32 %v2115_v27, %v5279_v60  ;;  %v1843_v32 = vadd.f32 %v5121_v22, %v5227_v62  ;;  %v1879_v13 = vadd.f32 %v5365_v61, %v1840_v40  ;;  %v1897_v12 = vmax.f32 %v1896_v59, %v1876_v45 }
 0x12e   :  { %v1908_v42 = vsub.f32 %v5315_v54, %v1893_v23  ;;  %v1909_v43 = vsub.f32 %v5323_v38, %v1893_v23  ;;  %v1910_v50 = vsub.f32 %v1870_v33, %v1893_v23  ;;  %v5443_v17 = vadd.f32 %v2115_v27, %v5282_v56 }
 0x12f   :  { %v5446_v11 = vadd.f32 %v2115_v27, %v5285_v18  ;;  %v5449_v60 = vadd.f32 %v2115_v27, %v5288_v48  ;;  %v1911_v4 = vsub.f32 %v5317_v7, %v1895_v2  ;;  %v5452_v62 = vadd.f32 %v2115_v27, %v2096_v9 }
 0x130   :  { %v5454_v40 = vadd.f32 %v2115_v27, %v2099_v14  ;;  %v1882_v54 = vadd.f32 %v5365_v61, %v1843_v32  ;;  %v1912_v38 = vsub.f32 %v5325_v47, %v1895_v2  ;;  %v5458_v59 = vadd.f32 %v2115_v27, %v2102_v57 }
 0x131   :  { %v1846_v56 = vadd.f32 %v5121_v22, %v5230_v16  ;;  %v1899_v18 = vmax.f32 %v1898_v6, %v1879_v13  ;;  %v1913_v33 = vsub.f32 %v1873_v8, %v1895_v2  ;;  %v1914_v48 = vsub.f32 %v5319_v31, %v1897_v12 }
 0x132   :  { %v1932_v23 = vmul.f32 1.442695, %v1908_v42  ;;  %v1934_v52 = vmul.f32 1.442695, %v1909_v43  ;;  %v1936_v7 = vmul.f32 1.442695, %v1910_v50  ;;  %v1849_v9 = vadd.f32 %v5121_v22, %v5233_v37 }
 0x133   :  { %v1885_v14 = vadd.f32 %v5365_v61, %v1846_v56  ;;  %v1915_v32 = vsub.f32 %v5327_v55, %v1897_v12  ;;  %v1938_v47 = vmul.f32 1.442695, %v1911_v4  ;;  %v1901_v57 = vmax.f32 %v1900_v29, %v1882_v54  ;;  %v5490_v56 = vpop.permute.xlu1 %2119 }
 0x134   :  { %v1916_v3 = vsub.f32 %v1876_v45, %v1897_v12  ;;  %3245 = vpow2.f32 %v1932_v23  ;;  %v1940_v10 = vmul.f32 1.442695, %v1912_v38  ;;  %v1852_v16 = vadd.f32 %v5121_v22, %v5236_v41 }
 0x135   :  { %v1917_v31 = vsub.f32 %v5321_v26, %v1899_v18  ;;  %3247 = vpow2.f32 %v1934_v52  ;;  %v1942_v8 = vmul.f32 1.442695, %v1913_v33  ;;  %v1888_v6 = vadd.f32 %v5365_v61, %v1849_v9  ;;  %v6635_v52 = vld [vmem:[#allocation61_spill] sm:$0xff] }
 0x136   :  { %v1918_v37 = vsub.f32 %v5329_v21, %v1899_v18  ;;  %3249 = vpow2.f32 %v1936_v7  ;;  %v1944_v2 = vmul.f32 1.442695, %v1914_v48  ;;  %v6634_v55 = vmax.f32 %v5333_v53, %v5337_v34 }
 0x137   :  { %v1919_v45 = vsub.f32 %v1879_v13, %v1899_v18  ;;  %3251 = vpow2.f32 %v1938_v47  ;;  %v1946_v12 = vmul.f32 1.442695, %v1915_v32  ;;  %v5476_v42 = vadd.f32 %v2115_v27, %v5355_v39 }
 0x138   :  { %v1903_v29 = vmax.f32 %v6634_v55, %v1885_v14  ;;  %v1920_v26 = vsub.f32 %v5331_v1, %v1901_v57  ;;  %3253 = vpow2.f32 %v1940_v10  ;;  %v1948_v22 = vmul.f32 1.442695, %v1916_v3 }
 0x139   :  { %v1891_v41 = vadd.f32 %v5365_v61, %v1852_v16  ;;  %v1921_v21 = vsub.f32 %v6635_v52, %v1901_v57  ;;  %3255 = vpow2.f32 %v1942_v8  ;;  %v1950_v43 = vmul.f32 1.442695, %v1917_v31 }
 0x13a   :  { %v6636_v50 = vmax.f32 %v5339_v63, %v5343_v15  ;;  %v1922_v13 = vsub.f32 %v1882_v54, %v1901_v57  ;;  %3257 = vpow2.f32 %v1944_v2  ;;  %v1952_v38 = vmul.f32 1.442695, %v1918_v37 }
 0x13b   :  { %v2146_v39 = vmax.f32 %v5408_v49, %v5435_v24  ;;  %v1923_v1 = vsub.f32 %v5333_v53, %v1903_v29  ;;  %3259 = vpow2.f32 %v1946_v12  ;;  %v1954_v10 = vmul.f32 1.442695, %v1919_v45 }
 0x13c   :  { %v1905_v4 = vmax.f32 %v6636_v50, %v1888_v6  ;;  %v2148_v61 = vmax.f32 %v5412_v36, %v5443_v17  ;;  %v1924_v3 = vsub.f32 %v5337_v34, %v1903_v29  ;;  %3261 = vpow2.f32 %v1948_v22 }
 0x13d   :  { %v1956_v27 = vmul.f32 1.442695, %v1920_v26  ;;  %v6637_v54 = vmax.f32 %v5341_v30, %v5345_v51  ;;  %v1925_v33 = vsub.f32 %v1885_v14, %v1903_v29  ;;  %3263 = vpow2.f32 %v1950_v43 }
 0x13e   :  { %v1958_v48 = vmul.f32 1.442695, %v1921_v21  ;;  %v2150_v53 = vmax.f32 %v5415_v25, %v5446_v11  ;;  %v1926_v23 = vsub.f32 %v5339_v63, %v1905_v4  ;;  %3265 = vpow2.f32 %v1952_v38 }
 0x13f   :  { %v1907_v18 = vmax.f32 %v6637_v54, %v1891_v41  ;;  %v1960_v7 = vmul.f32 1.442695, %v1922_v13  ;;  %v1927_v34 = vsub.f32 %v5343_v15, %v1905_v4  ;;  %3267 = vpow2.f32 %v1954_v10 }
 0x140   :  { %v1962_v9 = vmul.f32 1.442695, %v1923_v1  ;;  %v5501_v32 = vadd.f32 %v5490_v56, %v5380_v5  ;;  %v2152_v14 = vmax.f32 %v5420_v20, %v5449_v60  ;;  %v1928_v47 = vsub.f32 %v1888_v6, %v1905_v4 }
 0x141   :  { %3269 = vpow2.f32 %v1956_v27  ;;  %v1964_v57 = vmul.f32 1.442695, %v1924_v3  ;;  %v5505_v16 = vpop.eup %3245  ;;  %v2154_v63 = vmax.f32 %v5423_v35, %v5452_v62  ;;  %v1929_v31 = vsub.f32 %v5341_v30, %v1907_v18 }
 0x142   :  { %3271 = vpow2.f32 %v1958_v48  ;;  %v1966_v15 = vmul.f32 1.442695, %v1925_v33  ;;  %v5510_v8 = vpop.eup %3247  ;;  %v1930_v5 = vsub.f32 %v5345_v51, %v1907_v18  ;;  %v1931_v37 = vsub.f32 %v1891_v41, %v1907_v18 }
 0x143   :  { %3273 = vpow2.f32 %v1960_v7  ;;  %v1968_v2 = vmul.f32 1.442695, %v1926_v23  ;;  %v3250_v55 = vpop.eup %3249  ;;  %v2156_v6 = vmax.f32 %v5426_v0, %v5454_v40  ;;  %v1970_v29 = vmul.f32 1.442695, %v1927_v34 }
 0x144   :  { %3275 = vpow2.f32 %v1962_v9  ;;  %v2147_v45 = vmax.f32 %v2146_v39, %v5501_v32  ;;  %v5516_v12 = vpop.eup %3251  ;;  %v1972_v30 = vmul.f32 1.442695, %v1928_v47  ;;  %v1980_v26 = vadd.f32 %v5510_v8, %v5505_v16  ;;  %v6638_v39 = vld [vmem:[#allocation62_spill] sm:$0xff] }
 0x145   :  { %3277 = vpow2.f32 %v1964_v57  ;;  %v5522_v51 = vadd.f32 %v5490_v56, %v5383_v28  ;;  %v5524_v22 = vpop.eup %3253  ;;  %v2158_v41 = vmax.f32 %v5429_v58, %v5458_v59  ;;  %v2160_v52 = vmax.f32 %v5432_v46, %v5476_v42  ;;  %v6640_v9 = vld [vmem:[#allocation114_spill] sm:$0xff] }
 0x146   :  { %3279 = vpow2.f32 %v1966_v15  ;;  %v1974_v21 = vmul.f32 1.442695, %v1929_v31  ;;  %v3256_v43 = vpop.eup %3255  ;;  %v1976_v50 = vmul.f32 1.442695, %v1930_v5  ;;  %v1978_v4 = vmul.f32 1.442695, %v1931_v37 }
 0x147   :  { %3281 = vpow2.f32 %v1968_v2  ;;  %v1981_v13 = vadd.f32 %v5524_v22, %v5516_v12  ;;  %v5532_v38 = vpop.eup %3257  ;;  %v5536_v28 = vadd.f32 %v5490_v56, %v5386_v44  ;;  %v5540_v1 = vadd.f32 %v5490_v56, %v6638_v39  ;;  %v6641_v31 = vld [vmem:[#allocation125_spill] sm:$0xff] }
 0x148   :  { %3283 = vpow2.f32 %v1970_v29  ;;  %v2162_v10 = vsub.f32 %v5408_v49, %v2147_v45  ;;  %v5543_v3 = vpop.eup %3259  ;;  %v1988_v27 = vadd.f32 %v3250_v55, %v1980_v26  ;;  %v5547_v54 = vadd.f32 %v5490_v56, %v5396_v19  ;;  %v6639_v49 = vld [vmem:[#allocation36_spill] sm:$0xff] }
 0x149   :  { %3285 = vpow2.f32 %v1972_v30  ;;  %v2149_v18 = vmax.f32 %v2148_v61, %v5522_v51  ;;  %v3262_v33 = vpop.eup %3261  ;;  %v1982_v44 = vadd.f32 %v5543_v3, %v5532_v38  ;;  %v1989_v48 = vadd.f32 %v3256_v43, %v1981_v13 }
 0x14a   :  { %3287 = vpow2.f32 %v1974_v21  ;;  %v2163_v23 = vsub.f32 %v5435_v24, %v2147_v45  ;;  %v5553_v7 = vpop.eup %3263  ;;  %v5557_v34 = vadd.f32 %v5490_v56, %v6639_v49  ;;  %v5561_v19 = vadd.f32 %v5490_v56, %v6640_v9 }
 0x14b   :  { %3289 = vpow2.f32 %v1976_v50  ;;  %v2164_v61 = vsub.f32 %v5501_v32, %v2147_v45  ;;  %v5564_v47 = vpop.eup %3265  ;;  %v1990_v57 = vadd.f32 %v3262_v33, %v1982_v44  ;;  %v5568_v24 = vadd.f32 %v5490_v56, %v6641_v31 }
 0x14c   :  { %3291 = vpow2.f32 %v1978_v4  ;;  %v2186_v15 = vmul.f32 1.442695, %v2162_v10  ;;  %v3268_v5 = vpop.eup %3267  ;;  %v1983_v37 = vadd.f32 %v5564_v47, %v5553_v7  ;;  %v2151_v2 = vmax.f32 %v2150_v53, %v5536_v28 }
 0x14d   :  { %3293 = vrcp.f32 %v1988_v27  ;;  %v2165_v32 = vsub.f32 %v5412_v36, %v2149_v18  ;;  %v5583_v56 = vmax.f32 %v2152_v14, %v5540_v1  ;;  %v2166_v29 = vsub.f32 %v5443_v17, %v2149_v18 }
 0x14e   :  { %v5577_v55 = vpop.eup %3269  ;;  %3295 = vrcp.f32 %v1989_v48  ;;  %v2188_v45 = vmul.f32 1.442695, %v2163_v23  ;;  %v1991_v26 = vadd.f32 %v3268_v5, %v1983_v37  ;;  %v5592_v36 = vmax.f32 %v2154_v63, %v5547_v54 }
 0x14f   :  { %v5586_v30 = vpop.eup %3271  ;;  %3297 = vrcp.f32 %v1990_v57  ;;  %v2190_v53 = vmul.f32 1.442695, %v2164_v61  ;;  %v5597_v14 = vmax.f32 %v2156_v6, %v5557_v34  ;;  %v2167_v17 = vsub.f32 %v5522_v51, %v2149_v18 }
 0x150   :  { %v3274_v21 = vpop.eup %3273  ;;  %v1984_v43 = vadd.f32 %v5586_v30, %v5577_v55  ;;  %3299 = vpow2.f32 %v2186_v15  ;;  %v5603_v4 = vmax.f32 %v2158_v41, %v5561_v19  ;;  %v2168_v63 = vsub.f32 %v5415_v25, %v2151_v2 }
 0x151   :  { %v5600_v50 = vpop.eup %3275  ;;  %3301 = vrcp.f32 %v1991_v26  ;;  %v2192_v13 = vmul.f32 1.442695, %v2165_v32  ;;  %v5609_v27 = vmax.f32 %v2160_v52, %v5568_v24  ;;  %v2194_v6 = vmul.f32 1.442695, %v2166_v29 }
 0x152   :  { %v5606_v39 = vpop.eup %3277  ;;  %v1992_v10 = vadd.f32 %v3274_v21, %v1984_v43  ;;  %3303 = vpow2.f32 %v2188_v45  ;;  %v2169_v18 = vsub.f32 %v5446_v11, %v2151_v2  ;;  %v2170_v41 = vsub.f32 %v5536_v28, %v2151_v2 }
 0x153   :  { %v3280_v33 = vpop.eup %3279  ;;  %v1985_v51 = vadd.f32 %v5606_v39, %v5600_v50  ;;  %3305 = vpow2.f32 %v2190_v53  ;;  %v2171_v25 = vsub.f32 %v5420_v20, %v5583_v56  ;;  %v2172_v52 = vsub.f32 %v5449_v60, %v5583_v56 }
 0x154   :  { %v5615_v44 = vpop.eup %3281  ;;  %3307 = vrcp.f32 %v1992_v10  ;;  %v2196_v48 = vmul.f32 1.442695, %v2167_v17  ;;  %v2173_v9 = vsub.f32 %v5540_v1, %v5583_v56  ;;  %v2198_v11 = vmul.f32 1.442695, %v2168_v63 }
 0x155   :  { %v5621_v23 = vpop.eup %3283  ;;  %v1993_v49 = vadd.f32 %v3280_v33, %v1985_v51  ;;  %3309 = vpow2.f32 %v2192_v13  ;;  %v2174_v57 = vsub.f32 %v5423_v35, %v5592_v36  ;;  %v2175_v20 = vsub.f32 %v5452_v62, %v5592_v36  ;;  %v6642_v51 = vld [vmem:[#allocation121_spill] sm:$0xff] }
 0x156   :  { %v3286_v28 = vpop.eup %3285  ;;  %v1986_v61 = vadd.f32 %v5621_v23, %v5615_v44  ;;  %3311 = vpow2.f32 %v2194_v6  ;;  %v2176_v31 = vsub.f32 %v5547_v54, %v5592_v36  ;;  %v2177_v1 = vsub.f32 %v5426_v0, %v5597_v14 }
 0x157   :  { %v5631_v60 = vpop.eup %3287  ;;  %3313 = vrcp.f32 %v1993_v49  ;;  %v2200_v15 = vmul.f32 1.442695, %v2169_v18  ;;  %v2178_v35 = vsub.f32 %v5454_v40, %v5597_v14  ;;  %v2202_v2 = vmul.f32 1.442695, %v2170_v41  ;;  %v6643_v18 = vld [vmem:[#allocation122_spill] sm:$0xff] }
 0x158   :  { %v5637_v5 = vpop.eup %3289  ;;  %v1994_v37 = vadd.f32 %v3286_v28, %v1986_v61  ;;  %3315 = vpow2.f32 %v2196_v48  ;;  %v2179_v56 = vsub.f32 %v5557_v34, %v5597_v14  ;;  %v2180_v54 = vsub.f32 %v5429_v58, %v5603_v4  ;;  %v6645_v48 = vld [vmem:[#allocation124_spill] sm:$0xff] }
 0x159   :  { %v3292_v62 = vpop.eup %3291  ;;  %v1987_v32 = vadd.f32 %v5637_v5, %v5631_v60  ;;  %3317 = vpow2.f32 %v2198_v11  ;;  %v2181_v29 = vsub.f32 %v5458_v59, %v5603_v4  ;;  %v2182_v40 = vsub.f32 %v5561_v19, %v5603_v4  ;;  %v6646_v28 = vld [vmem:[#allocation56_spill] sm:$0xff] }
 0x15a   :  { %v5647_v0 = vpop.eup %3293  ;;  %3319 = vrcp.f32 %v1994_v37  ;;  %v2204_v45 = vmul.f32 1.442695, %v2171_v25  ;;  %v2183_v34 = vsub.f32 %v5432_v46, %v5609_v27  ;;  %v2206_v53 = vmul.f32 1.442695, %v2172_v52  ;;  %v6644_v25 = vld [vmem:[#allocation123_spill] sm:$0xff] }
 0x15b   :  { %v5653_v26 = vpop.eup %3295  ;;  %v1995_v36 = vadd.f32 %v3292_v62, %v1987_v32  ;;  %3321 = vpow2.f32 %v2200_v15  ;;  %v2184_v21 = vsub.f32 %v5476_v42, %v5609_v27  ;;  %v2185_v59 = vsub.f32 %v5568_v24, %v5609_v27  ;;  %v6648_v15 = vld [vmem:[#allocation58_spill] sm:$0xff] }
 0x15c   :  { %v5657_v58 = vpop.eup %3297  ;;  %3323 = vpow2.f32 %v2202_v2  ;;  %v2208_v43 = vmul.f32 1.442695, %v2173_v9  ;;  %v2210_v14 = vmul.f32 1.442695, %v2174_v57  ;;  %v2212_v17 = vmul.f32 1.442695, %v2175_v20 }
 0x15d   :  { %v5663_v19 = vpop.eup %3299  ;;  %3325 = vrcp.f32 %v1995_v36  ;;  %v2214_v4 = vmul.f32 1.442695, %v2176_v31  ;;  %v2216_v46 = vmul.f32 1.442695, %v2177_v1  ;;  %v2218_v13 = vmul.f32 1.442695, %v2178_v35 }
 0x15e   :  { %v3302_v63 = vpop.eup %3301  ;;  %3327 = vpow2.f32 %v2204_v45  ;;  %v2220_v10 = vmul.f32 1.442695, %v2179_v56  ;;  %v2222_v42 = vmul.f32 1.442695, %v2180_v54  ;;  %v2224_v33 = vmul.f32 1.442695, %v2181_v29 }
 0x15f   :  { %v5665_v6 = vpop.eup %3303  ;;  %3329 = vpow2.f32 %v2206_v53  ;;  %v1699_v24 = vsub.f32 0.0, %v6642_v51  ;;  %v1700_v41 = vsub.f32 0.0, %v6643_v18  ;;  %v6339_v52 = vsub.f32 0.0, %v6644_v25  ;;  %v6647_v57 = vld [vmem:[#allocation57_spill] sm:$0xff]  ;;  %v6649_v35 = vld [vmem:[#allocation59_spill] sm:$0xff]  ;;  %v6650_v54 = vld [vmem:[#allocation60_spill] sm:$0xff] }
 0x160   :  { %v3306_v27 = vpop.eup %3305  ;;  %3331 = vpow2.f32 %v2208_v43  ;;  %v6336_v49 = vsub.f32 0.0, %v6645_v48  ;;  %v2226_v11 = vmul.f32 1.442695, %v2182_v40  ;;  %v6334_v61 = vsub.f32 0.0, %v6646_v28 }
 0x161   :  { %v5671_v9 = vpop.eup %3307  ;;  %3333 = vpow2.f32 %v2210_v14  ;;  %v6335_v20 = vsub.f32 0.0, %v6647_v57  ;;  %v2228_v1 = vmul.f32 1.442695, %v2183_v34  ;;  %v6337_v37 = vsub.f32 0.0, %v6648_v15 }
 0x162   :  { %v5675_v31 = vpop.eup %3309  ;;  %3335 = vpow2.f32 %v2212_v17  ;;  %v6338_v2 = vsub.f32 0.0, %v6649_v35  ;;  %v2230_v32 = vmul.f32 1.442695, %v2184_v21  ;;  %v2232_v56 = vmul.f32 1.442695, %v2185_v59 }
 0x163   :  { %v5679_v62 = vpop.eup %3311  ;;  %3337 = vpow2.f32 %v2214_v4  ;;  %v1711_v29 = vmul.f32 %v6650_v54, %v1699_v24  ;;  %v1712_v45 = vmul.f32 %v6650_v54, %v1700_v41  ;;  %v1713_v36 = vmul.f32 %v6650_v54, %v6339_v52 }
 0x164   :  { %v5684_v40 = vpop.eup %3313  ;;  %3339 = vpow2.f32 %v2216_v46  ;;  %v1714_v34 = vmul.f32 %v6650_v54, %v6336_v49  ;;  %v2234_v21 = vadd.f32 %v5665_v6, %v5663_v19  ;;  %v1715_v59 = vmul.f32 %v6650_v54, %v6334_v61 }
 0x165   :  { %v3316_v53 = vpop.eup %3315  ;;  %3341 = vpow2.f32 %v2218_v13  ;;  %v1716_v43 = vmul.f32 %v6650_v54, %v6335_v20  ;;  %v2235_v17 = vadd.f32 %v5679_v62, %v5675_v31  ;;  %v1717_v4 = vmul.f32 %v6650_v54, %v6337_v37 }
 0x166   :  { %v5703_v14 = vpop.eup %3317  ;;  %3343 = vpow2.f32 %v2220_v10  ;;  %v1718_v46 = vmul.f32 %v6650_v54, %v6338_v2  ;;  %v5717_v61 = vmul.f32 %v5647_v0, %v5505_v16  ;;  %v5721_v10 = vmul.f32 %v5647_v0, %v5510_v8 }
 0x167   :  { %v5713_v13 = vpop.eup %3319  ;;  %3345 = vpow2.f32 %v2222_v42  ;;  %v1719_v20 = vmul.f32 1.442695, %v1711_v29  ;;  %v5727_v37 = vmul.f32 %v5653_v26, %v5516_v12  ;;  %v5731_v54 = vmul.f32 %v5657_v58, %v5532_v38 }
 0x168   :  { %v5723_v49 = vpop.eup %3321  ;;  %v5735_v16 = vmul.f32 %v5653_v26, %v5524_v22  ;;  %3347 = vpow2.f32 %v2224_v33  ;;  %v5739_v8 = vmul.f32 %v5657_v58, %v5543_v3  ;;  %v2242_v12 = vadd.f32 %v3306_v27, %v2234_v21 }
 0x169   :  { %v3324_v2 = vpop.eup %3323  ;;  %3349 = vpow2.f32 %v2226_v11  ;;  %v2236_v0 = vadd.f32 %v5723_v49, %v5703_v14  ;;  %v5746_v38 = vmul.f32 %v3302_v63, %v5553_v7  ;;  %v5749_v29 = vmul.f32 %v3302_v63, %v5564_v47 }
 0x16a   :  { %v5743_v42 = vpop.eup %3325  ;;  %3351 = vpow2.f32 %v2228_v1  ;;  %v2243_v22 = vadd.f32 %v3316_v53, %v2235_v17  ;;  %v1721_v58 = vmul.f32 1.442695, %v1712_v45  ;;  %v1723_v33 = vmul.f32 1.442695, %v1713_v36 }
 0x16b   :  { %v5751_v26 = vpop.eup %3327  ;;  %3353 = vpow2.f32 %v2230_v32  ;;  %v2244_v3 = vadd.f32 %v3324_v2, %v2236_v0  ;;  %v5757_v27 = vadd.f32 %v5721_v10, %v5717_v61  ;;  %v5761_v7 = vadd.f32 %v5735_v16, %v5727_v37  ;;  %v1742_v32 = vpop.permute.xlu0 %1741 }
 0x16c   :  { %v5753_v11 = vpop.eup %3329  ;;  %3355 = vpow2.f32 %v2232_v56  ;;  %v1725_v47 = vmul.f32 1.442695, %v1714_v34  ;;  %v5765_v1 = vadd.f32 %v5739_v8, %v5731_v54  ;;  %v1727_v45 = vmul.f32 1.442695, %v1715_v59 }
 0x16d   :  { %v3332_v63 = vpop.eup %3331  ;;  %v2237_v2 = vadd.f32 %v5753_v11, %v5751_v26  ;;  %3357 = vrcp.f32 %v2242_v12  ;;  %v5773_v53 = vadd.f32 %v5749_v29, %v5746_v38  ;;  %v1729_v56 = vmul.f32 1.442695, %v1716_v43 }
 0x16e   :  { %v5769_v36 = vpop.eup %3333  ;;  %3359 = vrcp.f32 %v2243_v22  ;;  %v1731_v34 = vmul.f32 1.442695, %v1717_v4  ;;  %v5779_v17 = vmul.f32 %v5671_v9, %v5577_v55  ;;  %v5783_v0 = vmul.f32 %v5671_v9, %v5586_v30 }
 0x16f   :  { %v5775_v21 = vpop.eup %3335  ;;  %v2245_v59 = vadd.f32 %v3332_v63, %v2237_v2  ;;  %3361 = vrcp.f32 %v2244_v3  ;;  %v1733_v22 = vmul.f32 1.442695, %v1718_v46  ;;  %v1744_v43 = vmul.f32 %v1742_v32, %v1699_v24 }
 0x170   :  { %v3338_v12 = vpop.eup %3337  ;;  %v2238_v52 = vadd.f32 %v5775_v21, %v5769_v36  ;;  %3363 = vpow2.f32 %v1719_v20  ;;  %v1745_v55 = vmul.f32 %v1742_v32, %v1700_v41  ;;  %v6651_v30 = vsub.f32 0.0, %v6644_v25 }
 0x171   :  { %v5789_v4 = vpop.eup %3339  ;;  %3365 = vrcp.f32 %v2245_v59  ;;  %v6652_v3 = vsub.f32 0.0, %v6645_v48  ;;  %v5801_v20 = vmul.f32 %v5684_v40, %v5600_v50  ;;  %v5805_v51 = vmul.f32 %v5684_v40, %v5606_v39 }
 0x172   :  { %v1746_v9 = vmul.f32 %v1742_v32, %v6651_v30  ;;  %v5797_v2 = vpop.eup %3341  ;;  %v2246_v24 = vadd.f32 %v3338_v12, %v2238_v52  ;;  %3367 = vpow2.f32 %v1721_v58  ;;  %v5809_v41 = vadd.f32 %v5783_v0, %v5779_v17 }
 0x173   :  { %v1747_v63 = vmul.f32 %v1742_v32, %v6652_v3  ;;  %v3344_v18 = vpop.eup %3343  ;;  %v2239_v25 = vadd.f32 %v5797_v2, %v5789_v4  ;;  %3369 = vpow2.f32 %v1723_v33  ;;  %v6653_v48 = vsub.f32 0.0, %v6646_v28 }
 0x174   :  { %v5815_v50 = vpop.eup %3345  ;;  %3371 = vrcp.f32 %v2246_v24  ;;  %v6654_v39 = vsub.f32 0.0, %v6647_v57  ;;  %v6655_v52 = vsub.f32 0.0, %v6648_v15  ;;  %v6656_v59 = vsub.f32 0.0, %v6649_v35 }
 0x175   :  { %v1748_v46 = vmul.f32 %v1742_v32, %v6653_v48  ;;  %v5823_v30 = vpop.eup %3347  ;;  %v5827_v33 = vmul.f32 %v5713_v13, %v5615_v44  ;;  %v5831_v28 = vmul.f32 %v5713_v13, %v5621_v23  ;;  %v2247_v3 = vadd.f32 %v3344_v18, %v2239_v25 }
 0x176   :  { %v1749_v40 = vmul.f32 %v1742_v32, %v6654_v39  ;;  %v1750_v58 = vmul.f32 %v1742_v32, %v6655_v52  ;;  %v1751_v12 = vmul.f32 %v1742_v32, %v6656_v59  ;;  %3373 = vpow2.f32 %v1725_v47  ;;  %v3350_v57 = vpop.eup %3349 }
 0x177   :  { %v5835_v15 = vadd.f32 %v5805_v51, %v5801_v20  ;;  %v2240_v35 = vadd.f32 %v5823_v30, %v5815_v50  ;;  %3375 = vpow2.f32 %v1727_v45  ;;  %v1752_v32 = vmul.f32 1.442695, %v1744_v43  ;;  %v5839_v24 = vpop.eup %3351 }
 0x178   :  { %3377 = vrcp.f32 %v2247_v3  ;;  %v1754_v44 = vmul.f32 1.442695, %v1745_v55  ;;  %v1756_v48 = vmul.f32 1.442695, %v1746_v9  ;;  %v1758_v39 = vmul.f32 1.442695, %v1747_v63  ;;  %v5841_v23 = vpop.eup %3353 }
 0x179   :  { %v5845_v13 = vmul.f32 %v5743_v42, %v5631_v60  ;;  %v5849_v47 = vmul.f32 %v5743_v42, %v5637_v5  ;;  %v2248_v18 = vadd.f32 %v3350_v57, %v2240_v35  ;;  %3379 = vpow2.f32 %v1729_v56  ;;  %v3356_v45 = vpop.eup %3355 }
 0x17a   :  { %v5853_v43 = vadd.f32 %v5831_v28, %v5827_v33  ;;  %v2241_v55 = vadd.f32 %v5841_v23, %v5839_v24  ;;  %3381 = vpow2.f32 %v1731_v34  ;;  %v1760_v9 = vmul.f32 1.442695, %v1748_v46  ;;  %v3358_v63 = vpop.eup %3357 }
 0x17b   :  { %3383 = vrcp.f32 %v2248_v18  ;;  %v1762_v60 = vmul.f32 1.442695, %v1749_v40  ;;  %v1764_v25 = vmul.f32 1.442695, %v1750_v58  ;;  %v1766_v52 = vmul.f32 1.442695, %v1751_v12  ;;  %v3360_v59 = vpop.eup %3359  ;;  %v5883_v58 = vpop.permute.xlu1 %2348 }
 0x17c   :  { %v2249_v5 = vadd.f32 %v3356_v45, %v2241_v55  ;;  %v5858_v42 = vmul.f32 %v3358_v63, %v5663_v19  ;;  %v5861_v56 = vmul.f32 %v3358_v63, %v5665_v6  ;;  %3385 = vpow2.f32 %v1733_v22  ;;  %v3362_v3 = vpop.eup %3361 }
 0x17d   :  { %v5865_v57 = vadd.f32 %v5849_v47, %v5845_v13  ;;  %v5868_v34 = vmul.f32 %v3360_v59, %v5675_v31  ;;  %v5871_v46 = vmul.f32 %v3360_v59, %v5679_v62  ;;  %3387 = vpow2.f32 %v1752_v32  ;;  %v3364_v40 = vpop.eup %3363 }
 0x17e   :  { %3389 = vrcp.f32 %v2249_v5  ;;  %v5874_v19 = vmul.f32 %v3362_v3, %v5703_v14  ;;  %v5877_v6 = vmul.f32 %v3362_v3, %v5723_v49  ;;  %v5881_v22 = vadd.f32 %v5861_v56, %v5858_v42  ;;  %v3366_v31 = vpop.eup %3365  ;;  %2666 = vst [vmem:[#allocation2] sm:$0xff] %v3364_v40 }
 0x17f   :  { %v5887_v62 = vadd.f32 %v5871_v46, %v5868_v34  ;;  %3391 = vpow2.f32 %v1754_v44  ;;  %v2274_v12 = vsub.f32 1.0, %v3364_v40  ;;  %v5890_v35 = vmul.f32 %v3364_v40, %v5883_v58  ;;  %v5892_v14 = vpop.eup %3367 }
 0x180   :  { %v5895_v49 = vmul.f32 %v3366_v31, %v5751_v26  ;;  %v5898_v32 = vmul.f32 %v3366_v31, %v5753_v11  ;;  %v5902_v18 = vadd.f32 %v5877_v6, %v5874_v19  ;;  %3393 = vpow2.f32 %v1756_v48  ;;  %v5904_v45 = vpop.eup %3369  ;;  %2667 = vst [vmem:[#allocation2 + $0x8] sm:$0xff] %v5892_v14 }
 0x181   :  { %3395 = vpow2.f32 %v1758_v39  ;;  %v2275_v44 = vsub.f32 1.0, %v5892_v14  ;;  %v2290_v55 = vmul.f32 %v2274_v12, %v5721_v10  ;;  %v2298_v63 = vmul.f32 %v2274_v12, %v5717_v61  ;;  %v3372_v26 = vpop.eup %3371  ;;  %2668 = vst [vmem:[#allocation2 + $0x10] sm:$0xff] %v5904_v45 }
 0x182   :  { %v5912_v11 = vadd.f32 %v5898_v32, %v5895_v49  ;;  %3397 = vpow2.f32 %v1760_v9  ;;  %v2276_v59 = vsub.f32 1.0, %v5904_v45  ;;  %v5916_v48 = vmul.f32 %v5757_v27, %v2274_v12 }
 0x183   :  { %v5919_v39 = vpop.eup %3373  ;;  %v5922_v10 = vmul.f32 %v3372_v26, %v5769_v36  ;;  %v5925_v61 = vmul.f32 %v3372_v26, %v5775_v21  ;;  %3399 = vpow2.f32 %v1762_v60  ;;  %v2291_v5 = vmul.f32 %v2275_v44, %v5735_v16  ;;  %2674 = vst [vmem:[#allocation3] sm:$0xff] %v2298_v63  ;;  %2682 = vst [vmem:[#allocation4] sm:$0xff] %v2290_v55 }
 0x184   :  { %v5928_v9 = vpop.eup %3375  ;;  %3401 = vpow2.f32 %v1764_v25  ;;  %v2277_v27 = vsub.f32 1.0, %v5919_v39  ;;  %v2292_v3 = vmul.f32 %v2276_v59, %v5739_v8  ;;  %v2299_v40 = vmul.f32 %v2275_v44, %v5727_v37  ;;  %2669 = vst [vmem:[#allocation2 + $0x18] sm:$0xff] %v5919_v39 }
 0x185   :  { %v3378_v36 = vpop.eup %3377  ;;  %v5936_v21 = vadd.f32 %v5925_v61, %v5922_v10  ;;  %3403 = vpow2.f32 %v1766_v52  ;;  %v2278_v16 = vsub.f32 1.0, %v5928_v9  ;;  %v2300_v60 = vmul.f32 %v2276_v59, %v5731_v54  ;;  %2670 = vst [vmem:[#allocation2 + $0x20] sm:$0xff] %v5928_v9  ;;  %2683 = vst [vmem:[#allocation4 + $0x8] sm:$0xff] %v2291_v5 }
 0x186   :  { %v5941_v25 = vpop.eup %3379  ;;  %v5944_v8 = vmul.f32 %v3378_v36, %v5789_v4  ;;  %v5947_v37 = vmul.f32 %v3378_v36, %v5797_v2  ;;  %v2293_v31 = vmul.f32 %v2277_v27, %v5749_v29  ;;  %v2301_v12 = vmul.f32 %v2277_v27, %v5746_v38  ;;  %2675 = vst [vmem:[#allocation3 + $0x8] sm:$0xff] %v2299_v40 }
 0x187   :  { %2684 = vst [vmem:[#allocation4 + $0x10] sm:$0xff] %v2292_v3  ;;  %v5951_v52 = vpop.eup %3381  ;;  %v2279_v54 = vsub.f32 1.0, %v5941_v25  ;;  %v2294_v55 = vmul.f32 %v2278_v16, %v5783_v0  ;;  %v2302_v63 = vmul.f32 %v2278_v16, %v5779_v17  ;;  %v2339_v4 = vmul.f32 %v5761_v7, %v2275_v44  ;;  %2671 = vst [vmem:[#allocation2 + $0x28] sm:$0xff] %v5941_v25 }
 0x188   :  { %2676 = vst [vmem:[#allocation3 + $0x10] sm:$0xff] %v2300_v60  ;;  %v3384_v2 = vpop.eup %3383  ;;  %v5960_v29 = vadd.f32 %v5947_v37, %v5944_v8  ;;  %v2280_v38 = vsub.f32 1.0, %v5951_v52  ;;  %v2340_v26 = vmul.f32 %v5765_v1, %v2276_v59  ;;  %v5965_v5 = vmul.f32 %v5773_v53, %v2277_v27  ;;  %2672 = vst [vmem:[#allocation2 + $0x30] sm:$0xff] %v5951_v52 }
 0x189   :  { %2677 = vst [vmem:[#allocation3 + $0x18] sm:$0xff] %v2301_v12  ;;  %2685 = vst [vmem:[#allocation4 + $0x18] sm:$0xff] %v2293_v31  ;;  %v5968_v7 = vpop.eup %3385  ;;  %v5971_v17 = vmul.f32 %v3384_v2, %v5815_v50  ;;  %v5974_v0 = vmul.f32 %v3384_v2, %v5823_v30  ;;  %v2295_v44 = vmul.f32 %v2279_v54, %v5805_v51 }
 0x18a   :  { %v2303_v3 = vmul.f32 %v2279_v54, %v5801_v20  ;;  %2678 = vst [vmem:[#allocation3 + $0x20] sm:$0xff] %v2302_v63  ;;  %2686 = vst [vmem:[#allocation4 + $0x20] sm:$0xff] %v2294_v55  ;;  %v5978_v1 = vpop.eup %3387  ;;  %v2281_v53 = vsub.f32 1.0, %v5968_v7  ;;  %v2296_v59 = vmul.f32 %v2280_v38, %v5831_v28  ;;  %v2304_v27 = vmul.f32 %v2280_v38, %v5827_v33 }
 0x18b   :  { %v5984_v50 = vmul.f32 %v5809_v41, %v2278_v16  ;;  %2673 = vst [vmem:[#allocation2 + $0x38] sm:$0xff] %v5968_v7  ;;  %v3390_v30 = vpop.eup %3389  ;;  %v5989_v51 = vadd.f32 %v5974_v0, %v5971_v17  ;;  %v5992_v20 = vsub.f32 1.0, %v5978_v1  ;;  %v5995_v40 = vmul.f32 %v5835_v15, %v2279_v54  ;;  %2687 = vst [vmem:[#allocation4 + $0x28] sm:$0xff] %v2295_v44 }
 0x18c   :  { %v5998_v28 = vmul.f32 %v5853_v43, %v2280_v38  ;;  %2679 = vst [vmem:[#allocation3 + $0x28] sm:$0xff] %v2303_v3  ;;  %v6000_v41 = vpop.eup %3391  ;;  %v2265_v33 = vmul.f32 %v3390_v30, %v5839_v24  ;;  %v2273_v36 = vmul.f32 %v3390_v30, %v5841_v23  ;;  %v2297_v16 = vmul.f32 %v2281_v53, %v5849_v47 }
 0x18d   :  { %v2305_v60 = vmul.f32 %v2281_v53, %v5845_v13  ;;  %2680 = vst [vmem:[#allocation3 + $0x30] sm:$0xff] %v2304_v27  ;;  %2688 = vst [vmem:[#allocation4 + $0x30] sm:$0xff] %v2296_v59  ;;  %v6006_v31 = vpop.eup %3393  ;;  %v6009_v15 = vsub.f32 1.0, %v6000_v41  ;;  %v2306_v43 = vmul.f32 %v5992_v20, %v5861_v56  ;;  %v2314_v12 = vmul.f32 %v5992_v20, %v5858_v42 }
 0x18e   :  { %v2345_v24 = vmul.f32 %v5865_v57, %v2281_v53  ;;  %v6016_v23 = vpop.eup %3395  ;;  %v6018_v47 = vadd.f32 %v2273_v36, %v2265_v33  ;;  %v6021_v13 = vsub.f32 1.0, %v6006_v31  ;;  %v6025_v54 = vmul.f32 %v5883_v58, %v5916_v48  ;;  %2689 = vst [vmem:[#allocation4 + $0x38] sm:$0xff] %v2297_v16 }
 0x18f   :  { %v6028_v55 = vmul.f32 %v5883_v58, %v2339_v4  ;;  %2681 = vst [vmem:[#allocation3 + $0x38] sm:$0xff] %v2305_v60  ;;  %v6030_v56 = vpop.eup %3397  ;;  %v6033_v42 = vsub.f32 1.0, %v6016_v23  ;;  %v2307_v57 = vmul.f32 %v6009_v15, %v5871_v46  ;;  %v2315_v63 = vmul.f32 %v6009_v15, %v5868_v34  ;;  %2690 = vst [vmem:[#allocation5] sm:$0xff] %v2306_v43 }
 0x190   :  { %v2322_v2 = vadd.f32 %v5978_v1, %v2314_v12  ;;  %v6040_v48 = vpop.eup %3399  ;;  %v6043_v4 = vsub.f32 1.0, %v6030_v56  ;;  %v2308_v38 = vmul.f32 %v6021_v13, %v5877_v6  ;;  %v2316_v44 = vmul.f32 %v6021_v13, %v5874_v19 }
 0x191   :  { %v2353_v3 = vmul.f32 %v5883_v58, %v2340_v26  ;;  %v6050_v46 = vpop.eup %3401  ;;  %v6053_v34 = vsub.f32 1.0, %v6040_v48  ;;  %v2309_v53 = vmul.f32 %v6033_v42, %v5898_v32  ;;  %v2317_v59 = vmul.f32 %v6033_v42, %v5895_v49  ;;  %2691 = vst [vmem:[#allocation5 + $0x8] sm:$0xff] %v2307_v57 }
 0x192   :  { %v2323_v27 = vadd.f32 %v6000_v41, %v2315_v63  ;;  %2698 = vst [vmem:[#allocation6] sm:$0xff] %v2322_v2  ;;  %v6060_v6 = vpop.eup %3403  ;;  %v6063_v19 = vsub.f32 1.0, %v6050_v46  ;;  %v2310_v26 = vmul.f32 %v6043_v4, %v5925_v61  ;;  %v2318_v30 = vmul.f32 %v6043_v4, %v5922_v10  ;;  %2692 = vst [vmem:[#allocation5 + $0x10] sm:$0xff] %v2308_v38 }
 0x193   :  { %6657 = vst [vmem:[#allocation107_spill] sm:$0xff] %v6060_v6  ;;  %v2324_v32 = vadd.f32 %v6006_v31, %v2316_v44  ;;  %v6071_v49 = vsub.f32 1.0, %v6060_v6  ;;  %v2311_v16 = vmul.f32 %v6053_v34, %v5947_v37  ;;  %v2319_v60 = vmul.f32 %v6053_v34, %v5944_v8  ;;  %2693 = vst [vmem:[#allocation5 + $0x18] sm:$0xff] %v2309_v53 }
 0x194   :  { %v2325_v43 = vadd.f32 %v6016_v23, %v2317_v59  ;;  %2699 = vst [vmem:[#allocation6 + $0x8] sm:$0xff] %v2323_v27  ;;  %v2312_v61 = vmul.f32 %v6063_v19, %v5974_v0  ;;  %v2320_v10 = vmul.f32 %v6063_v19, %v5971_v17  ;;  %v2326_v12 = vadd.f32 %v6030_v56, %v2318_v30 }
 0x195   :  { %v2354_v57 = vmul.f32 %v5883_v58, %v5965_v5  ;;  %2694 = vst [vmem:[#allocation5 + $0x20] sm:$0xff] %v2310_v26  ;;  %2700 = vst [vmem:[#allocation6 + $0x10] sm:$0xff] %v2324_v32  ;;  %v2313_v37 = vmul.f32 %v6071_v49, %v2273_v36  ;;  %v2321_v8 = vmul.f32 %v6071_v49, %v2265_v33  ;;  %v2359_v36 = vrot.slane %v6025_v54, 4 }
 0x196   :  { %v2327_v63 = vadd.f32 %v6040_v48, %v2319_v60  ;;  %v2355_v2 = vmul.f32 %v5883_v58, %v5984_v50  ;;  %2695 = vst [vmem:[#allocation5 + $0x28] sm:$0xff] %v2311_v16  ;;  %2701 = vst [vmem:[#allocation6 + $0x18] sm:$0xff] %v2325_v43  ;;  %v2328_v17 = vadd.f32 %v6050_v46, %v2320_v10  ;;  %v2365_v50 = vrot.slane %v6028_v55, 4 }
 0x197   :  { %v2356_v0 = vmul.f32 %v5883_v58, %v5995_v40  ;;  %v2357_v5 = vmul.f32 %v5883_v58, %v5998_v28  ;;  %v2358_v38 = vmul.f32 %v5883_v58, %v2345_v24  ;;  %2696 = vst [vmem:[#allocation5 + $0x30] sm:$0xff] %v2312_v61  ;;  %2702 = vst [vmem:[#allocation6 + $0x20] sm:$0xff] %v2326_v12  ;;  %v2371_v44 = vrot.slane %v2353_v3, 4 }
 0x198   :  { %v2329_v33 = vadd.f32 %v6060_v6, %v2321_v8  ;;  %2697 = vst [vmem:[#allocation5 + $0x38] sm:$0xff] %v2313_v37  ;;  %2703 = vst [vmem:[#allocation6 + $0x28] sm:$0xff] %v2327_v63  ;;  %v2377_v53 = vrot.slane %v2354_v57, 4  ;;  %v2383_v59 = vrot.slane %v2355_v2, 4  ;;  %v2360_v28 = vadd.f32 %v2359_v36, %v6025_v54 }
 0x199   :  { %v2389_v27 = vrot.slane %v2356_v0, 4  ;;  %v2395_v40 = vrot.slane %v2357_v5, 4  ;;  %2704 = vst [vmem:[#allocation6 + $0x30] sm:$0xff] %v2328_v17  ;;  %v2366_v24 = vadd.f32 %v2365_v50, %v6028_v55  ;;  %v2372_v26 = vadd.f32 %v2371_v44, %v2353_v3 }
 0x19a   :  { %v2401_v30 = vrot.slane %v2358_v38, 4  ;;  %2705 = vst [vmem:[#allocation6 + $0x38] sm:$0xff] %v2329_v33  ;;  %v2378_v32 = vadd.f32 %v2377_v53, %v2354_v57  ;;  %v2384_v16 = vadd.f32 %v2383_v59, %v2355_v2  ;;  %v2361_v61 = vrot.slane %v2360_v28, 2 }
 0x19b   :  { %v2390_v60 = vadd.f32 %v2389_v27, %v2356_v0  ;;  %v2396_v43 = vadd.f32 %v2395_v40, %v2357_v5  ;;  %v2367_v10 = vrot.slane %v2366_v24, 2  ;;  %v2373_v12 = vrot.slane %v2372_v26, 2 }
 0x19c   :  { %v2402_v37 = vadd.f32 %v2401_v30, %v2358_v38  ;;  %v2379_v8 = vrot.slane %v2378_v32, 2  ;;  %v2385_v63 = vrot.slane %v2384_v16, 2  ;;  %v2362_v55 = vadd.f32 %v2361_v61, %v2360_v28 }
 0x19d   :  { %v2391_v17 = vrot.slane %v2390_v60, 2  ;;  %v2397_v54 = vrot.slane %v2396_v43, 2  ;;  %v2368_v3 = vadd.f32 %v2367_v10, %v2366_v24  ;;  %v2374_v36 = vadd.f32 %v2373_v12, %v2372_v26 }
 0x19e   :  { %v2403_v33 = vrot.slane %v2402_v37, 2  ;;  %v2380_v57 = vadd.f32 %v2379_v8, %v2378_v32  ;;  %v2386_v2 = vadd.f32 %v2385_v63, %v2384_v16  ;;  %v2363_v50 = vrot.slane %v2362_v55, 1 }
 0x19f   :  { %v2392_v0 = vadd.f32 %v2391_v17, %v2390_v60  ;;  %v2398_v5 = vadd.f32 %v2397_v54, %v2396_v43  ;;  %v2369_v44 = vrot.slane %v2368_v3, 1  ;;  %v2375_v53 = vrot.slane %v2374_v36, 1 }
 0x1a0   :  { %v2404_v38 = vadd.f32 %v2403_v33, %v2402_v37  ;;  %v2381_v59 = vrot.slane %v2380_v57, 1  ;;  %v2387_v27 = vrot.slane %v2386_v2, 1  ;;  %v2364_v6 = vadd.f32 %v2363_v50, %v2362_v55 }
 0x1a1   :  { %v2393_v40 = vrot.slane %v2392_v0, 1  ;;  %v2399_v30 = vrot.slane %v2398_v5, 1  ;;  %v2370_v28 = vadd.f32 %v2369_v44, %v2368_v3  ;;  %v2376_v24 = vadd.f32 %v2375_v53, %v2374_v36 }
 0x1a2   :  { %v2405_v26 = vrot.slane %v2404_v38, 1  ;;  %v2382_v61 = vadd.f32 %v2381_v59, %v2380_v57  ;;  %v2388_v10 = vadd.f32 %v2387_v27, %v2386_v2  ;;  %v2439_v12 = vmul.f32 %v5881_v22, %v5992_v20 }
 0x1a3   :  { %v2394_v32 = vadd.f32 %v2393_v40, %v2392_v0  ;;  %v2400_v16 = vadd.f32 %v2399_v30, %v2398_v5  ;;  %v2416_v43 = vsel %vm2415_vm0, %v2370_v28, %v2364_v6  ;;  %v2440_v37 = vmul.f32 %v5887_v62, %v6009_v15 }
 0x1a4   :  { %v2406_v60 = vadd.f32 %v2405_v26, %v2404_v38  ;;  %v2418_v8 = vsel %vm2417_vm1, %v2376_v24, %v2416_v43  ;;  %v2441_v63 = vmul.f32 %v5902_v18, %v6021_v13  ;;  %v2442_v17 = vmul.f32 %v5912_v11, %v6033_v42 }
 0x1a5   :  { %v2443_v54 = vmul.f32 %v5936_v21, %v6043_v4  ;;  %v2420_v55 = vsel %vm2419_vm2, %v2382_v61, %v2418_v8  ;;  %v2444_v6 = vmul.f32 %v5960_v29, %v6053_v34  ;;  %v2445_v22 = vmul.f32 %v5989_v51, %v6063_v19 }
 0x1a6   :  { %v2446_v62 = vmul.f32 %v6018_v47, %v6071_v49  ;;  %v2422_v20 = vsel %vm2421_vm3, %v2388_v10, %v2420_v55  ;;  %v2447_v18 = vmul.f32 %v2439_v12, %v5883_v58  ;;  %v2448_v11 = vmul.f32 %v2440_v37, %v5883_v58 }
 0x1a7   :  { %v2449_v15 = vmul.f32 %v2441_v63, %v5883_v58  ;;  %v2424_v21 = vsel %vm2423_vm4, %v2394_v32, %v2422_v20  ;;  %v2450_v13 = vmul.f32 %v2442_v17, %v5883_v58  ;;  %v2451_v29 = vmul.f32 %v2443_v54, %v5883_v58 }
 0x1a8   :  { %v2452_v42 = vmul.f32 %v2444_v6, %v5883_v58  ;;  %v2426_v51 = vsel %vm2425_vm5, %v2400_v16, %v2424_v21  ;;  %v2453_v47 = vmul.f32 %v2445_v22, %v5883_v58  ;;  %v2454_v4 = vmul.f32 %v2446_v62, %v5883_v58 }
 0x1a9   :  { %v2455_v34 = vrot.slane %v2447_v18, 4  ;;  %v2428_v19 = vsel %vm2427_vm6, %v2406_v60, %v2426_v51  ;;  %v2461_v49 = vrot.slane %v2448_v11, 4  ;;  %v2467_v3 = vrot.slane %v2449_v15, 4 }
 0x1aa   :  { %v2473_v36 = vrot.slane %v2450_v13, 4  ;;  %2430 = vst [vmem:[#allocation21] sm:$0xff] %v2428_v19  ;;  %v2479_v57 = vrot.slane %v2451_v29, 4  ;;  %v2485_v2 = vrot.slane %v2452_v42, 4  ;;  %v2491_v0 = vrot.slane %v2453_v47, 4 }
 0x1ab   :  { %v2456_v33 = vadd.f32 %v2455_v34, %v2447_v18  ;;  %v2462_v5 = vadd.f32 %v2461_v49, %v2448_v11  ;;  %v2468_v50 = vadd.f32 %v2467_v3, %v2449_v15  ;;  %v2497_v53 = vrot.slane %v2454_v4, 4 }
 0x1ac   :  { %v2474_v44 = vadd.f32 %v2473_v36, %v2450_v13  ;;  %v2480_v59 = vadd.f32 %v2479_v57, %v2451_v29  ;;  %v2486_v27 = vadd.f32 %v2485_v2, %v2452_v42  ;;  %v2492_v40 = vadd.f32 %v2491_v0, %v2453_v47 }
 0x1ad   :  { %v2457_v38 = vrot.slane %v2456_v33, 2  ;;  %v2463_v30 = vrot.slane %v2462_v5, 2  ;;  %v2469_v28 = vrot.slane %v2468_v50, 2  ;;  %v2498_v26 = vadd.f32 %v2497_v53, %v2454_v4 }
 0x1ae   :  { %v2475_v24 = vrot.slane %v2474_v44, 2  ;;  %v2481_v10 = vrot.slane %v2480_v59, 2  ;;  %v2487_v32 = vrot.slane %v2486_v27, 2  ;;  %v2493_v16 = vrot.slane %v2492_v40, 2 }
 0x1af   :  { %v2458_v61 = vadd.f32 %v2457_v38, %v2456_v33  ;;  %v2464_v60 = vadd.f32 %v2463_v30, %v2462_v5  ;;  %v2470_v43 = vadd.f32 %v2469_v28, %v2468_v50  ;;  %v2499_v37 = vrot.slane %v2498_v26, 2 }
 0x1b0   :  { %v2476_v12 = vadd.f32 %v2475_v24, %v2474_v44  ;;  %v2482_v63 = vadd.f32 %v2481_v10, %v2480_v59  ;;  %v2488_v17 = vadd.f32 %v2487_v32, %v2486_v27  ;;  %v2494_v54 = vadd.f32 %v2493_v16, %v2492_v40 }
 0x1b1   :  { %v2459_v8 = vrot.slane %v2458_v61, 1  ;;  %v2465_v55 = vrot.slane %v2464_v60, 1  ;;  %v2471_v6 = vrot.slane %v2470_v43, 1  ;;  %v2500_v62 = vadd.f32 %v2499_v37, %v2498_v26 }
 0x1b2   :  { %v2477_v22 = vrot.slane %v2476_v12, 1  ;;  %v2483_v18 = vrot.slane %v2482_v63, 1  ;;  %v2489_v11 = vrot.slane %v2488_v17, 1  ;;  %v2495_v15 = vrot.slane %v2494_v54, 1 }
 0x1b3   :  { %v2460_v20 = vadd.f32 %v2459_v8, %v2458_v61  ;;  %v2466_v21 = vadd.f32 %v2465_v55, %v2464_v60  ;;  %v2472_v13 = vadd.f32 %v2471_v6, %v2470_v43  ;;  %v2501_v42 = vrot.slane %v2500_v62, 1 }
 0x1b4   :  { %v2478_v29 = vadd.f32 %v2477_v22, %v2476_v12  ;;  %v2484_v51 = vadd.f32 %v2483_v18, %v2482_v63  ;;  %v2490_v47 = vadd.f32 %v2489_v11, %v2488_v17  ;;  %v2496_v4 = vadd.f32 %v2495_v15, %v2494_v54 }
 0x1b5   :  { %v2521_v34 = vmul.f32 %v5892_v14, %v5883_v58  ;;  %v2502_v19 = vadd.f32 %v2501_v42, %v2500_v62  ;;  %v2511_v49 = vsel %vm2415_vm0, %v2466_v21, %v2460_v20  ;;  %v2522_v3 = vmul.f32 %v5904_v45, %v5883_v58 }
 0x1b6   :  { %v2523_v36 = vmul.f32 %v5919_v39, %v5883_v58  ;;  %v2512_v33 = vsel %vm2417_vm1, %v2472_v13, %v2511_v49  ;;  %v2524_v57 = vmul.f32 %v5928_v9, %v5883_v58  ;;  %v2525_v2 = vmul.f32 %v5941_v25, %v5883_v58 }
 0x1b7   :  { %v2526_v14 = vmul.f32 %v5951_v52, %v5883_v58  ;;  %v2513_v0 = vsel %vm2419_vm2, %v2478_v29, %v2512_v33  ;;  %v2527_v5 = vmul.f32 %v5968_v7, %v5883_v58  ;;  %v2528_v45 = vrot.slane %v5890_v35, 4 }
 0x1b8   :  { %v2534_v50 = vrot.slane %v2521_v34, 4  ;;  %v2514_v39 = vsel %vm2421_vm3, %v2484_v51, %v2513_v0  ;;  %v2540_v44 = vrot.slane %v2522_v3, 4  ;;  %v2546_v53 = vrot.slane %v2523_v36, 4 }
 0x1b9   :  { %v2552_v38 = vrot.slane %v2524_v57, 4  ;;  %v2515_v9 = vsel %vm2423_vm4, %v2490_v47, %v2514_v39  ;;  %v2529_v25 = vadd.f32 %v2528_v45, %v5890_v35  ;;  %v2558_v27 = vrot.slane %v2525_v2, 4 }
 0x1ba   :  { %v2535_v59 = vadd.f32 %v2534_v50, %v2521_v34  ;;  %v2516_v52 = vsel %vm2425_vm5, %v2496_v4, %v2515_v9  ;;  %v2541_v40 = vadd.f32 %v2540_v44, %v2522_v3  ;;  %v2547_v30 = vadd.f32 %v2546_v53, %v2523_v36 }
 0x1bb   :  { %v2553_v28 = vadd.f32 %v2552_v38, %v2524_v57  ;;  %v2517_v7 = vsel %vm2427_vm6, %v2502_v19, %v2516_v52  ;;  %v2530_v24 = vrot.slane %v2529_v25, 2  ;;  %v2559_v61 = vadd.f32 %v2558_v27, %v2525_v2  ;;  %v6658_v38 = vld [vmem:[#allocation107_spill] sm:$0xff] }
 0x1bc   :  { %v2536_v26 = vrot.slane %v2535_v59, 2  ;;  %2519 = vst [vmem:[#allocation22] sm:$0xff] %v2517_v7  ;;  %v2542_v10 = vrot.slane %v2541_v40, 2  ;;  %v2548_v32 = vrot.slane %v2547_v30, 2  ;;  %v2564_v60 = vrot.slane %v2526_v14, 4 }
 0x1bd   :  { %v2554_v16 = vrot.slane %v2553_v28, 2  ;;  %v2531_v43 = vadd.f32 %v2530_v24, %v2529_v25  ;;  %v2560_v35 = vrot.slane %v2559_v61, 2  ;;  %v2570_v37 = vrot.slane %v2527_v5, 4 }
 0x1be   :  { %v2537_v12 = vadd.f32 %v2536_v26, %v2535_v59  ;;  %v2543_v8 = vadd.f32 %v2542_v10, %v2541_v40  ;;  %v2549_v63 = vadd.f32 %v2548_v32, %v2547_v30  ;;  %v2565_v54 = vadd.f32 %v2564_v60, %v2526_v14 }
 0x1bf   :  { %v2555_v17 = vadd.f32 %v2554_v16, %v2553_v28  ;;  %v2532_v55 = vrot.slane %v2531_v43, 1  ;;  %v2561_v22 = vadd.f32 %v2560_v35, %v2559_v61  ;;  %v2571_v62 = vadd.f32 %v2570_v37, %v2527_v5 }
 0x1c0   :  { %v2538_v6 = vrot.slane %v2537_v12, 1  ;;  %v2544_v20 = vrot.slane %v2543_v8, 1  ;;  %v2550_v18 = vrot.slane %v2549_v63, 1  ;;  %v2566_v15 = vrot.slane %v2565_v54, 2 }
 0x1c1   :  { %v2556_v11 = vrot.slane %v2555_v17, 1  ;;  %v2533_v21 = vadd.f32 %v2532_v55, %v2531_v43  ;;  %v2562_v29 = vrot.slane %v2561_v22, 1  ;;  %v2572_v42 = vrot.slane %v2571_v62, 2 }
 0x1c2   :  { %v2539_v13 = vadd.f32 %v2538_v6, %v2537_v12  ;;  %v2545_v51 = vadd.f32 %v2544_v20, %v2543_v8  ;;  %v2551_v47 = vadd.f32 %v2550_v18, %v2549_v63  ;;  %v2567_v34 = vadd.f32 %v2566_v15, %v2565_v54 }
 0x1c3   :  { %v2557_v4 = vadd.f32 %v2556_v11, %v2555_v17  ;;  %v2563_v19 = vadd.f32 %v2562_v29, %v2561_v22  ;;  %v2573_v49 = vadd.f32 %v2572_v42, %v2571_v62  ;;  %v2593_v36 = vmul.f32 %v5978_v1, %v5883_v58 }
 0x1c4   :  { %v2584_v3 = vsel %vm2415_vm0, %v2539_v13, %v2533_v21  ;;  %v2568_v33 = vrot.slane %v2567_v34, 1  ;;  %v2594_v2 = vmul.f32 %v6000_v41, %v5883_v58  ;;  %v2595_v14 = vmul.f32 %v6006_v31, %v5883_v58 }
 0x1c5   :  { %v2585_v57 = vsel %vm2417_vm1, %v2545_v51, %v2584_v3  ;;  %v2574_v0 = vrot.slane %v2573_v49, 1  ;;  %v2596_v45 = vmul.f32 %v6016_v23, %v5883_v58  ;;  %v2597_v50 = vmul.f32 %v6030_v56, %v5883_v58 }
 0x1c6   :  { %v2586_v5 = vsel %vm2419_vm2, %v2551_v47, %v2585_v57  ;;  %v2569_v39 = vadd.f32 %v2568_v33, %v2567_v34  ;;  %v2598_v44 = vmul.f32 %v6040_v48, %v5883_v58  ;;  %v2599_v41 = vmul.f32 %v6050_v46, %v5883_v58 }
 0x1c7   :  { %v2587_v1 = vsel %vm2421_vm3, %v2557_v4, %v2586_v5  ;;  %v2575_v53 = vadd.f32 %v2574_v0, %v2573_v49  ;;  %v2600_v9 = vmul.f32 %v6658_v38, %v5883_v58  ;;  %v2601_v25 = vrot.slane %v2593_v36, 4 }
 0x1c8   :  { %v2588_v31 = vsel %vm2423_vm4, %v2563_v19, %v2587_v1  ;;  %v2607_v59 = vrot.slane %v2594_v2, 4  ;;  %v2613_v56 = vrot.slane %v2595_v14, 4  ;;  %v2619_v27 = vrot.slane %v2596_v45, 4 }
 0x1c9   :  { %v2589_v23 = vsel %vm2425_vm5, %v2569_v39, %v2588_v31  ;;  %v2602_v40 = vadd.f32 %v2601_v25, %v2593_v36  ;;  %v2625_v30 = vrot.slane %v2597_v50, 4  ;;  %v2631_v48 = vrot.slane %v2598_v44, 4 }
 0x1ca   :  { %v2590_v52 = vsel %vm2427_vm6, %v2575_v53, %v2589_v23  ;;  %v2608_v28 = vadd.f32 %v2607_v59, %v2594_v2  ;;  %v2614_v46 = vadd.f32 %v2613_v56, %v2595_v14  ;;  %v2620_v7 = vadd.f32 %v2619_v27, %v2596_v45 }
 0x1cb   :  { %2592 = vst [vmem:[#allocation25] sm:$0xff] %v2590_v52  ;;  %v2637_v24 = vrot.slane %v2599_v41, 4  ;;  %v2603_v26 = vrot.slane %v2602_v40, 2  ;;  %v2626_v61 = vadd.f32 %v2625_v30, %v2597_v50  ;;  %v2632_v10 = vadd.f32 %v2631_v48, %v2598_v44 }
 0x1cc   :  { %v2643_v32 = vrot.slane %v2600_v9, 4  ;;  %v2609_v16 = vrot.slane %v2608_v28, 2  ;;  %v2615_v60 = vrot.slane %v2614_v46, 2  ;;  %v2621_v43 = vrot.slane %v2620_v7, 2 }
 0x1cd   :  { %v2638_v12 = vadd.f32 %v2637_v24, %v2599_v41  ;;  %v2604_v35 = vadd.f32 %v2603_v26, %v2602_v40  ;;  %v2627_v37 = vrot.slane %v2626_v61, 2  ;;  %v2633_v8 = vrot.slane %v2632_v10, 2 }
 0x1ce   :  { %v2644_v63 = vadd.f32 %v2643_v32, %v2600_v9  ;;  %v2610_v17 = vadd.f32 %v2609_v16, %v2608_v28  ;;  %v2616_v54 = vadd.f32 %v2615_v60, %v2614_v46  ;;  %v2622_v55 = vadd.f32 %v2621_v43, %v2620_v7 }
 0x1cf   :  { %v2639_v6 = vrot.slane %v2638_v12, 2  ;;  %v2605_v22 = vrot.slane %v2604_v35, 1  ;;  %v2628_v62 = vadd.f32 %v2627_v37, %v2626_v61  ;;  %v2634_v20 = vadd.f32 %v2633_v8, %v2632_v10 }
 0x1d0   :  { %v2645_v18 = vrot.slane %v2644_v63, 2  ;;  %v2611_v11 = vrot.slane %v2610_v17, 1  ;;  %v2617_v15 = vrot.slane %v2616_v54, 1  ;;  %v2623_v21 = vrot.slane %v2622_v55, 1 }
 0x1d1   :  { %v2640_v13 = vadd.f32 %v2639_v6, %v2638_v12  ;;  %v2606_v29 = vadd.f32 %v2605_v22, %v2604_v35  ;;  %v2629_v42 = vrot.slane %v2628_v62, 1  ;;  %v2635_v34 = vrot.slane %v2634_v20, 1 }
 0x1d2   :  { %v2646_v51 = vadd.f32 %v2645_v18, %v2644_v63  ;;  %v2612_v47 = vadd.f32 %v2611_v11, %v2610_v17  ;;  %v2618_v4 = vadd.f32 %v2617_v15, %v2616_v54  ;;  %v2624_v49 = vadd.f32 %v2623_v21, %v2622_v55 }
 0x1d3   :  { %v2641_v19 = vrot.slane %v2640_v13, 1  ;;  %v2630_v33 = vadd.f32 %v2629_v42, %v2628_v62  ;;  %v2636_v2 = vadd.f32 %v2635_v34, %v2634_v20 }
 0x1d4   :  { %v2647_v3 = vrot.slane %v2646_v51, 1  ;;  %v2657_v36 = vsel %vm2415_vm0, %v2612_v47, %v2606_v29 }
 0x1d5   :  { %v2658_v57 = vsel %vm2417_vm1, %v2618_v4, %v2657_v36  ;;  %v2642_v0 = vadd.f32 %v2641_v19, %v2640_v13 }
 0x1d6   :  { %v2659_v14 = vsel %vm2419_vm2, %v2624_v49, %v2658_v57  ;;  %v2648_v45 = vadd.f32 %v2647_v3, %v2646_v51 }
 0x1d7   :  { %v2660_v5 = vsel %vm2421_vm3, %v2630_v33, %v2659_v14 }
 0x1d8   :  { %v2661_v50 = vsel %vm2423_vm4, %v2636_v2, %v2660_v5 }
 0x1d9   :  { %v2662_v39 = vsel %vm2425_vm5, %v2642_v0, %v2661_v50 }
 0x1da   :  { %v2663_v1 = vsel %vm2427_vm6, %v2648_v45, %v2662_v39 }
 0x1db   :  { %2665 = vst [vmem:[#allocation27] sm:$0xff] %v2663_v1 }
 0x1dc LB: > { %s2724_s19 = ssub.s32 7, %s3608_s6  ;;  %s2725_s20 = ssub.s32 8, %s3608_s6  ;;  %s3608_s6 = sphi %s6185_s6, %s2723_s6  }
 0x1dd   : > { %s3063_s21 = sshll.u32 %s2725_s20, 3  ;;  %s6192_s22 = sshll.u32 %s2724_s19, 3 }
 0x1de   : > { %s2729_s23 = scalar_lea.vmem [#allocation8], %s3063_s21  ;;  %s2738_s24 = scalar_lea.vmem [#allocation5], %s6192_s22 }
 0x1df   : > { %v2730_v44 = vld [vmem:[%s2729_s23] sm:$0xff]  ;;  %s2727_s3 = scalar_lea.vmem [#allocation7], %s3063_s21  ;;  %s2732_s4 = scalar_lea.vmem [#allocation2], %s6192_s22 }
 0x1e0   : > { %v2739_v41 = vld [vmem:[%s2738_s24] sm:$0xff]  ;;  %s2734_s0 = scalar_lea.vmem [#allocation3], %s6192_s22  ;;  %s2740_s2 = scalar_lea.vmem [#allocation6], %s6192_s22 }
 0x1e1   : > { %v2742_v53 = vmul.f32 %v2739_v41, %v2730_v44  ;;  %v2728_v38 = vld [vmem:[%s2727_s3] sm:$0xff]  ;;  %s2760_s25 = scalar_lea.vmem [#allocation9], %s6192_s22  ;;  %s2736_s1 = scalar_lea.vmem [#allocation4], %s6192_s22 }
 0x1e2   : > { %v2733_v9 = vld [vmem:[%s2732_s4] sm:$0xff]  ;;  %s2758_s26 = scalar_lea.vmem [#allocation8], %s6192_s22  ;;  %s2752_s27 = scalar_lea.vmem [#allocation7], %s6192_s22 }
 0x1e3   : > { %v2743_v31 = vsub.f32 1.0, %v2742_v53  ;;  %v2735_v25 = vld [vmem:[%s2734_s0] sm:$0xff]  ;;  %v2746_v59 = vmul.f32 %v2733_v9, %v2728_v38  ;;  %s2723_s6 = sadd.s32 1, %s3608_s6  }
 0x1e4   : > { %v2741_v23 = vld [vmem:[%s2740_s2] sm:$0xff]  ;;  %v2747_v56 = vmul.f32 %v2735_v25, %v2730_v44  ;;  %p2720_p0 = scmp.ge.s32.totalorder %s2723_s6, 8  }
 0x1e5   : > { %3406 = vrcp.f32 %v2743_v31  ;;  %v2754_v27 = vmul.f32 %v2741_v23, %v2741_v23  ;;  %v2737_v46 = vld [vmem:[%s2736_s1] sm:$0xff]  ;;  %v3616_v60 = vmov (%p2720_p0), 0.0   ;;  %v6660_v43 = vld [vmem:[#allocation34_spill] sm:$0xff] (%p2720_p0)  ;;  %s6209_s28 = smov (%p2720_p0), 0  }
 0x1e6   : > { %v2748_v52 = vadd.f32 %v2747_v56, %v2746_v59  ;;  %v6659_v10 = vld [vmem:[#allocation97_spill] sm:$0xff] (%p2720_p0)  ;;  %2780 = vst [vmem:[#allocation11] sm:$0xff] (%p2720_p0), %v3616_v60  ;;  %2789 = vst [vmem:[#allocation16] sm:$0x1] (%p2720_p0), %v3616_v60 }
 0x1e7   : > { %v2755_v40 = vmul.f32 %v2754_v27, %v2730_v44  ;;  %v2771_v32 = vmul.f32 (%p2720_p0), 1361.0, %v6659_v10 }
 0x1e9   :  { %v2775_v12 = vrot.slane (%p2720_p0), %v2771_v32, %v6660_v43 }
 0x1eb   :  { %v2776_v37 = vmul.f32 (%p2720_p0), %v2775_v12, %v5883_v58 }
 0x1ed   :  { %2779 = vst [vmem:[#allocation10] sm:$0xff] (%p2720_p0), %v2776_v37  ;;  %v2782_v17 = vrot.slane (%p2720_p0), %v2776_v37, 4 }
 0x1ef   :  { %v2783_v55 = vadd.f32 (%p2720_p0), %v2782_v17, %v2776_v37 }
 0x1f1   :  { %v2784_v62 = vrot.slane (%p2720_p0), %v2783_v55, 2 }
 0x1f2   : > { %v3407_v30 = vpop.eup %3406 }
 0x1f3   : > { %v2749_v48 = vmul.f32 %v3407_v30, %v2748_v52  ;;  %v2756_v28 = vmul.f32 %v3407_v30, %v2755_v40  ;;  %2761 = vst [vmem:[%s2760_s25] sm:$0xff] %v3407_v30  ;;  %v2785_v11 = vadd.f32 (%p2720_p0), %v2784_v62, %v2783_v55 }
 0x1f5   : > { %v2750_v7 = vmul.f32 %v2749_v48, %v2741_v23  ;;  %v2757_v24 = vadd.f32 %v2756_v28, %v2739_v41  ;;  %2722 = sbr.rel (!%p2720_p0) target bundleno = 476 (0x1dc), region = 149  ;;  %v2786_v13 = vrot.slane (%p2720_p0), %v2785_v11, 1 }
 0x1f7   : > { %v2751_v26 = vadd.f32 %v2750_v7, %v2737_v46  ;;  %2759 = vst [vmem:[%s2758_s26] sm:$0xff] %v2757_v24  ;;  %v2787_v42 = vadd.f32 (%p2720_p0), %v2786_v13, %v2785_v11 }
 0x1f9   : > { %2753 = vst [vmem:[%s2752_s27] sm:$0xff] %v2751_v26  ;;  %2788 = vst [vmem:[#allocation14] sm:$0x1] (%p2720_p0), %v2787_v42 }
 0x200   :  { %v2762_v61 = vld [vmem:[#allocation7] sm:$0xff] }
 0x201   :  { %v2763_v16 = vmul.f32 %v2762_v61, %v5883_v58  ;;  %v2778_v63 = vmul.f32 %v2776_v37, %v2762_v61 }
 0x203   :  { %v2764_v35 = vrot.slane %v2763_v16, 4  ;;  %2781 = vst [vmem:[#allocation12] sm:$0xff] %v2778_v63  ;;  %v2790_v6 = vrot.slane %v2778_v63, 4 }
 0x205   :  { %v2765_v8 = vadd.f32 %v2764_v35, %v2763_v16  ;;  %v2791_v20 = vadd.f32 %v2790_v6, %v2778_v63 }
 0x207   :  { %v2766_v54 = vrot.slane %v2765_v8, 2  ;;  %v2792_v15 = vrot.slane %v2791_v20, 2 }
 0x209   :  { %v2767_v22 = vadd.f32 %v2766_v54, %v2765_v8  ;;  %v2793_v29 = vadd.f32 %v2792_v15, %v2791_v20 }
 0x20b   :  { %v2768_v18 = vrot.slane %v2767_v22, 1  ;;  %v2794_v58 = vrot.slane %v2793_v29, 1 }
 0x20d   :  { %v2769_v21 = vadd.f32 %v2768_v18, %v2767_v22  ;;  %v2795_v51 = vadd.f32 %v2794_v58, %v2793_v29 }
 0x20f   :  { %2770 = vst [vmem:[#allocation24] sm:$0x1] %v2769_v21  ;;  %2796 = vst [vmem:[#allocation18] sm:$0x1] %v2795_v51 }
 0x210 LB: > { %v2803_v47 = vld [vmem:[#allocation10] sm:$0xff]  ;;  %s3065_s29 = sshll.u32 %s3612_s28, 3  ;;  %v2804_v4 = vld [vmem:[#allocation11] sm:$0xff]  ;;  %v2805_v40 = vld [vmem:[#allocation12] sm:$0xff]  ;;  %s3038_s20 = scalar_lea.vmem [#allocation14], %s3612_s28  ;;  %s3612_s28 = sphi %s6209_s28, %s2802_s28  }
 0x211   : > { %s2807_s30 = scalar_lea.vmem [#allocation2], %s3065_s29  ;;  %s2809_s5 = scalar_lea.vmem [#allocation3], %s3065_s29  ;;  %v2834_v59 = vadd.f32 %v2804_v4, %v2803_v47 }
 0x212   : > { %v2808_v34 = vld [vmem:[%s2807_s30] sm:$0xff]  ;;  %s2811_s16 = scalar_lea.vmem [#allocation5], %s3065_s29  ;;  %s2813_s17 = scalar_lea.vmem [#allocation6], %s3065_s29 }
 0x213   : > { %v2810_v19 = vld [vmem:[%s2809_s5] sm:$0xff]  ;;  %v2823_v49 = vmul.f32 %v2808_v34, %v2803_v47  ;;  %s3031_s18 = scalar_lea.vmem [#allocation7], %s3065_s29  ;;  %s2821_s6 = scalar_lea.vmem [#allocation9], %s3065_s29 }
 0x214   : > { %v2812_v3 = vld [vmem:[%s2811_s16] sm:$0xff]  ;;  %v2824_v33 = vmul.f32 %v2810_v19, %v2803_v47  ;;  %v3067_v57 = vld [vmem:[%s3031_s18 + $0x8] sm:$0xff]  ;;  %s3034_s19 = scalar_lea.vmem [#allocation8], %s3065_s29  ;;  %s3040_s21 = scalar_lea.vmem [#allocation16], %s3612_s28 }
 0x215   : > { %v2814_v36 = vld [vmem:[%s2813_s17] sm:$0xff]  ;;  %v2839_v14 = vrot.slane %v2823_v49, 4  ;;  %2871 = vst [vmem:[#allocation10] sm:$0xff] %v2823_v49  ;;  %v2827_v0 = vmul.f32 %v3067_v57, %v2812_v3  ;;  %v3069_v41 = vld [vmem:[%s3034_s19 + $0x8] sm:$0xff]  ;;  %v2831_v38 = vmul.f32 %v3067_v57, %v2823_v49  ;;  %s3042_s22 = scalar_lea.vmem [#allocation18], %s3612_s28  ;;  %s2869_s23 = scalar_lea.vmem [#allocation19], %s3612_s28 }
 0x216   : > { %v2825_v2 = vmul.f32 %v2814_v36, %v2804_v4  ;;  %v2822_v39 = vld [vmem:[%s2821_s6] sm:$0xff]  ;;  %s2802_s28 = sadd.s32 1, %s3612_s28  }
 0x217   : > { %v2840_v45 = vadd.f32 %v2839_v14, %v2823_v49  ;;  %v2828_v50 = vmul.f32 %v2827_v0, %v2823_v49  ;;  %p2799_p1 = scmp.ge.s32.totalorder %s2802_s28, 8  }
 0x218   : > { %v2826_v5 = vadd.f32 %v2825_v2, %v2824_v33  ;;  %s3617_s24 = smov (%p2799_p1), [#allocation16]   ;;  %s3618_s4 = smov (%p2799_p1), [#allocation19]  }
 0x219   : > { %v2841_v1 = vrot.slane %v2840_v45, 2  ;;  %s2891_s3 = sshll.u32 (%p2799_p1), %s3617_s24, 4  ;;  %s2916_s0 = sshll.u32 (%p2799_p1), %s3618_s4, 4  ;;  %s2892_s3 = int_to_ptr.vmem [resolvable:$true] %s2891_s3  ;;  %s2917_s0 = int_to_ptr.vmem [resolvable:$true] %s2916_s0 }
 0x21a   : > { %v2829_v44 = vadd.f32 %v2828_v50, %v2826_v5  ;;  %s3408_s2 = scalar_lea.vmem (%p2799_p1), %s2892_s3, 256  ;;  %p3413_p3 = scmp.lt.s32.totalorder (%p2799_p1), %s2892_s3, %s2892_s3 }
 0x21b   : > { %v2842_v53 = vadd.f32 %v2841_v1, %v2840_v45  ;;  %p3409_p2 = scmp.ne.s32.totalorder (%p2799_p1), %s2892_s3, %s3408_s2  ;;  %p3414_p4 = scmp.lt.s32.totalorder (%p2799_p1), %s3408_s2, %s3408_s2 }
 0x21c   : > { %v2830_v31 = vmul.f32 %v2829_v44, %v2822_v39 }
 0x21d   : > { %v2843_v9 = vrot.slane %v2842_v53, 1  ;;  %p3415_p5 = por (%p2799_p1), %p3414_p4, %p3413_p3 }
 0x21e   : > { %v2847_v25 = vrot.slane %v2830_v31, 4  ;;  %2872 = vst [vmem:[#allocation11] sm:$0xff] %v2830_v31  ;;  %v2832_v23 = vmul.f32 %v3069_v41, %v2830_v31 }
 0x21f   : > { %v2844_v56 = vadd.f32 %v2843_v9, %v2842_v53  ;;  %p3416_p6 = pnand (%p2799_p1), %p3415_p5, %p3409_p2 }
 0x220   : > { %v2848_v27 = vadd.f32 %v2847_v25, %v2830_v31  ;;  %v2833_v52 = vadd.f32 %v2832_v23, %v2831_v38 }
 0x221   : > { %3070 = vst [vmem:[%s3038_s20 + $0x1] sm:$0x1] %v2844_v56 }
 0x222   : > { %v2849_v30 = vrot.slane %v2848_v27, 2  ;;  %v2855_v48 = vrot.slane %v2833_v52, 4  ;;  %v2835_v28 = vadd.f32 %v2834_v59, %v2833_v52  ;;  %2873 = vst [vmem:[#allocation12] sm:$0xff] %v2833_v52 }
 0x224   : > { %v2850_v46 = vadd.f32 %v2849_v30, %v2848_v27  ;;  %v2856_v7 = vadd.f32 %v2855_v48, %v2833_v52  ;;  %v2836_v24 = vsub.f32 %v2835_v28, %v2823_v49 }
 0x226   : > { %v2851_v26 = vrot.slane %v2850_v46, 1  ;;  %v2857_v61 = vrot.slane %v2856_v7, 2  ;;  %v2837_v10 = vsub.f32 %v2836_v24, %v2830_v31 }
 0x228   : > { %v2852_v32 = vadd.f32 %v2851_v26, %v2850_v46  ;;  %v2858_v16 = vadd.f32 %v2857_v61, %v2856_v7  ;;  %v2838_v60 = vsub.f32 %v2837_v10, %v2805_v40 }
 0x22a   : > { %3071 = vst [vmem:[%s3040_s21 + $0x1] sm:$0x1] %v2852_v32  ;;  %v2859_v43 = vrot.slane %v2858_v16, 1  ;;  %v2863_v12 = vrot.slane %v2838_v60, 4 }
 0x22c   : > { %v2860_v35 = vadd.f32 %v2859_v43, %v2858_v16  ;;  %v2864_v37 = vadd.f32 %v2863_v12, %v2838_v60 }
 0x22e   : > { %3072 = vst [vmem:[%s3042_s22 + $0x1] sm:$0x1] %v2860_v35  ;;  %v2865_v8 = vrot.slane %v2864_v37, 2 }
 0x230   : > { %v2866_v63 = vadd.f32 %v2865_v8, %v2864_v37 }
 0x232   : > { %v2867_v17 = vrot.slane %v2866_v63, 1  ;;  %2801 = sbr.rel (!%p2799_p1) target bundleno = 528 (0x210), region = 160 }
 0x234   : > { %v2868_v54 = vadd.f32 %v2867_v17, %v2866_v63 }
 0x236   : > { %2870 = vst [vmem:[%s2869_s23] sm:$0x1] %v2868_v54 }
 0x237   :  { %3419 = shalt.err (!%p3416_p6)
}
 0x238   :  { %s3619_s25 = smov 128   ;;  %s3620_s1 = smov 8  }
 0x239   :  { %2897 = dma.vmem_to_hbm [thread:$0]  %s2892_s3, 256, %s6266_s8, [#allocation17], %s3619_s25, %s3619_s25, %s3620_s1  }
 0x23a   :  { %s3428_s28 = scalar_lea.vmem %s2917_s0, 128  ;;  %p3433_p8 = scmp.lt.s32.totalorder %s2917_s0, %s2917_s0 }
 0x23b   :  { %p3429_p7 = scmp.ne.s32.totalorder %s2917_s0, %s3428_s28  ;;  %p3434_p9 = scmp.lt.s32.totalorder %s3428_s28, %s3428_s28 }
 0x23d   :  { %p3435_p10 = por %p3434_p9, %p3433_p8 }
 0x23f   :  { %p3436_p11 = pnand %p3435_p10, %p3429_p7 }
 0x241   :  { %3439 = shalt.err (!%p3436_p11)
}
 0x242   :  { %2919 = dma.vmem_to_hbm [thread:$0]  %s2917_s0, 128, %s6268_s10, [#allocation20]  }
 0x243   :  { %s3621_s5 = smov [#allocation22]   ;;  %s3622_s17 = smov [#allocation25]  }
 0x244   :  { %s2936_s16 = sshll.u32 %s3621_s5, 4  ;;  %s2956_s18 = sshll.u32 %s3622_s17, 4  ;;  %s2937_s16 = int_to_ptr.vmem [resolvable:$true] %s2936_s16  ;;  %s2957_s18 = int_to_ptr.vmem [resolvable:$true] %s2956_s18 }
 0x245   :  { %s3448_s6 = scalar_lea.vmem %s2937_s16, 128  ;;  %p3453_p13 = scmp.lt.s32.totalorder %s2937_s16, %s2937_s16 }
 0x246   :  { %p3449_p12 = scmp.ne.s32.totalorder %s2937_s16, %s3448_s6  ;;  %p3454_p0 = scmp.lt.s32.totalorder %s3448_s6, %s3448_s6 }
 0x248   :  { %p3455_p1 = por %p3454_p0, %p3453_p13 }
 0x24a   :  { %p3456_p2 = pnand %p3455_p1, %p3449_p12 }
 0x24c   :  { %3459 = shalt.err (!%p3456_p2)
}
 0x24d   :  { %2939 = dma.vmem_to_hbm [thread:$0]  %s2937_s16, 128, %s6270_s12, [#allocation23]  }
 0x24e   :  { %s3468_s20 = scalar_lea.vmem %s2957_s18, 128  ;;  %p3473_p4 = scmp.lt.s32.totalorder %s2957_s18, %s2957_s18 }
 0x24f   :  { %p3469_p3 = scmp.ne.s32.totalorder %s2957_s18, %s3468_s20  ;;  %p3474_p5 = scmp.lt.s32.totalorder %s3468_s20, %s3468_s20 }
 0x251   :  { %p3475_p6 = por %p3474_p5, %p3473_p4 }
 0x253   :  { %p3476_p7 = pnand %p3475_p6, %p3469_p3 }
 0x255   :  { %3479 = shalt.err (!%p3476_p7)
}
 0x256   :  { %2959 = dma.vmem_to_hbm [thread:$0]  %s2957_s18, 128, %s6272_s14, [#allocation26]  }
 0x257   :  { %s3623_s22 = smov [#allocation14]   ;;  %s3624_s24 = smov [#allocation18]  }
 0x258   :  { %s2879_s23 = sshll.u32 %s3623_s22, 4  ;;  %s2903_s3 = sshll.u32 %s3624_s24, 4  ;;  %s2880_s23 = int_to_ptr.vmem [resolvable:$true] %s2879_s23  ;;  %s2904_s3 = int_to_ptr.vmem [resolvable:$true] %s2903_s3 }
 0x259   :  { %s3488_s4 = scalar_lea.vmem %s2880_s23, 256  ;;  %p3493_p9 = scmp.lt.s32.totalorder %s2880_s23, %s2880_s23 }
 0x25a   :  { %p3489_p8 = scmp.ne.s32.totalorder %s2880_s23, %s3488_s4  ;;  %p3494_p10 = scmp.lt.s32.totalorder %s3488_s4, %s3488_s4 }
 0x25c   :  { %p3495_p11 = por %p3494_p10, %p3493_p9 }
 0x25e   :  { %p3496_p12 = pnand %p3495_p11, %p3489_p8 }
 0x260   :  { %3499 = shalt.err (!%p3496_p12)
}
 0x261   :  { %2885 = dma.vmem_to_hbm [thread:$0]  %s2880_s23, 256, %s6265_s7, [#allocation15], %s3619_s25, %s3619_s25, %s3620_s1  }
 0x262   :  { %s3508_s14 = scalar_lea.vmem %s2904_s3, 256  ;;  %p3513_p0 = scmp.lt.s32.totalorder %s2904_s3, %s2904_s3 }
 0x263   :  { %p3509_p13 = scmp.ne.s32.totalorder %s2904_s3, %s3508_s14  ;;  %p3514_p1 = scmp.lt.s32.totalorder %s3508_s14, %s3508_s14 }
 0x265   :  { %p3515_p2 = por %p3514_p1, %p3513_p0 }
 0x267   :  { %p3516_p3 = pnand %p3515_p2, %p3509_p13 }
 0x269   :  { %3519 = shalt.err (!%p3516_p3)
}
 0x26a   :  { %2909 = dma.vmem_to_hbm [thread:$0]  %s2904_s3, 256, %s6267_s9, [#allocation17], %s3619_s25, %s3619_s25, %s3620_s1  }
 0x26b   :  { %s3625_s27 = smov [#allocation21]   ;;  %s3626_s29 = smov [#allocation24]  }
 0x26c   :  { %s2926_s28 = sshll.u32 %s3625_s27, 4  ;;  %s2946_s30 = sshll.u32 %s3626_s29, 4  ;;  %s2927_s28 = int_to_ptr.vmem [resolvable:$true] %s2926_s28  ;;  %s2947_s30 = int_to_ptr.vmem [resolvable:$true] %s2946_s30 }
 0x26d   :  { %s3528_s7 = scalar_lea.vmem %s2927_s28, 128  ;;  %p3533_p5 = scmp.lt.s32.totalorder %s2927_s28, %s2927_s28 }
 0x26e   :  { %p3529_p4 = scmp.ne.s32.totalorder %s2927_s28, %s3528_s7  ;;  %p3534_p6 = scmp.lt.s32.totalorder %s3528_s7, %s3528_s7 }
 0x270   :  { %p3535_p7 = por %p3534_p6, %p3533_p5 }
 0x272   :  { %p3536_p8 = pnand %p3535_p7, %p3529_p4 }
 0x274   :  { %3539 = shalt.err (!%p3536_p8)
}
 0x275   :  { %2929 = dma.vmem_to_hbm [thread:$0]  %s2927_s28, 128, %s6269_s11, [#allocation20]  }
 0x276   :  { %s3548_s17 = scalar_lea.vmem %s2947_s30, 16  ;;  %s3552_s9 = scalar_lea.vmem %s2947_s30, 32 }
 0x277   :  { %p3549_p9 = scmp.ne.s32.totalorder %s2947_s30, %s3548_s17  ;;  %p3553_p10 = scmp.lt.s32.totalorder %s2947_s30, %s2947_s30 }
 0x278   :  { %p3554_p11 = scmp.lt.s32.totalorder %s3552_s9, %s3548_s17 }
 0x27a   :  { %p3555_p12 = por %p3554_p11, %p3553_p10 }
 0x27c   :  { %p3556_p13 = pnand %p3555_p12, %p3549_p9 }
 0x27e   :  { %3559 = shalt.err (!%p3556_p13)
}
 0x27f   :  { %2949 = dma.vmem_to_hbm [thread:$0]  %s2947_s30, 16, %s6271_s13, [#allocation23]  }
 0x280   :  { %s3627_s18 = smov [#allocation27]  }
 0x281   :  { %s2966_s6 = sshll.u32 %s3627_s18, 4  ;;  %s2967_s6 = int_to_ptr.vmem [resolvable:$true] %s2966_s6 }
 0x282   :  { %s3568_s8 = scalar_lea.vmem %s2967_s6, 128  ;;  %p3573_p1 = scmp.lt.s32.totalorder %s2967_s6, %s2967_s6 }
 0x283   :  { %p3569_p0 = scmp.ne.s32.totalorder %s2967_s6, %s3568_s8  ;;  %p3574_p2 = scmp.lt.s32.totalorder %s3568_s8, %s3568_s8 }
 0x285   :  { %p3575_p3 = por %p3574_p2, %p3573_p1 }
 0x287   :  { %p3576_p4 = pnand %p3575_p3, %p3569_p0 }
 0x289   :  { %3579 = shalt.err (!%p3576_p4)
}
 0x28a   :  { %2969 = dma.vmem_to_hbm [thread:$0]  %s2967_s6, 128, %s6273_s15, [#allocation26]  }
 0x28b   :  { %3596 = dma.done.wait [#allocation15], 256  }
 0x28c   :  { %3597 = vsyncadd [#allocation15], 4294967040 }
 0x28d   :  { %3598 = dma.done.wait [#allocation17], 512  }
 0x28e   :  { %3599 = vsyncadd [#allocation17], 4294966784 }
 0x28f   :  { %3600 = dma.done.wait [#allocation20], 256  }
 0x290   :  { %3601 = vsyncadd [#allocation20], 4294967040 }
 0x291   :  { %3602 = dma.done.wait [#allocation23], 144  }
 0x292   :  { %3603 = vsyncadd [#allocation23], 4294967152 }
 0x293   :  { %3604 = dma.done.wait [#allocation26], 256  }
 0x294   :  { %3605 = vsyncadd [#allocation26], 4294967040 }
 0x295   :  { %2997 = vsyncpa [#allocation15], 1 }
 0x296   :  { %2998 = vsyncpa [#allocation17], 1 }
 0x297   :  { %2999 = vsyncpa [#allocation20], 1 }
 0x298   :  { %3000 = vsyncpa [#allocation23], 1 }
 0x299   :  { %3001 = vsyncpa [#allocation26], 1 }

</bundles_post_ra>
